<compile_context>
chip_gen: v7x
topology: tpu7x:2x2x1
jax: 0.10.0
libtpu: 0.0.40
codegen_flags: <defaults>
</compile_context>

<pallas_src>
import functools

import jax
import jax.numpy as jnp
from jax.experimental import pallas as pl
from jax.experimental.pallas import tpu as pltpu

_VMEM_LIMIT = 64 * 1024 * 1024      # v5e/v6e have 128 MiB; keep headroom on v7x.


def _compiler_params():
    return pltpu.CompilerParams(
        dimension_semantics=("parallel",),
        vmem_limit_bytes=_VMEM_LIMIT,
    )


# --------------------------------------------------------------------------
# Padded-flat geometry helpers.
# --------------------------------------------------------------------------
def _geom(H, W):
    """Row width, flat length, interior-span start and length."""
    Wr = W + 2
    L = (H + 2) * Wr
    i0 = Wr + 1                 # flat index of the first interior pixel
    S = H * Wr - 2              # span covering all interior pixels (+ in-row pads)
    return Wr, L, i0, S


def _interior_mask(H, W):
    Wr, L, _, _ = _geom(H, W)
    m = jnp.zeros((H + 2, Wr), jnp.float32).at[1:H + 1, 1:W + 1].set(1.0)
    return m.reshape(1, L)


# --------------------------------------------------------------------------
# In-kernel helpers.
# --------------------------------------------------------------------------
def _conv3x3_accum(read_tap, w_ref, b_ref, cout, Wr):
    """3x3 'same' conv as 9 per-tap MXU matmuls accumulated in f32.

    read_tap(start) -> (cin, S) bf16 lane-shifted slice of the padded-flat input.
    w_ref: (9*cout, cin) bf16 with rows ordered (tap, cout).  b_ref: (cout,1) f32.
    Returns (cout, S) f32 (bias added; not masked / activated)."""
    acc = None
    for t in range(9):
        dy, dx = divmod(t, 3)
        tap = read_tap(dy * Wr + dx)
        wt = w_ref[t * cout:(t + 1) * cout, :]
        p = jnp.dot(wt, tap, preferred_element_type=jnp.float32)
        acc = p if acc is None else acc + p
    return acc + b_ref[...]


def _store_span(o_ref, val, i0, S, L):
    """Write a (C, S) interior-span value into a (1, C, L) padded-flat output
    block, zeroing only the two halo strips outside the span."""
    C = val.shape[0]
    o_ref[0:1, :, 0:i0] = jnp.zeros((1, C, i0), o_ref.dtype)
    o_ref[0:1, :, i0 + S:L] = jnp.zeros((1, C, L - i0 - S), o_ref.dtype)
    o_ref[0:1, :, i0:i0 + S] = val[None].astype(o_ref.dtype)


# --------------------------------------------------------------------------
# Fused SFE kernel: two 3x3 convs, intermediate kept in bf16 VMEM scratch.
# --------------------------------------------------------------------------
def _sfe_kernel(x_ref, mask_ref, w0_ref, b0_ref, w1_ref, b1_ref, o_ref, buf_ref,
                *, H, W, nf):
    Wr, L, i0, S = _geom(H, W)
    mask_s = mask_ref[:, i0:i0 + S]                       # (1, S) f32

    # conv0: taps read straight from the (zero-halo) padded-flat input block.
    xb = x_ref[0].astype(jnp.bfloat16)                    # (nc, L)
    y0 = _conv3x3_accum(lambda st: xb[:, st:st + S], w0_ref, b0_ref, nf, Wr)
    y0 = y0 * mask_s

    # Stage y0 in bf16 padded scratch; only halo strips need explicit zeros.
    buf_ref[:, 0:i0] = jnp.zeros((nf, i0), jnp.bfloat16)
    buf_ref[:, i0 + S:L] = jnp.zeros((nf, L - i0 - S), jnp.bfloat16)
    buf_ref[:, i0:i0 + S] = y0.astype(jnp.bfloat16)

    y1 = _conv3x3_accum(lambda st: buf_ref[:, st:st + S], w1_ref, b1_ref, nf, Wr)
    _store_span(o_ref, y1 * mask_s, i0, S, L)


def sfe_forward(xp, mask, w0, b0, w1, b1, H, W):
    N, nc, L = xp.shape
    nf = w0.shape[0] // 9
    kernel = functools.partial(_sfe_kernel, H=H, W=W, nf=nf)
    return pl.pallas_call(
        kernel,
        out_shape=jax.ShapeDtypeStruct((N, nf, L), jnp.float32),
        grid=(N,),
        in_specs=[
            pl.BlockSpec((1, nc, L), lambda n: (n, 0, 0)),
            pl.BlockSpec((1, L), lambda n: (0, 0)),
            pl.BlockSpec(w0.shape, lambda n: (0, 0)),
            pl.BlockSpec(b0.shape, lambda n: (0, 0)),
            pl.BlockSpec(w1.shape, lambda n: (0, 0)),
            pl.BlockSpec(b1.shape, lambda n: (0, 0)),
        ],
        out_specs=pl.BlockSpec((1, nf, L), lambda n: (n, 0, 0)),
        scratch_shapes=[pltpu.VMEM((nf, L), jnp.bfloat16)],
        compiler_params=_compiler_params(),
    )(xp, mask, w0, b0, w1, b1)


# --------------------------------------------------------------------------
# Fused ResDenseBlock kernel: dense 3x3 convs (+ReLU) stacked in one bf16
# scratch, 1x1 LFF accumulated inline, residual add — one pallas_call.
# --------------------------------------------------------------------------
def _rdb_kernel(*refs, H, W, nf, growth, n_dense):
    h_ref, mask_ref = refs[0], refs[1]
    dense_wb = refs[2:2 + 2 * n_dense]
    w_lff_ref, b_lff_ref = refs[2 + 2 * n_dense], refs[3 + 2 * n_dense]
    o_ref = refs[4 + 2 * n_dense]
    buf_ref = refs[5 + 2 * n_dense]
    Wr, L, i0, S = _geom(H, W)
    c_tot = nf + n_dense * growth

    mask_s = mask_ref[:, i0:i0 + S]

    hv = h_ref[0]                                         # (nf, L) f32
    buf_ref[0:nf, :] = hv.astype(jnp.bfloat16)            # piece 0 (block input)
    # Zero only the halo strips of the dense-output rows; the interior span is
    # fully overwritten below.  Done every step -> grid steps stay independent.
    buf_ref[nf:c_tot, 0:i0] = jnp.zeros((c_tot - nf, i0), jnp.bfloat16)
    buf_ref[nf:c_tot, i0 + S:L] = jnp.zeros((c_tot - nf, L - i0 - S), jnp.bfloat16)

    # 1x1 local-feature-fusion accumulated inline, starting with the h piece.
    fused = jnp.dot(w_lff_ref[:, 0:nf], buf_ref[0:nf, i0:i0 + S],
                    preferred_element_type=jnp.float32)

    c_cur = nf
    for i in range(n_dense):
        w_ref, b_ref = dense_wb[2 * i], dense_wb[2 * i + 1]
        conv = _conv3x3_accum(
            lambda st, c=c_cur: buf_ref[0:c, st:st + S], w_ref, b_ref, growth, Wr)
        out = jnp.maximum(conv, 0.0) * mask_s              # ReLU + halo mask (f32)
        out_b = out.astype(jnp.bfloat16)
        buf_ref[c_cur:c_cur + growth, i0:i0 + S] = out_b
        fused = fused + jnp.dot(w_lff_ref[:, c_cur:c_cur + growth], out_b,
                                preferred_element_type=jnp.float32)
        c_cur += growth

    res = (fused + b_lff_ref[...]) * mask_s + hv[:, i0:i0 + S]
    _store_span(o_ref, res, i0, S, L)


def rdb_forward(hp, mask, dense_wb, lff_wb, growth, H, W):
    N, nf, L = hp.shape
    n_dense = len(dense_wb)
    kernel = functools.partial(_rdb_kernel, H=H, W=W, nf=nf,
                               growth=growth, n_dense=n_dense)

    in_specs = [pl.BlockSpec((1, nf, L), lambda n: (n, 0, 0)),
                pl.BlockSpec((1, L), lambda n: (0, 0))]
    args = [hp, mask]
    for (w, b) in dense_wb:
        in_specs += [pl.BlockSpec(w.shape, lambda n: (0, 0)),
                     pl.BlockSpec(b.shape, lambda n: (0, 0))]
        args += [w, b]
    in_specs += [pl.BlockSpec(lff_wb[0].shape, lambda n: (0, 0)),
                 pl.BlockSpec(lff_wb[1].shape, lambda n: (0, 0))]
    args += [lff_wb[0], lff_wb[1]]

    return pl.pallas_call(
        kernel,
        out_shape=jax.ShapeDtypeStruct((N, nf, L), jnp.float32),
        grid=(N,),
        in_specs=in_specs,
        out_specs=pl.BlockSpec((1, nf, L), lambda n: (n, 0, 0)),
        scratch_shapes=[pltpu.VMEM((nf + n_dense * growth, L), jnp.bfloat16)],
        compiler_params=_compiler_params(),
    )(*args)


# --------------------------------------------------------------------------
# Fused GFF kernel: per-feature 1x1 fusion accumulation + 3x3 conv.
# --------------------------------------------------------------------------
def _gff_kernel(*refs, H, W, nf, n_rdb):
    feat_refs = refs[:n_rdb]
    mask_ref = refs[n_rdb]
    wg0_ref, bg0_ref, wg1_ref, bg1_ref = refs[n_rdb + 1:n_rdb + 5]
    o_ref = refs[n_rdb + 5]
    buf_ref = refs[n_rdb + 6]
    Wr, L, i0, S = _geom(H, W)

    mask_l = mask_ref[...]
    mask_s = mask_ref[:, i0:i0 + S]

    # 1x1 fusion accumulated per RDB feature (no channel concat), over full L
    # so the scratch store below is a single aligned full-row write.
    g0 = None
    for i, fr in enumerate(feat_refs):
        fv = fr[0].astype(jnp.bfloat16)                   # (nf, L)
        p = jnp.dot(wg0_ref[:, i * nf:(i + 1) * nf], fv,
                    preferred_element_type=jnp.float32)
        g0 = p if g0 is None else g0 + p
    g0 = (g0 + bg0_ref[...]) * mask_l                     # halos back to zero
    buf_ref[...] = g0.astype(jnp.bfloat16)

    g1 = _conv3x3_accum(lambda st: buf_ref[:, st:st + S], wg1_ref, bg1_ref, nf, Wr)
    _store_span(o_ref, g1 * mask_s, i0, S, L)


def gff_forward(feats, mask, wg0, bg0, wg1, bg1, H, W):
    n_rdb = len(feats)
    N, nf, L = feats[0].shape
    kernel = functools.partial(_gff_kernel, H=H, W=W, nf=nf, n_rdb=n_rdb)
    in_specs = [pl.BlockSpec((1, nf, L), lambda n: (n, 0, 0)) for _ in range(n_rdb)]
    in_specs += [pl.BlockSpec((1, L), lambda n: (0, 0)),
                 pl.BlockSpec(wg0.shape, lambda n: (0, 0)),
                 pl.BlockSpec(bg0.shape, lambda n: (0, 0)),
                 pl.BlockSpec(wg1.shape, lambda n: (0, 0)),
                 pl.BlockSpec(bg1.shape, lambda n: (0, 0))]
    return pl.pallas_call(
        kernel,
        out_shape=jax.ShapeDtypeStruct((N, nf, L), jnp.float32),
        grid=(N,),
        in_specs=in_specs,
        out_specs=pl.BlockSpec((1, nf, L), lambda n: (n, 0, 0)),
        scratch_shapes=[pltpu.VMEM((nf, L), jnp.bfloat16)],
        compiler_params=_compiler_params(),
    )(*(list(feats) + [mask, wg0, bg0, wg1, bg1]))


# --------------------------------------------------------------------------
# Down-conv (kernel = stride = scale): interior crop + space-to-depth on the
# tiny tail activation (XLA), then one transposed point-wise Pallas matmul.
# --------------------------------------------------------------------------
def _down_kernel(x_ref, w_ref, b_ref, o_ref):
    x = x_ref[0].astype(jnp.bfloat16)                     # (s*s*nf, Ho*Wo)
    acc = jnp.dot(w_ref[...], x, preferred_element_type=jnp.float32) + b_ref[...]
    o_ref[...] = acc[None].astype(o_ref.dtype)


def down_forward(g_pad, wd, bd, H, W, scale):
    N, nf, L = g_pad.shape
    Wr = W + 2
    Ho, Wo = H // scale, W // scale
    g = g_pad.reshape(N, nf, H + 2, Wr)[:, :, 1:H + 1, 1:W + 1]
    g = g.reshape(N, nf, Ho, scale, Wo, scale)
    g = jnp.transpose(g, (0, 3, 5, 1, 2, 4)).reshape(N, scale * scale * nf, Ho * Wo)
    nc = wd.shape[0]
    out = pl.pallas_call(
        _down_kernel,
        out_shape=jax.ShapeDtypeStruct((N, nc, Ho * Wo), jnp.float32),
        grid=(N,),
        in_specs=[
            pl.BlockSpec((1, scale * scale * nf, Ho * Wo), lambda n: (n, 0, 0)),
            pl.BlockSpec(wd.shape, lambda n: (0, 0)),
            pl.BlockSpec(bd.shape, lambda n: (0, 0)),
        ],
        out_specs=pl.BlockSpec((1, nc, Ho * Wo), lambda n: (n, 0, 0)),
        compiler_params=_compiler_params(),
    )(g, wd, bd)
    return out.reshape(N, nc, Ho, Wo)


# --------------------------------------------------------------------------
# Deterministic parameter construction (synthetic weights, no checkpoint).
# --------------------------------------------------------------------------
def _init_conv(key, k, cin, cout, std=0.1):
    kw, kb = jax.random.split(key)
    w = std * jax.random.normal(kw, (k, k, cin, cout), jnp.float32)   # HWIO
    b = 0.02 * jax.random.normal(kb, (cout,), jnp.float32)
    return w, b


def init_params(key, n_channels, n_feature, n_rdb, n_dense, growth, scale):
    keys = iter(jax.random.split(key, 64))
    p = {}
    p["sfe0"] = _init_conv(next(keys), 3, n_channels, n_feature)
    p["sfe1"] = _init_conv(next(keys), 3, n_feature, n_feature)
    rdbs = []
    for _ in range(n_rdb):
        dense = []
        cin = n_feature
        for _ in range(n_dense):
            dense.append(_init_conv(next(keys), 3, cin, growth))
            cin += growth
        lff = _init_conv(next(keys), 1, cin, n_feature)
        rdbs.append({"dense": dense, "lff": lff})
    p["rdbs"] = rdbs
    p["gff0"] = _init_conv(next(keys), 1, n_feature * n_rdb, n_feature)
    p["gff1"] = _init_conv(next(keys), 3, n_feature, n_feature)
    p["down"] = _init_conv(next(keys), scale, n_feature, n_channels)
    return p


def _prep_conv3x3_t(wb):
    w, b = wb                                   # (3,3,cin,cout) HWIO
    k, _, cin, cout = w.shape
    wt = jnp.transpose(w, (0, 1, 3, 2)).reshape(k * k * cout, cin)   # (9*cout, cin)
    return wt.astype(jnp.bfloat16), b.reshape(cout, 1).astype(jnp.float32)


def _prep_conv1x1_t(wb):
    w, b = wb                                   # (1,1,cin,cout)
    cin, cout = w.shape[2], w.shape[3]
    wt = jnp.transpose(w.reshape(cin, cout))    # (cout, cin)
    return wt.astype(jnp.bfloat16), b.reshape(cout, 1).astype(jnp.float32)


def _prep_down_t(wb):
    w, b = wb                                   # (s,s,cin,cout)
    s, _, cin, cout = w.shape
    wt = jnp.transpose(w, (3, 0, 1, 2)).reshape(cout, s * s * cin)   # rows (a,b,ci)
    return wt.astype(jnp.bfloat16), b.reshape(cout, 1).astype(jnp.float32)


# --------------------------------------------------------------------------
# DPID forward (matches DPID.forward: SFE -> ResDenseBlocks -> GFF -> Down).
# Input / output are NCHW like the PyTorch module.
# --------------------------------------------------------------------------
def dpid_forward(params, x, scale):
    N, nc, H, W = x.shape
    growth = params["rdbs"][0]["dense"][0][0].shape[-1]
    _, L, _, _ = _geom(H, W)

    xp = jnp.pad(x, ((0, 0), (0, 0), (1, 1), (1, 1))).reshape(N, nc, L)
    mask = _interior_mask(H, W)

    w0, b0 = _prep_conv3x3_t(params["sfe0"])
    w1, b1 = _prep_conv3x3_t(params["sfe1"])
    h = sfe_forward(xp, mask, w0, b0, w1, b1, H, W)

    feats = []
    for blk in params["rdbs"]:
        dense_wb = [_prep_conv3x3_t(wb) for wb in blk["dense"]]
        lff_wb = _prep_conv1x1_t(blk["lff"])
        h = rdb_forward(h, mask, dense_wb, lff_wb, growth, H, W)
        feats.append(h)

    wg0, bg0 = _prep_conv1x1_t(params["gff0"])
    wg1, bg1 = _prep_conv3x3_t(params["gff1"])
    g = gff_forward(feats, mask, wg0, bg0, wg1, bg1, H, W)

    wd, bd = _prep_down_t(params["down"])
    return down_forward(g, wd, bd, H, W, scale)


# --------------------------------------------------------------------------
# Pure-XLA reference (f32, NCHW) used only to validate the Pallas path.
# --------------------------------------------------------------------------
def _ref_conv(x, w, b, stride=1, padding="SAME", relu=False):
    out = jax.lax.conv_general_dilated(
        x, w, window_strides=(stride, stride), padding=padding,
        dimension_numbers=("NCHW", "HWIO", "NCHW"))
    out = out + b.reshape(1, -1, 1, 1)
    return jnp.maximum(out, 0.0) if relu else out


def dpid_reference(params, x, scale):
    x = _ref_conv(x, *params["sfe0"])
    x = _ref_conv(x, *params["sfe1"])
    feats = []
    h = x
    for blk in params["rdbs"]:
        inp = h
        cat = inp
        for (w, b) in blk["dense"]:
            cat = jnp.concatenate([cat, _ref_conv(cat, w, b, relu=True)], axis=1)
        h = _ref_conv(cat, *blk["lff"]) + inp
        feats.append(h)
    x = jnp.concatenate(feats, axis=1)
    x = _ref_conv(x, *params["gff0"])
    x = _ref_conv(x, *params["gff1"])
    return _ref_conv(x, params["down"][0], params["down"][1],
                     stride=scale, padding="VALID")


if __name__ == "__main__":
    # Small synthetic configuration (args.*):
    n_channels = 3          # args.n_channels
    n_feature = 16          # args.n_feature
    n_rdb = 2               # args.n_ResDenseBlock
    n_dense = 2             # args.n_dense_layer
    growth = 8              # args.growth_rate
    scale = 2               # args.scales[0]

    N, H, W = 2, 16, 16
    x = jax.random.normal(jax.random.PRNGKey(0),
                          (N, n_channels, H, W), jnp.float32)     # NCHW

    params = init_params(jax.random.PRNGKey(42),
                         n_channels, n_feature, n_rdb, n_dense, growth, scale)

    fwd = jax.jit(dpid_forward, static_argnums=(2,))
    out = jax.block_until_ready(fwd(params, x, scale))
    assert out.shape == (N, n_channels, H // scale, W // scale), out.shape
    assert bool(jnp.all(jnp.isfinite(out)))

    # Numerical check against the pure-XLA f32 reference (bf16 matmuls leave
    # only a small relative error).
    ref = jax.block_until_ready(dpid_reference(params, x, scale))
    err = float(jnp.max(jnp.abs(out - ref)))
    ref_max = float(jnp.max(jnp.abs(ref)))
    assert err <= 0.05 * ref_max + 1e-3, (err, ref_max)

    print("KERNEL_OK")
</pallas_src>

<mosaic_0001>
module attributes {stable_mosaic.version = 11 : i64} {
  func.func @_sfe_kernel(%arg0: i32, %arg1: memref<1x3x324xf32, #tpu.memory_space<vmem>>, %arg2: memref<1x324xf32, #tpu.memory_space<vmem>>, %arg3: memref<144x3xbf16, #tpu.memory_space<vmem>>, %arg4: memref<16x1xf32, #tpu.memory_space<vmem>>, %arg5: memref<144x16xbf16, #tpu.memory_space<vmem>>, %arg6: memref<16x1xf32, #tpu.memory_space<vmem>>, %arg7: memref<1x16x324xf32, #tpu.memory_space<vmem>>, %arg8: memref<16x324xbf16, #tpu.memory_space<vmem>>) attributes {dimension_semantics = [#tpu.dimension_semantics<parallel>], iteration_bounds = array<i64: 2>, scalar_prefetch = 0 : i64, scratch_operands = 1 : i64, tpu.core_type = #tpu.core_type<tc>, window_params = [{transform_indices = @transform_0, window_bounds = array<i64: 1, 3, 324>}, {pipeline_mode = #tpu.pipeline_mode<synchronous>, transform_indices = @transform_1, window_bounds = array<i64: 1, 324>}, {pipeline_mode = #tpu.pipeline_mode<synchronous>, transform_indices = @transform_2, window_bounds = array<i64: 144, 3>}, {pipeline_mode = #tpu.pipeline_mode<synchronous>, transform_indices = @transform_3, window_bounds = array<i64: 16, 1>}, {pipeline_mode = #tpu.pipeline_mode<synchronous>, transform_indices = @transform_4, window_bounds = array<i64: 144, 16>}, {pipeline_mode = #tpu.pipeline_mode<synchronous>, transform_indices = @transform_5, window_bounds = array<i64: 16, 1>}, {transform_indices = @transform_6, window_bounds = array<i64: 1, 16, 324>}]} {
    %c0 = arith.constant 0 : index
    %c19 = arith.constant 19 : index
    %0 = vector.load %arg2[%c0, %c19] : memref<1x324xf32, #tpu.memory_space<vmem>>, vector<1x286xf32>
    %c0_0 = arith.constant 0 : index
    %c0_1 = arith.constant 0 : index
    %c0_2 = arith.constant 0 : index
    %1 = vector.load %arg1[%c0_0, %c0_1, %c0_2] : memref<1x3x324xf32, #tpu.memory_space<vmem>>, vector<1x3x324xf32>
    %2 = vector.shape_cast %1 : vector<1x3x324xf32> to vector<3x324xf32>
    %3 = arith.truncf %2 : vector<3x324xf32> to vector<3x324xbf16>
    %4 = vector.extract_strided_slice %3 {offsets = [0, 0], sizes = [3, 286], strides = [1, 1]} : vector<3x324xbf16> to vector<3x286xbf16>
    %c0_3 = arith.constant 0 : index
    %c0_4 = arith.constant 0 : index
    %5 = vector.load %arg3[%c0_3, %c0_4] : memref<144x3xbf16, #tpu.memory_space<vmem>>, vector<16x3xbf16>
    %cst = arith.constant dense<0.000000e+00> : vector<16x286xf32>
    %6 = tpu.matmul %5, %4, %cst {dimension_numbers = #tpu.dot_dimension_numbers<[1], [0], [0], [1], [0, 0, 1, 1], [], []>} : vector<16x3xbf16>, vector<3x286xbf16>, vector<16x286xf32> -> vector<16x286xf32>
    %7 = vector.extract_strided_slice %3 {offsets = [0, 1], sizes = [3, 286], strides = [1, 1]} : vector<3x324xbf16> to vector<3x286xbf16>
    %c16 = arith.constant 16 : index
    %c0_5 = arith.constant 0 : index
    %8 = vector.load %arg3[%c16, %c0_5] : memref<144x3xbf16, #tpu.memory_space<vmem>>, vector<16x3xbf16>
    %cst_6 = arith.constant dense<0.000000e+00> : vector<16x286xf32>
    %9 = tpu.matmul %8, %7, %cst_6 {dimension_numbers = #tpu.dot_dimension_numbers<[1], [0], [0], [1], [0, 0, 1, 1], [], []>} : vector<16x3xbf16>, vector<3x286xbf16>, vector<16x286xf32> -> vector<16x286xf32>
    %10 = arith.addf %6, %9 : vector<16x286xf32>
    %11 = vector.extract_strided_slice %3 {offsets = [0, 2], sizes = [3, 286], strides = [1, 1]} : vector<3x324xbf16> to vector<3x286xbf16>
    %c32 = arith.constant 32 : index
    %c0_7 = arith.constant 0 : index
    %12 = vector.load %arg3[%c32, %c0_7] : memref<144x3xbf16, #tpu.memory_space<vmem>>, vector<16x3xbf16>
    %cst_8 = arith.constant dense<0.000000e+00> : vector<16x286xf32>
    %13 = tpu.matmul %12, %11, %cst_8 {dimension_numbers = #tpu.dot_dimension_numbers<[1], [0], [0], [1], [0, 0, 1, 1], [], []>} : vector<16x3xbf16>, vector<3x286xbf16>, vector<16x286xf32> -> vector<16x286xf32>
    %14 = arith.addf %10, %13 : vector<16x286xf32>
    %15 = vector.extract_strided_slice %3 {offsets = [0, 18], sizes = [3, 286], strides = [1, 1]} : vector<3x324xbf16> to vector<3x286xbf16>
    %c48 = arith.constant 48 : index
    %c0_9 = arith.constant 0 : index
    %16 = vector.load %arg3[%c48, %c0_9] : memref<144x3xbf16, #tpu.memory_space<vmem>>, vector<16x3xbf16>
    %cst_10 = arith.constant dense<0.000000e+00> : vector<16x286xf32>
    %17 = tpu.matmul %16, %15, %cst_10 {dimension_numbers = #tpu.dot_dimension_numbers<[1], [0], [0], [1], [0, 0, 1, 1], [], []>} : vector<16x3xbf16>, vector<3x286xbf16>, vector<16x286xf32> -> vector<16x286xf32>
    %18 = arith.addf %14, %17 : vector<16x286xf32>
    %19 = vector.extract_strided_slice %3 {offsets = [0, 19], sizes = [3, 286], strides = [1, 1]} : vector<3x324xbf16> to vector<3x286xbf16>
    %c64 = arith.constant 64 : index
    %c0_11 = arith.constant 0 : index
    %20 = vector.load %arg3[%c64, %c0_11] : memref<144x3xbf16, #tpu.memory_space<vmem>>, vector<16x3xbf16>
    %cst_12 = arith.constant dense<0.000000e+00> : vector<16x286xf32>
    %21 = tpu.matmul %20, %19, %cst_12 {dimension_numbers = #tpu.dot_dimension_numbers<[1], [0], [0], [1], [0, 0, 1, 1], [], []>} : vector<16x3xbf16>, vector<3x286xbf16>, vector<16x286xf32> -> vector<16x286xf32>
    %22 = arith.addf %18, %21 : vector<16x286xf32>
    %23 = vector.extract_strided_slice %3 {offsets = [0, 20], sizes = [3, 286], strides = [1, 1]} : vector<3x324xbf16> to vector<3x286xbf16>
    %c80 = arith.constant 80 : index
    %c0_13 = arith.constant 0 : index
    %24 = vector.load %arg3[%c80, %c0_13] : memref<144x3xbf16, #tpu.memory_space<vmem>>, vector<16x3xbf16>
    %cst_14 = arith.constant dense<0.000000e+00> : vector<16x286xf32>
    %25 = tpu.matmul %24, %23, %cst_14 {dimension_numbers = #tpu.dot_dimension_numbers<[1], [0], [0], [1], [0, 0, 1, 1], [], []>} : vector<16x3xbf16>, vector<3x286xbf16>, vector<16x286xf32> -> vector<16x286xf32>
    %26 = arith.addf %22, %25 : vector<16x286xf32>
    %27 = vector.extract_strided_slice %3 {offsets = [0, 36], sizes = [3, 286], strides = [1, 1]} : vector<3x324xbf16> to vector<3x286xbf16>
    %c96 = arith.constant 96 : index
    %c0_15 = arith.constant 0 : index
    %28 = vector.load %arg3[%c96, %c0_15] : memref<144x3xbf16, #tpu.memory_space<vmem>>, vector<16x3xbf16>
    %cst_16 = arith.constant dense<0.000000e+00> : vector<16x286xf32>
    %29 = tpu.matmul %28, %27, %cst_16 {dimension_numbers = #tpu.dot_dimension_numbers<[1], [0], [0], [1], [0, 0, 1, 1], [], []>} : vector<16x3xbf16>, vector<3x286xbf16>, vector<16x286xf32> -> vector<16x286xf32>
    %30 = arith.addf %26, %29 : vector<16x286xf32>
    %31 = vector.extract_strided_slice %3 {offsets = [0, 37], sizes = [3, 286], strides = [1, 1]} : vector<3x324xbf16> to vector<3x286xbf16>
    %c112 = arith.constant 112 : index
    %c0_17 = arith.constant 0 : index
    %32 = vector.load %arg3[%c112, %c0_17] : memref<144x3xbf16, #tpu.memory_space<vmem>>, vector<16x3xbf16>
    %cst_18 = arith.constant dense<0.000000e+00> : vector<16x286xf32>
    %33 = tpu.matmul %32, %31, %cst_18 {dimension_numbers = #tpu.dot_dimension_numbers<[1], [0], [0], [1], [0, 0, 1, 1], [], []>} : vector<16x3xbf16>, vector<3x286xbf16>, vector<16x286xf32> -> vector<16x286xf32>
    %34 = arith.addf %30, %33 : vector<16x286xf32>
    %35 = vector.extract_strided_slice %3 {offsets = [0, 38], sizes = [3, 286], strides = [1, 1]} : vector<3x324xbf16> to vector<3x286xbf16>
    %c128 = arith.constant 128 : index
    %c0_19 = arith.constant 0 : index
    %36 = vector.load %arg3[%c128, %c0_19] : memref<144x3xbf16, #tpu.memory_space<vmem>>, vector<16x3xbf16>
    %cst_20 = arith.constant dense<0.000000e+00> : vector<16x286xf32>
    %37 = tpu.matmul %36, %35, %cst_20 {dimension_numbers = #tpu.dot_dimension_numbers<[1], [0], [0], [1], [0, 0, 1, 1], [], []>} : vector<16x3xbf16>, vector<3x286xbf16>, vector<16x286xf32> -> vector<16x286xf32>
    %38 = arith.addf %34, %37 : vector<16x286xf32>
    %c0_21 = arith.constant 0 : index
    %c0_22 = arith.constant 0 : index
    %39 = vector.load %arg4[%c0_21, %c0_22] : memref<16x1xf32, #tpu.memory_space<vmem>>, vector<16x1xf32>
    %40 = vector.broadcast %39 : vector<16x1xf32> to vector<16x286xf32>
    %41 = arith.addf %38, %40 : vector<16x286xf32>
    %42 = vector.broadcast %0 : vector<1x286xf32> to vector<16x286xf32>
    %43 = arith.mulf %41, %42 : vector<16x286xf32>
    %cst_23 = arith.constant 0.000000e+00 : bf16
    %44 = vector.broadcast %cst_23 : bf16 to vector<16x19xbf16>
    %c0_24 = arith.constant 0 : index
    %c0_25 = arith.constant 0 : index
    %45 = vector.load %arg8[%c0_24, %c0_25] : memref<16x324xbf16, #tpu.memory_space<vmem>>, vector<16x19xbf16>
    tpu.vector_store %arg8[%c0_24, %c0_25], %44 {strides = array<i32>} : memref<16x324xbf16, #tpu.memory_space<vmem>>, vector<16x19xbf16>,
    %cst_26 = arith.constant 0.000000e+00 : bf16
    %46 = vector.broadcast %cst_26 : bf16 to vector<16x19xbf16>
    %c0_27 = arith.constant 0 : index
    %c305 = arith.constant 305 : index
    %47 = vector.load %arg8[%c0_27, %c305] : memref<16x324xbf16, #tpu.memory_space<vmem>>, vector<16x19xbf16>
    tpu.vector_store %arg8[%c0_27, %c305], %46 {strides = array<i32>} : memref<16x324xbf16, #tpu.memory_space<vmem>>, vector<16x19xbf16>,
    %48 = arith.truncf %43 : vector<16x286xf32> to vector<16x286xbf16>
    %c0_28 = arith.constant 0 : index
    %c19_29 = arith.constant 19 : index
    %49 = vector.load %arg8[%c0_28, %c19_29] : memref<16x324xbf16, #tpu.memory_space<vmem>>, vector<16x286xbf16>
    tpu.vector_store %arg8[%c0_28, %c19_29], %48 {strides = array<i32>} : memref<16x324xbf16, #tpu.memory_space<vmem>>, vector<16x286xbf16>,
    %c0_30 = arith.constant 0 : index
    %c0_31 = arith.constant 0 : index
    %50 = vector.load %arg8[%c0_30, %c0_31] : memref<16x324xbf16, #tpu.memory_space<vmem>>, vector<16x286xbf16>
    %c0_32 = arith.constant 0 : index
    %c0_33 = arith.constant 0 : index
    %51 = vector.load %arg5[%c0_32, %c0_33] : memref<144x16xbf16, #tpu.memory_space<vmem>>, vector<16x16xbf16>
    %cst_34 = arith.constant dense<0.000000e+00> : vector<16x286xf32>
    %52 = tpu.matmul %51, %50, %cst_34 {dimension_numbers = #tpu.dot_dimension_numbers<[1], [0], [0], [1], [0, 0, 1, 1], [], []>} : vector<16x16xbf16>, vector<16x286xbf16>, vector<16x286xf32> -> vector<16x286xf32>
    %c0_35 = arith.constant 0 : index
    %c1 = arith.constant 1 : index
    %53 = vector.load %arg8[%c0_35, %c1] : memref<16x324xbf16, #tpu.memory_space<vmem>>, vector<16x286xbf16>
    %c16_36 = arith.constant 16 : index
    %c0_37 = arith.constant 0 : index
    %54 = vector.load %arg5[%c16_36, %c0_37] : memref<144x16xbf16, #tpu.memory_space<vmem>>, vector<16x16xbf16>
    %cst_38 = arith.constant dense<0.000000e+00> : vector<16x286xf32>
    %55 = tpu.matmul %54, %53, %cst_38 {dimension_numbers = #tpu.dot_dimension_numbers<[1], [0], [0], [1], [0, 0, 1, 1], [], []>} : vector<16x16xbf16>, vector<16x286xbf16>, vector<16x286xf32> -> vector<16x286xf32>
    %56 = arith.addf %52, %55 : vector<16x286xf32>
    %c0_39 = arith.constant 0 : index
    %c2 = arith.constant 2 : index
    %57 = vector.load %arg8[%c0_39, %c2] : memref<16x324xbf16, #tpu.memory_space<vmem>>, vector<16x286xbf16>
    %c32_40 = arith.constant 32 : index
    %c0_41 = arith.constant 0 : index
    %58 = vector.load %arg5[%c32_40, %c0_41] : memref<144x16xbf16, #tpu.memory_space<vmem>>, vector<16x16xbf16>
    %cst_42 = arith.constant dense<0.000000e+00> : vector<16x286xf32>
    %59 = tpu.matmul %58, %57, %cst_42 {dimension_numbers = #tpu.dot_dimension_numbers<[1], [0], [0], [1], [0, 0, 1, 1], [], []>} : vector<16x16xbf16>, vector<16x286xbf16>, vector<16x286xf32> -> vector<16x286xf32>
    %60 = arith.addf %56, %59 : vector<16x286xf32>
    %c0_43 = arith.constant 0 : index
    %c18 = arith.constant 18 : index
    %61 = vector.load %arg8[%c0_43, %c18] : memref<16x324xbf16, #tpu.memory_space<vmem>>, vector<16x286xbf16>
    %c48_44 = arith.constant 48 : index
    %c0_45 = arith.constant 0 : index
    %62 = vector.load %arg5[%c48_44, %c0_45] : memref<144x16xbf16, #tpu.memory_space<vmem>>, vector<16x16xbf16>
    %cst_46 = arith.constant dense<0.000000e+00> : vector<16x286xf32>
    %63 = tpu.matmul %62, %61, %cst_46 {dimension_numbers = #tpu.dot_dimension_numbers<[1], [0], [0], [1], [0, 0, 1, 1], [], []>} : vector<16x16xbf16>, vector<16x286xbf16>, vector<16x286xf32> -> vector<16x286xf32>
    %64 = arith.addf %60, %63 : vector<16x286xf32>
    %c0_47 = arith.constant 0 : index
    %c19_48 = arith.constant 19 : index
    %65 = vector.load %arg8[%c0_47, %c19_48] : memref<16x324xbf16, #tpu.memory_space<vmem>>, vector<16x286xbf16>
    %c64_49 = arith.constant 64 : index
    %c0_50 = arith.constant 0 : index
    %66 = vector.load %arg5[%c64_49, %c0_50] : memref<144x16xbf16, #tpu.memory_space<vmem>>, vector<16x16xbf16>
    %cst_51 = arith.constant dense<0.000000e+00> : vector<16x286xf32>
    %67 = tpu.matmul %66, %65, %cst_51 {dimension_numbers = #tpu.dot_dimension_numbers<[1], [0], [0], [1], [0, 0, 1, 1], [], []>} : vector<16x16xbf16>, vector<16x286xbf16>, vector<16x286xf32> -> vector<16x286xf32>
    %68 = arith.addf %64, %67 : vector<16x286xf32>
    %c0_52 = arith.constant 0 : index
    %c20 = arith.constant 20 : index
    %69 = vector.load %arg8[%c0_52, %c20] : memref<16x324xbf16, #tpu.memory_space<vmem>>, vector<16x286xbf16>
    %c80_53 = arith.constant 80 : index
    %c0_54 = arith.constant 0 : index
    %70 = vector.load %arg5[%c80_53, %c0_54] : memref<144x16xbf16, #tpu.memory_space<vmem>>, vector<16x16xbf16>
    %cst_55 = arith.constant dense<0.000000e+00> : vector<16x286xf32>
    %71 = tpu.matmul %70, %69, %cst_55 {dimension_numbers = #tpu.dot_dimension_numbers<[1], [0], [0], [1], [0, 0, 1, 1], [], []>} : vector<16x16xbf16>, vector<16x286xbf16>, vector<16x286xf32> -> vector<16x286xf32>
    %72 = arith.addf %68, %71 : vector<16x286xf32>
    %c0_56 = arith.constant 0 : index
    %c36 = arith.constant 36 : index
    %73 = vector.load %arg8[%c0_56, %c36] : memref<16x324xbf16, #tpu.memory_space<vmem>>, vector<16x286xbf16>
    %c96_57 = arith.constant 96 : index
    %c0_58 = arith.constant 0 : index
    %74 = vector.load %arg5[%c96_57, %c0_58] : memref<144x16xbf16, #tpu.memory_space<vmem>>, vector<16x16xbf16>
    %cst_59 = arith.constant dense<0.000000e+00> : vector<16x286xf32>
    %75 = tpu.matmul %74, %73, %cst_59 {dimension_numbers = #tpu.dot_dimension_numbers<[1], [0], [0], [1], [0, 0, 1, 1], [], []>} : vector<16x16xbf16>, vector<16x286xbf16>, vector<16x286xf32> -> vector<16x286xf32>
    %76 = arith.addf %72, %75 : vector<16x286xf32>
    %c0_60 = arith.constant 0 : index
    %c37 = arith.constant 37 : index
    %77 = vector.load %arg8[%c0_60, %c37] : memref<16x324xbf16, #tpu.memory_space<vmem>>, vector<16x286xbf16>
    %c112_61 = arith.constant 112 : index
    %c0_62 = arith.constant 0 : index
    %78 = vector.load %arg5[%c112_61, %c0_62] : memref<144x16xbf16, #tpu.memory_space<vmem>>, vector<16x16xbf16>
    %cst_63 = arith.constant dense<0.000000e+00> : vector<16x286xf32>
    %79 = tpu.matmul %78, %77, %cst_63 {dimension_numbers = #tpu.dot_dimension_numbers<[1], [0], [0], [1], [0, 0, 1, 1], [], []>} : vector<16x16xbf16>, vector<16x286xbf16>, vector<16x286xf32> -> vector<16x286xf32>
    %80 = arith.addf %76, %79 : vector<16x286xf32>
    %c0_64 = arith.constant 0 : index
    %c38 = arith.constant 38 : index
    %81 = vector.load %arg8[%c0_64, %c38] : memref<16x324xbf16, #tpu.memory_space<vmem>>, vector<16x286xbf16>
    %c128_65 = arith.constant 128 : index
    %c0_66 = arith.constant 0 : index
    %82 = vector.load %arg5[%c128_65, %c0_66] : memref<144x16xbf16, #tpu.memory_space<vmem>>, vector<16x16xbf16>
    %cst_67 = arith.constant dense<0.000000e+00> : vector<16x286xf32>
    %83 = tpu.matmul %82, %81, %cst_67 {dimension_numbers = #tpu.dot_dimension_numbers<[1], [0], [0], [1], [0, 0, 1, 1], [], []>} : vector<16x16xbf16>, vector<16x286xbf16>, vector<16x286xf32> -> vector<16x286xf32>
    %84 = arith.addf %80, %83 : vector<16x286xf32>
    %c0_68 = arith.constant 0 : index
    %c0_69 = arith.constant 0 : index
    %85 = vector.load %arg6[%c0_68, %c0_69] : memref<16x1xf32, #tpu.memory_space<vmem>>, vector<16x1xf32>
    %86 = vector.broadcast %85 : vector<16x1xf32> to vector<16x286xf32>
    %87 = arith.addf %84, %86 : vector<16x286xf32>
    %88 = vector.broadcast %0 : vector<1x286xf32> to vector<16x286xf32>
    %89 = arith.mulf %87, %88 : vector<16x286xf32>
    %cst_70 = arith.constant 0.000000e+00 : f32
    %90 = vector.broadcast %cst_70 : f32 to vector<1x16x19xf32>
    %c0_71 = arith.constant 0 : index
    %c0_72 = arith.constant 0 : index
    %c0_73 = arith.constant 0 : index
    %91 = vector.load %arg7[%c0_71, %c0_72, %c0_73] : memref<1x16x324xf32, #tpu.memory_space<vmem>>, vector<1x16x19xf32>
    tpu.vector_store %arg7[%c0_71, %c0_72, %c0_73], %90 {strides = array<i32>} : memref<1x16x324xf32, #tpu.memory_space<vmem>>, vector<1x16x19xf32>,
    %cst_74 = arith.constant 0.000000e+00 : f32
    %92 = vector.broadcast %cst_74 : f32 to vector<1x16x19xf32>
    %c0_75 = arith.constant 0 : index
    %c0_76 = arith.constant 0 : index
    %c305_77 = arith.constant 305 : index
    %93 = vector.load %arg7[%c0_75, %c0_76, %c305_77] : memref<1x16x324xf32, #tpu.memory_space<vmem>>, vector<1x16x19xf32>
    tpu.vector_store %arg7[%c0_75, %c0_76, %c305_77], %92 {strides = array<i32>} : memref<1x16x324xf32, #tpu.memory_space<vmem>>, vector<1x16x19xf32>,
    %94 = vector.shape_cast %89 : vector<16x286xf32> to vector<1x16x286xf32>
    %c0_78 = arith.constant 0 : index
    %c0_79 = arith.constant 0 : index
    %c19_80 = arith.constant 19 : index
    %95 = vector.load %arg7[%c0_78, %c0_79, %c19_80] : memref<1x16x324xf32, #tpu.memory_space<vmem>>, vector<1x16x286xf32>
    tpu.vector_store %arg7[%c0_78, %c0_79, %c19_80], %94 {strides = array<i32>} : memref<1x16x324xf32, #tpu.memory_space<vmem>>, vector<1x16x286xf32>,
    return
  }
  func.func @transform_0(%arg0: i32) -> (i32, i32, i32) {
    %c0_i32 = arith.constant 0 : i32
    %c0_i32_0 = arith.constant 0 : i32
    %c0_i32_1 = arith.constant 0 : i32
    return %arg0, %c0_i32, %c0_i32_0 : i32, i32, i32
  }
  func.func @transform_1(%arg0: i32) -> (i32, i32) {
    %c0_i32 = arith.constant 0 : i32
    %c0_i32_0 = arith.constant 0 : i32
    %c0_i32_1 = arith.constant 0 : i32
    return %c0_i32, %c0_i32_0 : i32, i32
  }
  func.func @transform_2(%arg0: i32) -> (i32, i32) {
    %c0_i32 = arith.constant 0 : i32
    %c0_i32_0 = arith.constant 0 : i32
    %c0_i32_1 = arith.constant 0 : i32
    return %c0_i32, %c0_i32_0 : i32, i32
  }
  func.func @transform_3(%arg0: i32) -> (i32, i32) {
    %c0_i32 = arith.constant 0 : i32
    %c0_i32_0 = arith.constant 0 : i32
    %c0_i32_1 = arith.constant 0 : i32
    return %c0_i32, %c0_i32_0 : i32, i32
  }
  func.func @transform_4(%arg0: i32) -> (i32, i32) {
    %c0_i32 = arith.constant 0 : i32
    %c0_i32_0 = arith.constant 0 : i32
    %c0_i32_1 = arith.constant 0 : i32
    return %c0_i32, %c0_i32_0 : i32, i32
  }
  func.func @transform_5(%arg0: i32) -> (i32, i32) {
    %c0_i32 = arith.constant 0 : i32
    %c0_i32_0 = arith.constant 0 : i32
    %c0_i32_1 = arith.constant 0 : i32
    return %c0_i32, %c0_i32_0 : i32, i32
  }
  func.func @transform_6(%arg0: i32) -> (i32, i32, i32) {
    %c0_i32 = arith.constant 0 : i32
    %c0_i32_0 = arith.constant 0 : i32
    %c0_i32_1 = arith.constant 0 : i32
    return %arg0, %c0_i32, %c0_i32_0 : i32, i32, i32
  }
}

module attributes {stable_mosaic.version = 11 : i64} {
  func.func @_rdb_kernel(%arg0: i32, %arg1: memref<1x16x324xf32, #tpu.memory_space<vmem>>, %arg2: memref<1x324xf32, #tpu.memory_space<vmem>>, %arg3: memref<72x16xbf16, #tpu.memory_space<vmem>>, %arg4: memref<8x1xf32, #tpu.memory_space<vmem>>, %arg5: memref<72x24xbf16, #tpu.memory_space<vmem>>, %arg6: memref<8x1xf32, #tpu.memory_space<vmem>>, %arg7: memref<16x32xbf16, #tpu.memory_space<vmem>>, %arg8: memref<16x1xf32, #tpu.memory_space<vmem>>, %arg9: memref<1x16x324xf32, #tpu.memory_space<vmem>>, %arg10: memref<32x324xbf16, #tpu.memory_space<vmem>>) attributes {dimension_semantics = [#tpu.dimension_semantics<parallel>], iteration_bounds = array<i64: 2>, scalar_prefetch = 0 : i64, scratch_operands = 1 : i64, tpu.core_type = #tpu.core_type<tc>, window_params = [{transform_indices = @transform_0, window_bounds = array<i64: 1, 16, 324>}, {pipeline_mode = #tpu.pipeline_mode<synchronous>, transform_indices = @transform_1, window_bounds = array<i64: 1, 324>}, {pipeline_mode = #tpu.pipeline_mode<synchronous>, transform_indices = @transform_2, window_bounds = array<i64: 72, 16>}, {pipeline_mode = #tpu.pipeline_mode<synchronous>, transform_indices = @transform_3, window_bounds = array<i64: 8, 1>}, {pipeline_mode = #tpu.pipeline_mode<synchronous>, transform_indices = @transform_4, window_bounds = array<i64: 72, 24>}, {pipeline_mode = #tpu.pipeline_mode<synchronous>, transform_indices = @transform_5, window_bounds = array<i64: 8, 1>}, {pipeline_mode = #tpu.pipeline_mode<synchronous>, transform_indices = @transform_6, window_bounds = array<i64: 16, 32>}, {pipeline_mode = #tpu.pipeline_mode<synchronous>, transform_indices = @transform_7, window_bounds = array<i64: 16, 1>}, {transform_indices = @transform_8, window_bounds = array<i64: 1, 16, 324>}]} {
    %c0 = arith.constant 0 : index
    %c19 = arith.constant 19 : index
    %0 = vector.load %arg2[%c0, %c19] : memref<1x324xf32, #tpu.memory_space<vmem>>, vector<1x286xf32>
    %c0_0 = arith.constant 0 : index
    %c0_1 = arith.constant 0 : index
    %c0_2 = arith.constant 0 : index
    %1 = vector.load %arg1[%c0_0, %c0_1, %c0_2] : memref<1x16x324xf32, #tpu.memory_space<vmem>>, vector<1x16x324xf32>
    %2 = vector.shape_cast %1 : vector<1x16x324xf32> to vector<16x324xf32>
    %3 = arith.truncf %2 : vector<16x324xf32> to vector<16x324xbf16>
    %c0_3 = arith.constant 0 : index
    %c0_4 = arith.constant 0 : index
    %4 = vector.load %arg10[%c0_3, %c0_4] : memref<32x324xbf16, #tpu.memory_space<vmem>>, vector<16x324xbf16>
    tpu.vector_store %arg10[%c0_3, %c0_4], %3 {strides = array<i32>} : memref<32x324xbf16, #tpu.memory_space<vmem>>, vector<16x324xbf16>,
    %cst = arith.constant 0.000000e+00 : bf16
    %5 = vector.broadcast %cst : bf16 to vector<16x19xbf16>
    %c16 = arith.constant 16 : index
    %c0_5 = arith.constant 0 : index
    %6 = vector.load %arg10[%c16, %c0_5] : memref<32x324xbf16, #tpu.memory_space<vmem>>, vector<16x19xbf16>
    tpu.vector_store %arg10[%c16, %c0_5], %5 {strides = array<i32>} : memref<32x324xbf16, #tpu.memory_space<vmem>>, vector<16x19xbf16>,
    %cst_6 = arith.constant 0.000000e+00 : bf16
    %7 = vector.broadcast %cst_6 : bf16 to vector<16x19xbf16>
    %c16_7 = arith.constant 16 : index
    %c305 = arith.constant 305 : index
    %8 = vector.load %arg10[%c16_7, %c305] : memref<32x324xbf16, #tpu.memory_space<vmem>>, vector<16x19xbf16>
    tpu.vector_store %arg10[%c16_7, %c305], %7 {strides = array<i32>} : memref<32x324xbf16, #tpu.memory_space<vmem>>, vector<16x19xbf16>,
    %c0_8 = arith.constant 0 : index
    %c0_9 = arith.constant 0 : index
    %9 = vector.load %arg7[%c0_8, %c0_9] : memref<16x32xbf16, #tpu.memory_space<vmem>>, vector<16x16xbf16>
    %c0_10 = arith.constant 0 : index
    %c19_11 = arith.constant 19 : index
    %10 = vector.load %arg10[%c0_10, %c19_11] : memref<32x324xbf16, #tpu.memory_space<vmem>>, vector<16x286xbf16>
    %cst_12 = arith.constant dense<0.000000e+00> : vector<16x286xf32>
    %11 = tpu.matmul %9, %10, %cst_12 {dimension_numbers = #tpu.dot_dimension_numbers<[1], [0], [0], [1], [0, 0, 1, 1], [], []>} : vector<16x16xbf16>, vector<16x286xbf16>, vector<16x286xf32> -> vector<16x286xf32>
    %c0_13 = arith.constant 0 : index
    %c0_14 = arith.constant 0 : index
    %12 = vector.load %arg10[%c0_13, %c0_14] : memref<32x324xbf16, #tpu.memory_space<vmem>>, vector<16x286xbf16>
    %c0_15 = arith.constant 0 : index
    %c0_16 = arith.constant 0 : index
    %13 = vector.load %arg3[%c0_15, %c0_16] : memref<72x16xbf16, #tpu.memory_space<vmem>>, vector<8x16xbf16>
    %cst_17 = arith.constant dense<0.000000e+00> : vector<8x286xf32>
    %14 = tpu.matmul %13, %12, %cst_17 {dimension_numbers = #tpu.dot_dimension_numbers<[1], [0], [0], [1], [0, 0, 1, 1], [], []>} : vector<8x16xbf16>, vector<16x286xbf16>, vector<8x286xf32> -> vector<8x286xf32>
    %c0_18 = arith.constant 0 : index
    %c1 = arith.constant 1 : index
    %15 = vector.load %arg10[%c0_18, %c1] : memref<32x324xbf16, #tpu.memory_space<vmem>>, vector<16x286xbf16>
    %c8 = arith.constant 8 : index
    %c0_19 = arith.constant 0 : index
    %16 = vector.load %arg3[%c8, %c0_19] : memref<72x16xbf16, #tpu.memory_space<vmem>>, vector<8x16xbf16>
    %cst_20 = arith.constant dense<0.000000e+00> : vector<8x286xf32>
    %17 = tpu.matmul %16, %15, %cst_20 {dimension_numbers = #tpu.dot_dimension_numbers<[1], [0], [0], [1], [0, 0, 1, 1], [], []>} : vector<8x16xbf16>, vector<16x286xbf16>, vector<8x286xf32> -> vector<8x286xf32>
    %18 = arith.addf %14, %17 : vector<8x286xf32>
    %c0_21 = arith.constant 0 : index
    %c2 = arith.constant 2 : index
    %19 = vector.load %arg10[%c0_21, %c2] : memref<32x324xbf16, #tpu.memory_space<vmem>>, vector<16x286xbf16>
    %c16_22 = arith.constant 16 : index
    %c0_23 = arith.constant 0 : index
    %20 = vector.load %arg3[%c16_22, %c0_23] : memref<72x16xbf16, #tpu.memory_space<vmem>>, vector<8x16xbf16>
    %cst_24 = arith.constant dense<0.000000e+00> : vector<8x286xf32>
    %21 = tpu.matmul %20, %19, %cst_24 {dimension_numbers = #tpu.dot_dimension_numbers<[1], [0], [0], [1], [0, 0, 1, 1], [], []>} : vector<8x16xbf16>, vector<16x286xbf16>, vector<8x286xf32> -> vector<8x286xf32>
    %22 = arith.addf %18, %21 : vector<8x286xf32>
    %c0_25 = arith.constant 0 : index
    %c18 = arith.constant 18 : index
    %23 = vector.load %arg10[%c0_25, %c18] : memref<32x324xbf16, #tpu.memory_space<vmem>>, vector<16x286xbf16>
    %c24 = arith.constant 24 : index
    %c0_26 = arith.constant 0 : index
    %24 = vector.load %arg3[%c24, %c0_26] : memref<72x16xbf16, #tpu.memory_space<vmem>>, vector<8x16xbf16>
    %cst_27 = arith.constant dense<0.000000e+00> : vector<8x286xf32>
    %25 = tpu.matmul %24, %23, %cst_27 {dimension_numbers = #tpu.dot_dimension_numbers<[1], [0], [0], [1], [0, 0, 1, 1], [], []>} : vector<8x16xbf16>, vector<16x286xbf16>, vector<8x286xf32> -> vector<8x286xf32>
    %26 = arith.addf %22, %25 : vector<8x286xf32>
    %c0_28 = arith.constant 0 : index
    %c19_29 = arith.constant 19 : index
    %27 = vector.load %arg10[%c0_28, %c19_29] : memref<32x324xbf16, #tpu.memory_space<vmem>>, vector<16x286xbf16>
    %c32 = arith.constant 32 : index
    %c0_30 = arith.constant 0 : index
    %28 = vector.load %arg3[%c32, %c0_30] : memref<72x16xbf16, #tpu.memory_space<vmem>>, vector<8x16xbf16>
    %cst_31 = arith.constant dense<0.000000e+00> : vector<8x286xf32>
    %29 = tpu.matmul %28, %27, %cst_31 {dimension_numbers = #tpu.dot_dimension_numbers<[1], [0], [0], [1], [0, 0, 1, 1], [], []>} : vector<8x16xbf16>, vector<16x286xbf16>, vector<8x286xf32> -> vector<8x286xf32>
    %30 = arith.addf %26, %29 : vector<8x286xf32>
    %c0_32 = arith.constant 0 : index
    %c20 = arith.constant 20 : index
    %31 = vector.load %arg10[%c0_32, %c20] : memref<32x324xbf16, #tpu.memory_space<vmem>>, vector<16x286xbf16>
    %c40 = arith.constant 40 : index
    %c0_33 = arith.constant 0 : index
    %32 = vector.load %arg3[%c40, %c0_33] : memref<72x16xbf16, #tpu.memory_space<vmem>>, vector<8x16xbf16>
    %cst_34 = arith.constant dense<0.000000e+00> : vector<8x286xf32>
    %33 = tpu.matmul %32, %31, %cst_34 {dimension_numbers = #tpu.dot_dimension_numbers<[1], [0], [0], [1], [0, 0, 1, 1], [], []>} : vector<8x16xbf16>, vector<16x286xbf16>, vector<8x286xf32> -> vector<8x286xf32>
    %34 = arith.addf %30, %33 : vector<8x286xf32>
    %c0_35 = arith.constant 0 : index
    %c36 = arith.constant 36 : index
    %35 = vector.load %arg10[%c0_35, %c36] : memref<32x324xbf16, #tpu.memory_space<vmem>>, vector<16x286xbf16>
    %c48 = arith.constant 48 : index
    %c0_36 = arith.constant 0 : index
    %36 = vector.load %arg3[%c48, %c0_36] : memref<72x16xbf16, #tpu.memory_space<vmem>>, vector<8x16xbf16>
    %cst_37 = arith.constant dense<0.000000e+00> : vector<8x286xf32>
    %37 = tpu.matmul %36, %35, %cst_37 {dimension_numbers = #tpu.dot_dimension_numbers<[1], [0], [0], [1], [0, 0, 1, 1], [], []>} : vector<8x16xbf16>, vector<16x286xbf16>, vector<8x286xf32> -> vector<8x286xf32>
    %38 = arith.addf %34, %37 : vector<8x286xf32>
    %c0_38 = arith.constant 0 : index
    %c37 = arith.constant 37 : index
    %39 = vector.load %arg10[%c0_38, %c37] : memref<32x324xbf16, #tpu.memory_space<vmem>>, vector<16x286xbf16>
    %c56 = arith.constant 56 : index
    %c0_39 = arith.constant 0 : index
    %40 = vector.load %arg3[%c56, %c0_39] : memref<72x16xbf16, #tpu.memory_space<vmem>>, vector<8x16xbf16>
    %cst_40 = arith.constant dense<0.000000e+00> : vector<8x286xf32>
    %41 = tpu.matmul %40, %39, %cst_40 {dimension_numbers = #tpu.dot_dimension_numbers<[1], [0], [0], [1], [0, 0, 1, 1], [], []>} : vector<8x16xbf16>, vector<16x286xbf16>, vector<8x286xf32> -> vector<8x286xf32>
    %42 = arith.addf %38, %41 : vector<8x286xf32>
    %c0_41 = arith.constant 0 : index
    %c38 = arith.constant 38 : index
    %43 = vector.load %arg10[%c0_41, %c38] : memref<32x324xbf16, #tpu.memory_space<vmem>>, vector<16x286xbf16>
    %c64 = arith.constant 64 : index
    %c0_42 = arith.constant 0 : index
    %44 = vector.load %arg3[%c64, %c0_42] : memref<72x16xbf16, #tpu.memory_space<vmem>>, vector<8x16xbf16>
    %cst_43 = arith.constant dense<0.000000e+00> : vector<8x286xf32>
    %45 = tpu.matmul %44, %43, %cst_43 {dimension_numbers = #tpu.dot_dimension_numbers<[1], [0], [0], [1], [0, 0, 1, 1], [], []>} : vector<8x16xbf16>, vector<16x286xbf16>, vector<8x286xf32> -> vector<8x286xf32>
    %46 = arith.addf %42, %45 : vector<8x286xf32>
    %c0_44 = arith.constant 0 : index
    %c0_45 = arith.constant 0 : index
    %47 = vector.load %arg4[%c0_44, %c0_45] : memref<8x1xf32, #tpu.memory_space<vmem>>, vector<8x1xf32>
    %48 = vector.broadcast %47 : vector<8x1xf32> to vector<8x286xf32>
    %49 = arith.addf %46, %48 : vector<8x286xf32>
    %cst_46 = arith.constant 0.000000e+00 : f32
    %50 = vector.broadcast %cst_46 : f32 to vector<8x286xf32>
    %51 = arith.maximumf %49, %50 : vector<8x286xf32>
    %52 = vector.broadcast %0 : vector<1x286xf32> to vector<8x286xf32>
    %53 = arith.mulf %51, %52 : vector<8x286xf32>
    %54 = arith.truncf %53 : vector<8x286xf32> to vector<8x286xbf16>
    %c16_47 = arith.constant 16 : index
    %c19_48 = arith.constant 19 : index
    %55 = vector.load %arg10[%c16_47, %c19_48] : memref<32x324xbf16, #tpu.memory_space<vmem>>, vector<8x286xbf16>
    tpu.vector_store %arg10[%c16_47, %c19_48], %54 {strides = array<i32>} : memref<32x324xbf16, #tpu.memory_space<vmem>>, vector<8x286xbf16>,
    %c0_49 = arith.constant 0 : index
    %c16_50 = arith.constant 16 : index
    %56 = vector.load %arg7[%c0_49, %c16_50] : memref<16x32xbf16, #tpu.memory_space<vmem>>, vector<16x8xbf16>
    %cst_51 = arith.constant dense<0.000000e+00> : vector<16x286xf32>
    %57 = tpu.matmul %56, %54, %cst_51 {dimension_numbers = #tpu.dot_dimension_numbers<[1], [0], [0], [1], [0, 0, 1, 1], [], []>} : vector<16x8xbf16>, vector<8x286xbf16>, vector<16x286xf32> -> vector<16x286xf32>
    %58 = arith.addf %11, %57 : vector<16x286xf32>
    %c0_52 = arith.constant 0 : index
    %c0_53 = arith.constant 0 : index
    %59 = vector.load %arg10[%c0_52, %c0_53] : memref<32x324xbf16, #tpu.memory_space<vmem>>, vector<24x286xbf16>
    %c0_54 = arith.constant 0 : index
    %c0_55 = arith.constant 0 : index
    %60 = vector.load %arg5[%c0_54, %c0_55] : memref<72x24xbf16, #tpu.memory_space<vmem>>, vector<8x24xbf16>
    %cst_56 = arith.constant dense<0.000000e+00> : vector<8x286xf32>
    %61 = tpu.matmul %60, %59, %cst_56 {dimension_numbers = #tpu.dot_dimension_numbers<[1], [0], [0], [1], [0, 0, 1, 1], [], []>} : vector<8x24xbf16>, vector<24x286xbf16>, vector<8x286xf32> -> vector<8x286xf32>
    %c0_57 = arith.constant 0 : index
    %c1_58 = arith.constant 1 : index
    %62 = vector.load %arg10[%c0_57, %c1_58] : memref<32x324xbf16, #tpu.memory_space<vmem>>, vector<24x286xbf16>
    %c8_59 = arith.constant 8 : index
    %c0_60 = arith.constant 0 : index
    %63 = vector.load %arg5[%c8_59, %c0_60] : memref<72x24xbf16, #tpu.memory_space<vmem>>, vector<8x24xbf16>
    %cst_61 = arith.constant dense<0.000000e+00> : vector<8x286xf32>
    %64 = tpu.matmul %63, %62, %cst_61 {dimension_numbers = #tpu.dot_dimension_numbers<[1], [0], [0], [1], [0, 0, 1, 1], [], []>} : vector<8x24xbf16>, vector<24x286xbf16>, vector<8x286xf32> -> vector<8x286xf32>
    %65 = arith.addf %61, %64 : vector<8x286xf32>
    %c0_62 = arith.constant 0 : index
    %c2_63 = arith.constant 2 : index
    %66 = vector.load %arg10[%c0_62, %c2_63] : memref<32x324xbf16, #tpu.memory_space<vmem>>, vector<24x286xbf16>
    %c16_64 = arith.constant 16 : index
    %c0_65 = arith.constant 0 : index
    %67 = vector.load %arg5[%c16_64, %c0_65] : memref<72x24xbf16, #tpu.memory_space<vmem>>, vector<8x24xbf16>
    %cst_66 = arith.constant dense<0.000000e+00> : vector<8x286xf32>
    %68 = tpu.matmul %67, %66, %cst_66 {dimension_numbers = #tpu.dot_dimension_numbers<[1], [0], [0], [1], [0, 0, 1, 1], [], []>} : vector<8x24xbf16>, vector<24x286xbf16>, vector<8x286xf32> -> vector<8x286xf32>
    %69 = arith.addf %65, %68 : vector<8x286xf32>
    %c0_67 = arith.constant 0 : index
    %c18_68 = arith.constant 18 : index
    %70 = vector.load %arg10[%c0_67, %c18_68] : memref<32x324xbf16, #tpu.memory_space<vmem>>, vector<24x286xbf16>
    %c24_69 = arith.constant 24 : index
    %c0_70 = arith.constant 0 : index
    %71 = vector.load %arg5[%c24_69, %c0_70] : memref<72x24xbf16, #tpu.memory_space<vmem>>, vector<8x24xbf16>
    %cst_71 = arith.constant dense<0.000000e+00> : vector<8x286xf32>
    %72 = tpu.matmul %71, %70, %cst_71 {dimension_numbers = #tpu.dot_dimension_numbers<[1], [0], [0], [1], [0, 0, 1, 1], [], []>} : vector<8x24xbf16>, vector<24x286xbf16>, vector<8x286xf32> -> vector<8x286xf32>
    %73 = arith.addf %69, %72 : vector<8x286xf32>
    %c0_72 = arith.constant 0 : index
    %c19_73 = arith.constant 19 : index
    %74 = vector.load %arg10[%c0_72, %c19_73] : memref<32x324xbf16, #tpu.memory_space<vmem>>, vector<24x286xbf16>
    %c32_74 = arith.constant 32 : index
    %c0_75 = arith.constant 0 : index
    %75 = vector.load %arg5[%c32_74, %c0_75] : memref<72x24xbf16, #tpu.memory_space<vmem>>, vector<8x24xbf16>
    %cst_76 = arith.constant dense<0.000000e+00> : vector<8x286xf32>
    %76 = tpu.matmul %75, %74, %cst_76 {dimension_numbers = #tpu.dot_dimension_numbers<[1], [0], [0], [1], [0, 0, 1, 1], [], []>} : vector<8x24xbf16>, vector<24x286xbf16>, vector<8x286xf32> -> vector<8x286xf32>
    %77 = arith.addf %73, %76 : vector<8x286xf32>
    %c0_77 = arith.constant 0 : index
    %c20_78 = arith.constant 20 : index
    %78 = vector.load %arg10[%c0_77, %c20_78] : memref<32x324xbf16, #tpu.memory_space<vmem>>, vector<24x286xbf16>
    %c40_79 = arith.constant 40 : index
    %c0_80 = arith.constant 0 : index
    %79 = vector.load %arg5[%c40_79, %c0_80] : memref<72x24xbf16, #tpu.memory_space<vmem>>, vector<8x24xbf16>
    %cst_81 = arith.constant dense<0.000000e+00> : vector<8x286xf32>
    %80 = tpu.matmul %79, %78, %cst_81 {dimension_numbers = #tpu.dot_dimension_numbers<[1], [0], [0], [1], [0, 0, 1, 1], [], []>} : vector<8x24xbf16>, vector<24x286xbf16>, vector<8x286xf32> -> vector<8x286xf32>
    %81 = arith.addf %77, %80 : vector<8x286xf32>
    %c0_82 = arith.constant 0 : index
    %c36_83 = arith.constant 36 : index
    %82 = vector.load %arg10[%c0_82, %c36_83] : memref<32x324xbf16, #tpu.memory_space<vmem>>, vector<24x286xbf16>
    %c48_84 = arith.constant 48 : index
    %c0_85 = arith.constant 0 : index
    %83 = vector.load %arg5[%c48_84, %c0_85] : memref<72x24xbf16, #tpu.memory_space<vmem>>, vector<8x24xbf16>
    %cst_86 = arith.constant dense<0.000000e+00> : vector<8x286xf32>
    %84 = tpu.matmul %83, %82, %cst_86 {dimension_numbers = #tpu.dot_dimension_numbers<[1], [0], [0], [1], [0, 0, 1, 1], [], []>} : vector<8x24xbf16>, vector<24x286xbf16>, vector<8x286xf32> -> vector<8x286xf32>
    %85 = arith.addf %81, %84 : vector<8x286xf32>
    %c0_87 = arith.constant 0 : index
    %c37_88 = arith.constant 37 : index
    %86 = vector.load %arg10[%c0_87, %c37_88] : memref<32x324xbf16, #tpu.memory_space<vmem>>, vector<24x286xbf16>
    %c56_89 = arith.constant 56 : index
    %c0_90 = arith.constant 0 : index
    %87 = vector.load %arg5[%c56_89, %c0_90] : memref<72x24xbf16, #tpu.memory_space<vmem>>, vector<8x24xbf16>
    %cst_91 = arith.constant dense<0.000000e+00> : vector<8x286xf32>
    %88 = tpu.matmul %87, %86, %cst_91 {dimension_numbers = #tpu.dot_dimension_numbers<[1], [0], [0], [1], [0, 0, 1, 1], [], []>} : vector<8x24xbf16>, vector<24x286xbf16>, vector<8x286xf32> -> vector<8x286xf32>
    %89 = arith.addf %85, %88 : vector<8x286xf32>
    %c0_92 = arith.constant 0 : index
    %c38_93 = arith.constant 38 : index
    %90 = vector.load %arg10[%c0_92, %c38_93] : memref<32x324xbf16, #tpu.memory_space<vmem>>, vector<24x286xbf16>
    %c64_94 = arith.constant 64 : index
    %c0_95 = arith.constant 0 : index
    %91 = vector.load %arg5[%c64_94, %c0_95] : memref<72x24xbf16, #tpu.memory_space<vmem>>, vector<8x24xbf16>
    %cst_96 = arith.constant dense<0.000000e+00> : vector<8x286xf32>
    %92 = tpu.matmul %91, %90, %cst_96 {dimension_numbers = #tpu.dot_dimension_numbers<[1], [0], [0], [1], [0, 0, 1, 1], [], []>} : vector<8x24xbf16>, vector<24x286xbf16>, vector<8x286xf32> -> vector<8x286xf32>
    %93 = arith.addf %89, %92 : vector<8x286xf32>
    %c0_97 = arith.constant 0 : index
    %c0_98 = arith.constant 0 : index
    %94 = vector.load %arg6[%c0_97, %c0_98] : memref<8x1xf32, #tpu.memory_space<vmem>>, vector<8x1xf32>
    %95 = vector.broadcast %94 : vector<8x1xf32> to vector<8x286xf32>
    %96 = arith.addf %93, %95 : vector<8x286xf32>
    %cst_99 = arith.constant 0.000000e+00 : f32
    %97 = vector.broadcast %cst_99 : f32 to vector<8x286xf32>
    %98 = arith.maximumf %96, %97 : vector<8x286xf32>
    %99 = vector.broadcast %0 : vector<1x286xf32> to vector<8x286xf32>
    %100 = arith.mulf %98, %99 : vector<8x286xf32>
    %101 = arith.truncf %100 : vector<8x286xf32> to vector<8x286xbf16>
    %c24_100 = arith.constant 24 : index
    %c19_101 = arith.constant 19 : index
    %102 = vector.load %arg10[%c24_100, %c19_101] : memref<32x324xbf16, #tpu.memory_space<vmem>>, vector<8x286xbf16>
    tpu.vector_store %arg10[%c24_100, %c19_101], %101 {strides = array<i32>} : memref<32x324xbf16, #tpu.memory_space<vmem>>, vector<8x286xbf16>,
    %c0_102 = arith.constant 0 : index
    %c24_103 = arith.constant 24 : index
    %103 = vector.load %arg7[%c0_102, %c24_103] : memref<16x32xbf16, #tpu.memory_space<vmem>>, vector<16x8xbf16>
    %cst_104 = arith.constant dense<0.000000e+00> : vector<16x286xf32>
    %104 = tpu.matmul %103, %101, %cst_104 {dimension_numbers = #tpu.dot_dimension_numbers<[1], [0], [0], [1], [0, 0, 1, 1], [], []>} : vector<16x8xbf16>, vector<8x286xbf16>, vector<16x286xf32> -> vector<16x286xf32>
    %105 = arith.addf %58, %104 : vector<16x286xf32>
    %c0_105 = arith.constant 0 : index
    %c0_106 = arith.constant 0 : index
    %106 = vector.load %arg8[%c0_105, %c0_106] : memref<16x1xf32, #tpu.memory_space<vmem>>, vector<16x1xf32>
    %107 = vector.broadcast %106 : vector<16x1xf32> to vector<16x286xf32>
    %108 = arith.addf %105, %107 : vector<16x286xf32>
    %109 = vector.broadcast %0 : vector<1x286xf32> to vector<16x286xf32>
    %110 = arith.mulf %108, %109 : vector<16x286xf32>
    %111 = vector.extract_strided_slice %2 {offsets = [0, 19], sizes = [16, 286], strides = [1, 1]} : vector<16x324xf32> to vector<16x286xf32>
    %112 = arith.addf %110, %111 : vector<16x286xf32>
    %cst_107 = arith.constant 0.000000e+00 : f32
    %113 = vector.broadcast %cst_107 : f32 to vector<1x16x19xf32>
    %c0_108 = arith.constant 0 : index
    %c0_109 = arith.constant 0 : index
    %c0_110 = arith.constant 0 : index
    %114 = vector.load %arg9[%c0_108, %c0_109, %c0_110] : memref<1x16x324xf32, #tpu.memory_space<vmem>>, vector<1x16x19xf32>
    tpu.vector_store %arg9[%c0_108, %c0_109, %c0_110], %113 {strides = array<i32>} : memref<1x16x324xf32, #tpu.memory_space<vmem>>, vector<1x16x19xf32>,
    %cst_111 = arith.constant 0.000000e+00 : f32
    %115 = vector.broadcast %cst_111 : f32 to vector<1x16x19xf32>
    %c0_112 = arith.constant 0 : index
    %c0_113 = arith.constant 0 : index
    %c305_114 = arith.constant 305 : index
    %116 = vector.load %arg9[%c0_112, %c0_113, %c305_114] : memref<1x16x324xf32, #tpu.memory_space<vmem>>, vector<1x16x19xf32>
    tpu.vector_store %arg9[%c0_112, %c0_113, %c305_114], %115 {strides = array<i32>} : memref<1x16x324xf32, #tpu.memory_space<vmem>>, vector<1x16x19xf32>,
    %117 = vector.shape_cast %112 : vector<16x286xf32> to vector<1x16x286xf32>
    %c0_115 = arith.constant 0 : index
    %c0_116 = arith.constant 0 : index
    %c19_117 = arith.constant 19 : index
    %118 = vector.load %arg9[%c0_115, %c0_116, %c19_117] : memref<1x16x324xf32, #tpu.memory_space<vmem>>, vector<1x16x286xf32>
    tpu.vector_store %arg9[%c0_115, %c0_116, %c19_117], %117 {strides = array<i32>} : memref<1x16x324xf32, #tpu.memory_space<vmem>>, vector<1x16x286xf32>,
    return
  }
  func.func @transform_0(%arg0: i32) -> (i32, i32, i32) {
    %c0_i32 = arith.constant 0 : i32
    %c0_i32_0 = arith.constant 0 : i32
    %c0_i32_1 = arith.constant 0 : i32
    return %arg0, %c0_i32, %c0_i32_0 : i32, i32, i32
  }
  func.func @transform_1(%arg0: i32) -> (i32, i32) {
    %c0_i32 = arith.constant 0 : i32
    %c0_i32_0 = arith.constant 0 : i32
    %c0_i32_1 = arith.constant 0 : i32
    return %c0_i32, %c0_i32_0 : i32, i32
  }
  func.func @transform_2(%arg0: i32) -> (i32, i32) {
    %c0_i32 = arith.constant 0 : i32
    %c0_i32_0 = arith.constant 0 : i32
    %c0_i32_1 = arith.constant 0 : i32
    return %c0_i32, %c0_i32_0 : i32, i32
  }
  func.func @transform_3(%arg0: i32) -> (i32, i32) {
    %c0_i32 = arith.constant 0 : i32
    %c0_i32_0 = arith.constant 0 : i32
    %c0_i32_1 = arith.constant 0 : i32
    return %c0_i32, %c0_i32_0 : i32, i32
  }
  func.func @transform_4(%arg0: i32) -> (i32, i32) {
    %c0_i32 = arith.constant 0 : i32
    %c0_i32_0 = arith.constant 0 : i32
    %c0_i32_1 = arith.constant 0 : i32
    return %c0_i32, %c0_i32_0 : i32, i32
  }
  func.func @transform_5(%arg0: i32) -> (i32, i32) {
    %c0_i32 = arith.constant 0 : i32
    %c0_i32_0 = arith.constant 0 : i32
    %c0_i32_1 = arith.constant 0 : i32
    return %c0_i32, %c0_i32_0 : i32, i32
  }
  func.func @transform_6(%arg0: i32) -> (i32, i32) {
    %c0_i32 = arith.constant 0 : i32
    %c0_i32_0 = arith.constant 0 : i32
    %c0_i32_1 = arith.constant 0 : i32
    return %c0_i32, %c0_i32_0 : i32, i32
  }
  func.func @transform_7(%arg0: i32) -> (i32, i32) {
    %c0_i32 = arith.constant 0 : i32
    %c0_i32_0 = arith.constant 0 : i32
    %c0_i32_1 = arith.constant 0 : i32
    return %c0_i32, %c0_i32_0 : i32, i32
  }
  func.func @transform_8(%arg0: i32) -> (i32, i32, i32) {
    %c0_i32 = arith.constant 0 : i32
    %c0_i32_0 = arith.constant 0 : i32
    %c0_i32_1 = arith.constant 0 : i32
    return %arg0, %c0_i32, %c0_i32_0 : i32, i32, i32
  }
}

module attributes {stable_mosaic.version = 11 : i64} {
  func.func @_gff_kernel(%arg0: i32, %arg1: memref<1x16x324xf32, #tpu.memory_space<vmem>>, %arg2: memref<1x16x324xf32, #tpu.memory_space<vmem>>, %arg3: memref<1x324xf32, #tpu.memory_space<vmem>>, %arg4: memref<16x32xbf16, #tpu.memory_space<vmem>>, %arg5: memref<16x1xf32, #tpu.memory_space<vmem>>, %arg6: memref<144x16xbf16, #tpu.memory_space<vmem>>, %arg7: memref<16x1xf32, #tpu.memory_space<vmem>>, %arg8: memref<1x16x324xf32, #tpu.memory_space<vmem>>, %arg9: memref<16x324xbf16, #tpu.memory_space<vmem>>) attributes {dimension_semantics = [#tpu.dimension_semantics<parallel>], iteration_bounds = array<i64: 2>, scalar_prefetch = 0 : i64, scratch_operands = 1 : i64, tpu.core_type = #tpu.core_type<tc>, window_params = [{transform_indices = @transform_0, window_bounds = array<i64: 1, 16, 324>}, {transform_indices = @transform_1, window_bounds = array<i64: 1, 16, 324>}, {pipeline_mode = #tpu.pipeline_mode<synchronous>, transform_indices = @transform_2, window_bounds = array<i64: 1, 324>}, {pipeline_mode = #tpu.pipeline_mode<synchronous>, transform_indices = @transform_3, window_bounds = array<i64: 16, 32>}, {pipeline_mode = #tpu.pipeline_mode<synchronous>, transform_indices = @transform_4, window_bounds = array<i64: 16, 1>}, {pipeline_mode = #tpu.pipeline_mode<synchronous>, transform_indices = @transform_5, window_bounds = array<i64: 144, 16>}, {pipeline_mode = #tpu.pipeline_mode<synchronous>, transform_indices = @transform_6, window_bounds = array<i64: 16, 1>}, {transform_indices = @transform_7, window_bounds = array<i64: 1, 16, 324>}]} {
    %c0 = arith.constant 0 : index
    %c0_0 = arith.constant 0 : index
    %0 = vector.load %arg3[%c0, %c0_0] : memref<1x324xf32, #tpu.memory_space<vmem>>, vector<1x324xf32>
    %c0_1 = arith.constant 0 : index
    %c19 = arith.constant 19 : index
    %1 = vector.load %arg3[%c0_1, %c19] : memref<1x324xf32, #tpu.memory_space<vmem>>, vector<1x286xf32>
    %c0_2 = arith.constant 0 : index
    %c0_3 = arith.constant 0 : index
    %c0_4 = arith.constant 0 : index
    %2 = vector.load %arg1[%c0_2, %c0_3, %c0_4] : memref<1x16x324xf32, #tpu.memory_space<vmem>>, vector<1x16x324xf32>
    %3 = vector.shape_cast %2 : vector<1x16x324xf32> to vector<16x324xf32>
    %4 = arith.truncf %3 : vector<16x324xf32> to vector<16x324xbf16>
    %c0_5 = arith.constant 0 : index
    %c0_6 = arith.constant 0 : index
    %5 = vector.load %arg4[%c0_5, %c0_6] : memref<16x32xbf16, #tpu.memory_space<vmem>>, vector<16x16xbf16>
    %cst = arith.constant dense<0.000000e+00> : vector<16x324xf32>
    %6 = tpu.matmul %5, %4, %cst {dimension_numbers = #tpu.dot_dimension_numbers<[1], [0], [0], [1], [0, 0, 1, 1], [], []>} : vector<16x16xbf16>, vector<16x324xbf16>, vector<16x324xf32> -> vector<16x324xf32>
    %c0_7 = arith.constant 0 : index
    %c0_8 = arith.constant 0 : index
    %c0_9 = arith.constant 0 : index
    %7 = vector.load %arg2[%c0_7, %c0_8, %c0_9] : memref<1x16x324xf32, #tpu.memory_space<vmem>>, vector<1x16x324xf32>
    %8 = vector.shape_cast %7 : vector<1x16x324xf32> to vector<16x324xf32>
    %9 = arith.truncf %8 : vector<16x324xf32> to vector<16x324xbf16>
    %c0_10 = arith.constant 0 : index
    %c16 = arith.constant 16 : index
    %10 = vector.load %arg4[%c0_10, %c16] : memref<16x32xbf16, #tpu.memory_space<vmem>>, vector<16x16xbf16>
    %cst_11 = arith.constant dense<0.000000e+00> : vector<16x324xf32>
    %11 = tpu.matmul %10, %9, %cst_11 {dimension_numbers = #tpu.dot_dimension_numbers<[1], [0], [0], [1], [0, 0, 1, 1], [], []>} : vector<16x16xbf16>, vector<16x324xbf16>, vector<16x324xf32> -> vector<16x324xf32>
    %12 = arith.addf %6, %11 : vector<16x324xf32>
    %c0_12 = arith.constant 0 : index
    %c0_13 = arith.constant 0 : index
    %13 = vector.load %arg5[%c0_12, %c0_13] : memref<16x1xf32, #tpu.memory_space<vmem>>, vector<16x1xf32>
    %14 = vector.broadcast %13 : vector<16x1xf32> to vector<16x324xf32>
    %15 = arith.addf %12, %14 : vector<16x324xf32>
    %16 = vector.broadcast %0 : vector<1x324xf32> to vector<16x324xf32>
    %17 = arith.mulf %15, %16 : vector<16x324xf32>
    %18 = arith.truncf %17 : vector<16x324xf32> to vector<16x324xbf16>
    %c0_14 = arith.constant 0 : index
    %c0_15 = arith.constant 0 : index
    %19 = vector.load %arg9[%c0_14, %c0_15] : memref<16x324xbf16, #tpu.memory_space<vmem>>, vector<16x324xbf16>
    tpu.vector_store %arg9[%c0_14, %c0_15], %18 {strides = array<i32>} : memref<16x324xbf16, #tpu.memory_space<vmem>>, vector<16x324xbf16>,
    %c0_16 = arith.constant 0 : index
    %c0_17 = arith.constant 0 : index
    %20 = vector.load %arg9[%c0_16, %c0_17] : memref<16x324xbf16, #tpu.memory_space<vmem>>, vector<16x286xbf16>
    %c0_18 = arith.constant 0 : index
    %c0_19 = arith.constant 0 : index
    %21 = vector.load %arg6[%c0_18, %c0_19] : memref<144x16xbf16, #tpu.memory_space<vmem>>, vector<16x16xbf16>
    %cst_20 = arith.constant dense<0.000000e+00> : vector<16x286xf32>
    %22 = tpu.matmul %21, %20, %cst_20 {dimension_numbers = #tpu.dot_dimension_numbers<[1], [0], [0], [1], [0, 0, 1, 1], [], []>} : vector<16x16xbf16>, vector<16x286xbf16>, vector<16x286xf32> -> vector<16x286xf32>
    %c0_21 = arith.constant 0 : index
    %c1 = arith.constant 1 : index
    %23 = vector.load %arg9[%c0_21, %c1] : memref<16x324xbf16, #tpu.memory_space<vmem>>, vector<16x286xbf16>
    %c16_22 = arith.constant 16 : index
    %c0_23 = arith.constant 0 : index
    %24 = vector.load %arg6[%c16_22, %c0_23] : memref<144x16xbf16, #tpu.memory_space<vmem>>, vector<16x16xbf16>
    %cst_24 = arith.constant dense<0.000000e+00> : vector<16x286xf32>
    %25 = tpu.matmul %24, %23, %cst_24 {dimension_numbers = #tpu.dot_dimension_numbers<[1], [0], [0], [1], [0, 0, 1, 1], [], []>} : vector<16x16xbf16>, vector<16x286xbf16>, vector<16x286xf32> -> vector<16x286xf32>
    %26 = arith.addf %22, %25 : vector<16x286xf32>
    %c0_25 = arith.constant 0 : index
    %c2 = arith.constant 2 : index
    %27 = vector.load %arg9[%c0_25, %c2] : memref<16x324xbf16, #tpu.memory_space<vmem>>, vector<16x286xbf16>
    %c32 = arith.constant 32 : index
    %c0_26 = arith.constant 0 : index
    %28 = vector.load %arg6[%c32, %c0_26] : memref<144x16xbf16, #tpu.memory_space<vmem>>, vector<16x16xbf16>
    %cst_27 = arith.constant dense<0.000000e+00> : vector<16x286xf32>
    %29 = tpu.matmul %28, %27, %cst_27 {dimension_numbers = #tpu.dot_dimension_numbers<[1], [0], [0], [1], [0, 0, 1, 1], [], []>} : vector<16x16xbf16>, vector<16x286xbf16>, vector<16x286xf32> -> vector<16x286xf32>
    %30 = arith.addf %26, %29 : vector<16x286xf32>
    %c0_28 = arith.constant 0 : index
    %c18 = arith.constant 18 : index
    %31 = vector.load %arg9[%c0_28, %c18] : memref<16x324xbf16, #tpu.memory_space<vmem>>, vector<16x286xbf16>
    %c48 = arith.constant 48 : index
    %c0_29 = arith.constant 0 : index
    %32 = vector.load %arg6[%c48, %c0_29] : memref<144x16xbf16, #tpu.memory_space<vmem>>, vector<16x16xbf16>
    %cst_30 = arith.constant dense<0.000000e+00> : vector<16x286xf32>
    %33 = tpu.matmul %32, %31, %cst_30 {dimension_numbers = #tpu.dot_dimension_numbers<[1], [0], [0], [1], [0, 0, 1, 1], [], []>} : vector<16x16xbf16>, vector<16x286xbf16>, vector<16x286xf32> -> vector<16x286xf32>
    %34 = arith.addf %30, %33 : vector<16x286xf32>
    %c0_31 = arith.constant 0 : index
    %c19_32 = arith.constant 19 : index
    %35 = vector.load %arg9[%c0_31, %c19_32] : memref<16x324xbf16, #tpu.memory_space<vmem>>, vector<16x286xbf16>
    %c64 = arith.constant 64 : index
    %c0_33 = arith.constant 0 : index
    %36 = vector.load %arg6[%c64, %c0_33] : memref<144x16xbf16, #tpu.memory_space<vmem>>, vector<16x16xbf16>
    %cst_34 = arith.constant dense<0.000000e+00> : vector<16x286xf32>
    %37 = tpu.matmul %36, %35, %cst_34 {dimension_numbers = #tpu.dot_dimension_numbers<[1], [0], [0], [1], [0, 0, 1, 1], [], []>} : vector<16x16xbf16>, vector<16x286xbf16>, vector<16x286xf32> -> vector<16x286xf32>
    %38 = arith.addf %34, %37 : vector<16x286xf32>
    %c0_35 = arith.constant 0 : index
    %c20 = arith.constant 20 : index
    %39 = vector.load %arg9[%c0_35, %c20] : memref<16x324xbf16, #tpu.memory_space<vmem>>, vector<16x286xbf16>
    %c80 = arith.constant 80 : index
    %c0_36 = arith.constant 0 : index
    %40 = vector.load %arg6[%c80, %c0_36] : memref<144x16xbf16, #tpu.memory_space<vmem>>, vector<16x16xbf16>
    %cst_37 = arith.constant dense<0.000000e+00> : vector<16x286xf32>
    %41 = tpu.matmul %40, %39, %cst_37 {dimension_numbers = #tpu.dot_dimension_numbers<[1], [0], [0], [1], [0, 0, 1, 1], [], []>} : vector<16x16xbf16>, vector<16x286xbf16>, vector<16x286xf32> -> vector<16x286xf32>
    %42 = arith.addf %38, %41 : vector<16x286xf32>
    %c0_38 = arith.constant 0 : index
    %c36 = arith.constant 36 : index
    %43 = vector.load %arg9[%c0_38, %c36] : memref<16x324xbf16, #tpu.memory_space<vmem>>, vector<16x286xbf16>
    %c96 = arith.constant 96 : index
    %c0_39 = arith.constant 0 : index
    %44 = vector.load %arg6[%c96, %c0_39] : memref<144x16xbf16, #tpu.memory_space<vmem>>, vector<16x16xbf16>
    %cst_40 = arith.constant dense<0.000000e+00> : vector<16x286xf32>
    %45 = tpu.matmul %44, %43, %cst_40 {dimension_numbers = #tpu.dot_dimension_numbers<[1], [0], [0], [1], [0, 0, 1, 1], [], []>} : vector<16x16xbf16>, vector<16x286xbf16>, vector<16x286xf32> -> vector<16x286xf32>
    %46 = arith.addf %42, %45 : vector<16x286xf32>
    %c0_41 = arith.constant 0 : index
    %c37 = arith.constant 37 : index
    %47 = vector.load %arg9[%c0_41, %c37] : memref<16x324xbf16, #tpu.memory_space<vmem>>, vector<16x286xbf16>
    %c112 = arith.constant 112 : index
    %c0_42 = arith.constant 0 : index
    %48 = vector.load %arg6[%c112, %c0_42] : memref<144x16xbf16, #tpu.memory_space<vmem>>, vector<16x16xbf16>
    %cst_43 = arith.constant dense<0.000000e+00> : vector<16x286xf32>
    %49 = tpu.matmul %48, %47, %cst_43 {dimension_numbers = #tpu.dot_dimension_numbers<[1], [0], [0], [1], [0, 0, 1, 1], [], []>} : vector<16x16xbf16>, vector<16x286xbf16>, vector<16x286xf32> -> vector<16x286xf32>
    %50 = arith.addf %46, %49 : vector<16x286xf32>
    %c0_44 = arith.constant 0 : index
    %c38 = arith.constant 38 : index
    %51 = vector.load %arg9[%c0_44, %c38] : memref<16x324xbf16, #tpu.memory_space<vmem>>, vector<16x286xbf16>
    %c128 = arith.constant 128 : index
    %c0_45 = arith.constant 0 : index
    %52 = vector.load %arg6[%c128, %c0_45] : memref<144x16xbf16, #tpu.memory_space<vmem>>, vector<16x16xbf16>
    %cst_46 = arith.constant dense<0.000000e+00> : vector<16x286xf32>
    %53 = tpu.matmul %52, %51, %cst_46 {dimension_numbers = #tpu.dot_dimension_numbers<[1], [0], [0], [1], [0, 0, 1, 1], [], []>} : vector<16x16xbf16>, vector<16x286xbf16>, vector<16x286xf32> -> vector<16x286xf32>
    %54 = arith.addf %50, %53 : vector<16x286xf32>
    %c0_47 = arith.constant 0 : index
    %c0_48 = arith.constant 0 : index
    %55 = vector.load %arg7[%c0_47, %c0_48] : memref<16x1xf32, #tpu.memory_space<vmem>>, vector<16x1xf32>
    %56 = vector.broadcast %55 : vector<16x1xf32> to vector<16x286xf32>
    %57 = arith.addf %54, %56 : vector<16x286xf32>
    %58 = vector.broadcast %1 : vector<1x286xf32> to vector<16x286xf32>
    %59 = arith.mulf %57, %58 : vector<16x286xf32>
    %cst_49 = arith.constant 0.000000e+00 : f32
    %60 = vector.broadcast %cst_49 : f32 to vector<1x16x19xf32>
    %c0_50 = arith.constant 0 : index
    %c0_51 = arith.constant 0 : index
    %c0_52 = arith.constant 0 : index
    %61 = vector.load %arg8[%c0_50, %c0_51, %c0_52] : memref<1x16x324xf32, #tpu.memory_space<vmem>>, vector<1x16x19xf32>
    tpu.vector_store %arg8[%c0_50, %c0_51, %c0_52], %60 {strides = array<i32>} : memref<1x16x324xf32, #tpu.memory_space<vmem>>, vector<1x16x19xf32>,
    %cst_53 = arith.constant 0.000000e+00 : f32
    %62 = vector.broadcast %cst_53 : f32 to vector<1x16x19xf32>
    %c0_54 = arith.constant 0 : index
    %c0_55 = arith.constant 0 : index
    %c305 = arith.constant 305 : index
    %63 = vector.load %arg8[%c0_54, %c0_55, %c305] : memref<1x16x324xf32, #tpu.memory_space<vmem>>, vector<1x16x19xf32>
    tpu.vector_store %arg8[%c0_54, %c0_55, %c305], %62 {strides = array<i32>} : memref<1x16x324xf32, #tpu.memory_space<vmem>>, vector<1x16x19xf32>,
    %64 = vector.shape_cast %59 : vector<16x286xf32> to vector<1x16x286xf32>
    %c0_56 = arith.constant 0 : index
    %c0_57 = arith.constant 0 : index
    %c19_58 = arith.constant 19 : index
    %65 = vector.load %arg8[%c0_56, %c0_57, %c19_58] : memref<1x16x324xf32, #tpu.memory_space<vmem>>, vector<1x16x286xf32>
    tpu.vector_store %arg8[%c0_56, %c0_57, %c19_58], %64 {strides = array<i32>} : memref<1x16x324xf32, #tpu.memory_space<vmem>>, vector<1x16x286xf32>,
    return
  }
  func.func @transform_0(%arg0: i32) -> (i32, i32, i32) {
    %c0_i32 = arith.constant 0 : i32
    %c0_i32_0 = arith.constant 0 : i32
    %c0_i32_1 = arith.constant 0 : i32
    return %arg0, %c0_i32, %c0_i32_0 : i32, i32, i32
  }
  func.func @transform_1(%arg0: i32) -> (i32, i32, i32) {
    %c0_i32 = arith.constant 0 : i32
    %c0_i32_0 = arith.constant 0 : i32
    %c0_i32_1 = arith.constant 0 : i32
    return %arg0, %c0_i32, %c0_i32_0 : i32, i32, i32
  }
  func.func @transform_2(%arg0: i32) -> (i32, i32) {
    %c0_i32 = arith.constant 0 : i32
    %c0_i32_0 = arith.constant 0 : i32
    %c0_i32_1 = arith.constant 0 : i32
    return %c0_i32, %c0_i32_0 : i32, i32
  }
  func.func @transform_3(%arg0: i32) -> (i32, i32) {
    %c0_i32 = arith.constant 0 : i32
    %c0_i32_0 = arith.constant 0 : i32
    %c0_i32_1 = arith.constant 0 : i32
    return %c0_i32, %c0_i32_0 : i32, i32
  }
  func.func @transform_4(%arg0: i32) -> (i32, i32) {
    %c0_i32 = arith.constant 0 : i32
    %c0_i32_0 = arith.constant 0 : i32
    %c0_i32_1 = arith.constant 0 : i32
    return %c0_i32, %c0_i32_0 : i32, i32
  }
  func.func @transform_5(%arg0: i32) -> (i32, i32) {
    %c0_i32 = arith.constant 0 : i32
    %c0_i32_0 = arith.constant 0 : i32
    %c0_i32_1 = arith.constant 0 : i32
    return %c0_i32, %c0_i32_0 : i32, i32
  }
  func.func @transform_6(%arg0: i32) -> (i32, i32) {
    %c0_i32 = arith.constant 0 : i32
    %c0_i32_0 = arith.constant 0 : i32
    %c0_i32_1 = arith.constant 0 : i32
    return %c0_i32, %c0_i32_0 : i32, i32
  }
  func.func @transform_7(%arg0: i32) -> (i32, i32, i32) {
    %c0_i32 = arith.constant 0 : i32
    %c0_i32_0 = arith.constant 0 : i32
    %c0_i32_1 = arith.constant 0 : i32
    return %arg0, %c0_i32, %c0_i32_0 : i32, i32, i32
  }
}

module attributes {stable_mosaic.version = 11 : i64} {
  func.func @_down_kernel(%arg0: i32, %arg1: memref<1x64x64xf32, #tpu.memory_space<vmem>>, %arg2: memref<3x64xbf16, #tpu.memory_space<vmem>>, %arg3: memref<3x1xf32, #tpu.memory_space<vmem>>, %arg4: memref<1x3x64xf32, #tpu.memory_space<vmem>>) attributes {dimension_semantics = [#tpu.dimension_semantics<parallel>], iteration_bounds = array<i64: 2>, scalar_prefetch = 0 : i64, scratch_operands = 0 : i64, tpu.core_type = #tpu.core_type<tc>, window_params = [{transform_indices = @transform_0, window_bounds = array<i64: 1, 64, 64>}, {pipeline_mode = #tpu.pipeline_mode<synchronous>, transform_indices = @transform_1, window_bounds = array<i64: 3, 64>}, {pipeline_mode = #tpu.pipeline_mode<synchronous>, transform_indices = @transform_2, window_bounds = array<i64: 3, 1>}, {transform_indices = @transform_3, window_bounds = array<i64: 1, 3, 64>}]} {
    %c0 = arith.constant 0 : index
    %c0_0 = arith.constant 0 : index
    %c0_1 = arith.constant 0 : index
    %0 = vector.load %arg1[%c0, %c0_0, %c0_1] : memref<1x64x64xf32, #tpu.memory_space<vmem>>, vector<1x64x64xf32>
    %1 = vector.shape_cast %0 : vector<1x64x64xf32> to vector<64x64xf32>
    %2 = arith.truncf %1 : vector<64x64xf32> to vector<64x64xbf16>
    %c0_2 = arith.constant 0 : index
    %c0_3 = arith.constant 0 : index
    %3 = vector.load %arg2[%c0_2, %c0_3] : memref<3x64xbf16, #tpu.memory_space<vmem>>, vector<3x64xbf16>
    %cst = arith.constant dense<0.000000e+00> : vector<3x64xf32>
    %4 = tpu.matmul %3, %2, %cst {dimension_numbers = #tpu.dot_dimension_numbers<[1], [0], [0], [1], [0, 0, 1, 1], [], []>} : vector<3x64xbf16>, vector<64x64xbf16>, vector<3x64xf32> -> vector<3x64xf32>
    %c0_4 = arith.constant 0 : index
    %c0_5 = arith.constant 0 : index
    %5 = vector.load %arg3[%c0_4, %c0_5] : memref<3x1xf32, #tpu.memory_space<vmem>>, vector<3x1xf32>
    %6 = vector.broadcast %5 : vector<3x1xf32> to vector<3x64xf32>
    %7 = arith.addf %4, %6 : vector<3x64xf32>
    %8 = vector.shape_cast %7 : vector<3x64xf32> to vector<1x3x64xf32>
    %c0_6 = arith.constant 0 : index
    %c0_7 = arith.constant 0 : index
    %c0_8 = arith.constant 0 : index
    %9 = vector.load %arg4[%c0_6, %c0_7, %c0_8] : memref<1x3x64xf32, #tpu.memory_space<vmem>>, vector<1x3x64xf32>
    tpu.vector_store %arg4[%c0_6, %c0_7, %c0_8], %8 {strides = array<i32>} : memref<1x3x64xf32, #tpu.memory_space<vmem>>, vector<1x3x64xf32>,
    return
  }
  func.func @transform_0(%arg0: i32) -> (i32, i32, i32) {
    %c0_i32 = arith.constant 0 : i32
    %c0_i32_0 = arith.constant 0 : i32
    %c0_i32_1 = arith.constant 0 : i32
    return %arg0, %c0_i32, %c0_i32_0 : i32, i32, i32
  }
  func.func @transform_1(%arg0: i32) -> (i32, i32) {
    %c0_i32 = arith.constant 0 : i32
    %c0_i32_0 = arith.constant 0 : i32
    %c0_i32_1 = arith.constant 0 : i32
    return %c0_i32, %c0_i32_0 : i32, i32
  }
  func.func @transform_2(%arg0: i32) -> (i32, i32) {
    %c0_i32 = arith.constant 0 : i32
    %c0_i32_0 = arith.constant 0 : i32
    %c0_i32_1 = arith.constant 0 : i32
    return %c0_i32, %c0_i32_0 : i32, i32
  }
  func.func @transform_3(%arg0: i32) -> (i32, i32, i32) {
    %c0_i32 = arith.constant 0 : i32
    %c0_i32_0 = arith.constant 0 : i32
    %c0_i32_1 = arith.constant 0 : i32
    return %arg0, %c0_i32, %c0_i32_0 : i32, i32, i32
  }
}

</mosaic_0001>

<bundles_post_ra>
// kernel: dpid_forward.8
= control target key start
LH: loop header
LB: loop body
LE: loop exit
PB: predicated region body
PF: predicated region fallthrough
CT: control target
= control target key end

     0   :  { %s3025_s0 = inlined_call_operand.hbm [shape: f32[2,16,324], index: 0, kind: input, shape index: {}]   ;;  %s3026_s1 = inlined_call_operand.hbm [shape: f32[2,16,324], index: 1, kind: input, shape index: {}]   ;;  %s3027_s2 = inlined_call_operand.hbm [shape: f32[1,324], index: 2, kind: input, shape index: {}]   ;;  %s3028_s3 = inlined_call_operand.hbm [shape: bf16[16,32], index: 3, kind: input, shape index: {}]   ;;  %s3029_s4 = inlined_call_operand.hbm [shape: f32[16,1], index: 4, kind: input, shape index: {}]   ;;  %s3030_s5 = inlined_call_operand.hbm [shape: bf16[144,16], index: 5, kind: input, shape index: {}]   ;;  %s3031_s6 = inlined_call_operand.hbm [shape: f32[16,1], index: 6, kind: input, shape index: {}]   ;;  %s3032_s7 = inlined_call_operand.hbm [shape: f32[2,16,324], index: 7, kind: output, shape index: {}]  }
   0x1   :  { %3037 = sst [smem:[#allocation22_spill]] %s3025_s0 }
   0x2   :  { %3038 = sst [smem:[#allocation23_spill]] %s3027_s2 }
   0x3   :  { %3039 = sst [smem:[#allocation24_spill]] %s3028_s3 }
   0x4   :  { %3040 = sst [smem:[#allocation25_spill]] %s3029_s4 }
   0x5   :  { %12 = vsyncpa [#allocation4], 0 }
   0x6   :  { %14 = vsyncpa [#allocation4 + $0x1], 0 }
   0x7   :  { %15 = vsyncpa [#allocation7], 0 }
   0x8   :  { %17 = vsyncpa [#allocation7 + $0x1], 0 }
   0x9   :  { %18 = vsyncpa [#allocation10], 0 }
   0xa   :  { %19 = vsyncpa [#allocation13], 0 }
   0xb   :  { %20 = vsyncpa [#allocation5], 0 }
   0xc   :  { %22 = vsyncpa [#allocation5 + $0x1], 0  ;;  %s2552_s24 = smov 0   ;;  %s2554_s25 = smov 0  }
   0xd   :  { %s2556_s26 = smov 0   ;;  %s2558_s27 = smov 0  }
   0xe LB: > { %s2483_s28 = smov [#allocation8]   ;;  %s2573_s30 = sadd.s32 4294967295, %s2481_s27   ;;  %s2481_s27 = sphi %s2558_s27, %s3067_s27   ;;  %s2477_s26 = sphi %s2556_s26, %s3066_s26   ;;  %s2473_s25 = sphi %s2554_s25, %s3065_s25   ;;  %s2469_s24 = sphi %s2552_s24, %s3064_s24  }
   0xf   : > { %s229_s29 = sshll.u32 %s2483_s28, 4  ;;  %p1884_p0 = scmp.ge.s32.totalorder %s2481_s27, 1  ;;  %s2578_s29 = int_to_ptr.vmem [resolvable:$true] %s229_s29 }
  0x10   : > { %p3033_p1 = scmp.eq.s32.totalorder %s2573_s30, 0  ;;  %p216_p2 = scmp.lt.s32.totalorder %s2481_s27, 3 }
  0x11   : > { %s2484_s9 = smov [#allocation9]   ;;  %s2485_s12 = smov [#allocation12]  }
  0x12   : > { %p2580_p3 = pnand %p1884_p0, %p216_p2  ;;  %s239_s10 = sshll.u32 %s2484_s9, 4  ;;  %s2587_s10 = int_to_ptr.vmem [resolvable:$true] %s239_s10 }
  0x13   : > { %s265_s13 = sshll.u32 %s2485_s12, 4  ;;  %s3043_s2 = sld [smem:[#allocation23_spill]]  ;;  %s2595_s13 = int_to_ptr.vmem [resolvable:$true] %s265_s13 }
  0x14   : > { %s3041_s8 = scalar_select %p2580_p3, 1, 0 }
  0x15   : > { %p2090_p5 = pneg %p2580_p3 }
  0x17   : > { %p2591_p6 = pnand %p2090_p5, %p3033_p1 }
  0x19   : > { %s2199_s16 = scalar_lea.hbm %s3043_s2, 48  ;;  %p2605_p8 = pneg %p2591_p6 }
  0x1a   : > { %p2200_p7 = scmp.ne.s32.totalorder %s3043_s2, %s2199_s16  ;;  %p2206_p11 = scmp.lt.u32.totalorder %s2199_s16, %s3043_s2 }
  0x1c   : > { %p2202_p9 = pnand %p2605_p8, %p2200_p7 }
  0x1e   : > { %p2203_p10 = pneg %p2202_p9 }
  0x20   : > { %p2208_p12 = pnand %p2206_p11, %p2203_p10 }
  0x22   : > { %2211 = shalt.err (!%p2208_p12)
}
  0x23   : > { %s2212_s22 = scalar_lea.vmem %s2578_s29, 48  ;;  %s2219_s23 = scalar_lea.vmem %s2578_s29, 64 }
  0x24   : > { %p2213_p13 = scmp.ne.s32.totalorder %s2578_s29, %s2212_s22  ;;  %p2220_p5 = scmp.lt.s32.totalorder %s2578_s29, %s2578_s29 }
  0x25   : > { %p2221_p7 = scmp.lt.s32.totalorder %s2219_s23, %s2212_s22 }
  0x26   : > { %p2215_p0 = pnand %p2213_p13, %p2605_p8 }
  0x27   : > { %p2222_p9 = por %p2221_p7, %p2220_p5 }
  0x28   : > { %p2216_p2 = pneg %p2215_p0 }
  0x2a   : > { %p2223_p4 = pnand %p2222_p9, %p2216_p2 }
  0x2c   : > { %2226 = shalt.err (!%p2223_p4)
}
  0x2d   : > { %2093 = dma.hbm_to_vmem [thread:$0]  (!%p2591_p6), %s3043_s2, 48, %s2578_s29, [#allocation7]  }
  0x2e   : > { %s3045_s3 = sld [smem:[#allocation24_spill]] }
  0x34   : > { %s2227_s15 = scalar_lea.hbm %s3045_s3, 128 }
  0x35   : > { %p2228_p10 = scmp.ne.s32.totalorder %s3045_s3, %s2227_s15  ;;  %p2234_p4 = scmp.lt.u32.totalorder %s2227_s15, %s3045_s3 }
  0x37   : > { %p2230_p11 = pnand %p2228_p10, %p2605_p8 }
  0x39   : > { %p2231_p12 = pneg %p2230_p11 }
  0x3b   : > { %p2236_p13 = pnand %p2234_p4, %p2231_p12 }
  0x3d   : > { %2239 = shalt.err (!%p2236_p13)
}
  0x3e   : > { %s2240_s29 = scalar_lea.vmem %s2587_s10, 128  ;;  %p2248_p7 = scmp.lt.s32.totalorder %s2587_s10, %s2587_s10 }
  0x3f   : > { %p2241_p0 = scmp.ne.s32.totalorder %s2587_s10, %s2240_s29  ;;  %p2249_p9 = scmp.lt.s32.totalorder %s2240_s29, %s2240_s29 }
  0x41   : > { %p2243_p2 = pnand %p2241_p0, %p2605_p8  ;;  %p2250_p10 = por %p2249_p9, %p2248_p7 }
  0x43   : > { %p2244_p5 = pneg %p2243_p2 }
  0x45   : > { %p2251_p11 = pnand %p2250_p10, %p2244_p5 }
  0x47   : > { %2254 = shalt.err (!%p2251_p11)
}
  0x48   : > { %s2486_s21 = smov 64   ;;  %s2487_s22 = smov 4  }
  0x49   : > { %2096 = dma.hbm_to_vmem [thread:$0]  (!%p2591_p6), %s3045_s3, 128, %s2587_s10, [#allocation10], %s2486_s21, %s2486_s21, %s2487_s22  }
  0x4a   : > { %s2255_s14 = scalar_lea.hbm %s3030_s5, 1152 }
  0x4b   : > { %p2256_p12 = scmp.ne.s32.totalorder %s3030_s5, %s2255_s14  ;;  %p2262_p0 = scmp.lt.u32.totalorder %s2255_s14, %s3030_s5 }
  0x4d   : > { %p2258_p4 = pnand %p2256_p12, %p2605_p8 }
  0x4f   : > { %p2259_p13 = pneg %p2258_p4 }
  0x51   : > { %p2264_p2 = pnand %p2262_p0, %p2259_p13 }
  0x53   : > { %2267 = shalt.err (!%p2264_p2)
}
  0x54   : > { %s2268_s10 = scalar_lea.vmem %s2595_s13, 1152  ;;  %p2276_p10 = scmp.lt.s32.totalorder %s2595_s13, %s2595_s13 }
  0x55   : > { %p2269_p5 = scmp.ne.s32.totalorder %s2595_s13, %s2268_s10  ;;  %p2277_p11 = scmp.lt.s32.totalorder %s2268_s10, %s2268_s10 }
  0x57   : > { %p2271_p7 = pnand %p2269_p5, %p2605_p8  ;;  %p2278_p12 = por %p2277_p11, %p2276_p10 }
  0x59   : > { %p2272_p9 = pneg %p2271_p7 }
  0x5b   : > { %p2279_p4 = pnand %p2278_p12, %p2272_p9 }
  0x5d   : > { %2282 = shalt.err (!%p2279_p4)
}
  0x5e   : > { %2102 = dma.hbm_to_vmem [thread:$0]  (!%p2591_p6), %s3030_s5, 1152, %s2595_s13, [#allocation13], %s2486_s21, %s2486_s21, %s2487_s22  }
  0x5f   : > { %s2488_s23 = smov [#allocation11]   ;;  %s3046_s4 = sld [smem:[#allocation25_spill]] }
  0x60   : > { %s252_s28 = sshll.u32 %s2488_s23, 4  ;;  %s253_s28 = int_to_ptr.vmem [resolvable:$true] %s252_s28 }
  0x65   : > { %s2283_s14 = scalar_lea.hbm %s3046_s4, 256 }
  0x66   : > { %p2284_p13 = scmp.ne.s32.totalorder %s3046_s4, %s2283_s14  ;;  %p2290_p5 = scmp.lt.u32.totalorder %s2283_s14, %s3046_s4 }
  0x68   : > { %p2286_p0 = pnand %p2284_p13, %p2605_p8 }
  0x6a   : > { %p2287_p2 = pneg %p2286_p0 }
  0x6c   : > { %p2292_p7 = pnand %p2290_p5, %p2287_p2 }
  0x6e   : > { %2295 = shalt.err (!%p2292_p7)
}
  0x6f   : > { %s2296_s13 = scalar_lea.vmem %s253_s28, 256  ;;  %p2304_p12 = scmp.lt.s32.totalorder %s253_s28, %s253_s28 }
  0x70   : > { %p2297_p9 = scmp.ne.s32.totalorder %s253_s28, %s2296_s13  ;;  %p2305_p4 = scmp.lt.s32.totalorder %s2296_s13, %s2296_s13 }
  0x72   : > { %p2299_p10 = pnand %p2297_p9, %p2605_p8  ;;  %p2306_p1 = por %p2305_p4, %p2304_p12 }
  0x74   : > { %p2300_p11 = pneg %p2299_p10 }
  0x76   : > { %p2307_p3 = pnand %p2306_p1, %p2300_p11 }
  0x78   : > { %2310 = shalt.err (!%p2307_p3)
}
  0x79   : > { %s2489_s21 = smov 128   ;;  %s2490_s22 = smov 8  }
  0x7a   : > { %2099 = dma.hbm_to_vmem [thread:$0]  (!%p2591_p6), %s3046_s4, 256, %s253_s28, [#allocation10], %s2489_s21, %s2489_s21, %s2490_s22  }
  0x7b   : > { %s2491_s29 = smov [#allocation14]   ;;  %s2311_s14 = scalar_lea.hbm %s3031_s6, 256 }
  0x7c   : > { %s278_s23 = sshll.u32 %s2491_s29, 4  ;;  %p2312_p1 = scmp.ne.s32.totalorder %s3031_s6, %s2311_s14  ;;  %s279_s23 = int_to_ptr.vmem [resolvable:$true] %s278_s23 }
  0x7d   : > { %p2318_p0 = scmp.lt.u32.totalorder %s2311_s14, %s3031_s6 }
  0x7e   : > { %p2314_p3 = pnand %p2312_p1, %p2605_p8 }
  0x80   : > { %p2315_p13 = pneg %p2314_p3 }
  0x82   : > { %p2320_p2 = pnand %p2318_p0, %p2315_p13 }
  0x84   : > { %2323 = shalt.err (!%p2320_p2)
}
  0x85   : > { %s2324_s28 = scalar_lea.vmem %s279_s23, 256  ;;  %p2332_p10 = scmp.lt.s32.totalorder %s279_s23, %s279_s23 }
  0x86   : > { %p2325_p5 = scmp.ne.s32.totalorder %s279_s23, %s2324_s28  ;;  %p2333_p11 = scmp.lt.s32.totalorder %s2324_s28, %s2324_s28 }
  0x88   : > { %p2327_p7 = pnand %p2325_p5, %p2605_p8  ;;  %p2334_p12 = por %p2333_p11, %p2332_p10 }
  0x8a   : > { %p2328_p9 = pneg %p2327_p7 }
  0x8c   : > { %p2335_p4 = pnand %p2334_p12, %p2328_p9 }
  0x8e   : > { %2338 = shalt.err (!%p2335_p4)
}
  0x8f   : > { %2105 = dma.hbm_to_vmem [thread:$0]  (!%p2591_p6), %s3031_s6, 256, %s279_s23, [#allocation13], %s2489_s21, %s2489_s21, %s2490_s22  }
  0x90   : > { %s1883_s19 = sadd.s32 4294967294, %s2481_s27   ;;  %s2711_s11 = sadd.s32 1, %s2481_s27  }
  0x91   : > { %s35_s20 = sadd.s32 1, %s2477_s26  ;;  %s32_s29 = ssub.s32 %s2481_s27, %s2711_s11 }
  0x92   : > { %p42_p8 = scmp.ne.s32.totalorder %s2477_s26, %s2473_s25  ;;  %p33_p1 = scmp.eq.s32.totalorder %s32_s29, 0 }
  0x93   : > { %p43_p3 = scmp.eq.s32.totalorder %s2481_s27, 0  ;;  %p48_p13 = scmp.ne.s32.totalorder %s2473_s25, %s2469_s24 }
  0x94   : > { %p203_p0 = scmp.eq.s32.totalorder %s2573_s30, 1  ;;  %p3047_p5 = scmp.eq.s32.totalorder %s2573_s30, 0 }
  0x95   : > { %s2723_s9 = scalar_select %p33_p1, %s2477_s26, %s35_s20  }
  0x96   : > { %p44_p2 = por %p43_p3, %p42_p8  ;;  %p2727_p7 = por %p3047_p5, %p48_p13 }
  0x97   : > { %p2731_p6 = por %p203_p0, %p42_p8  ;;  %p209_p9 = scmp.eq.s32.totalorder %s1883_s19, 1 }
  0x98   : > { %p2122_p10 = scmp.lt.s32.totalorder %s2481_s27, 2  ;;  %s292_s23 = sand.u32 1, %s2477_s26  }
  0x99   : > { %s3049_s22 = scalar_select %p2731_p6, 1, 0 }
  0x9a   : > { %p2737_p11 = por %p209_p9, %p48_p13  ;;  %s2741_s14 = smul.u32 48, %s292_s23 }
  0x9b   : > { %p2743_p12 = pnand %p2122_p10, %p44_p2  ;;  %s3035_s16 = smul.u32 768, %s2481_s27 }
  0x9c   : > { %s3050_s12 = scalar_select %p2737_p11, 1, 0 }
  0x9d   : > { %s3052_s0 = sld [smem:[#allocation22_spill]]  ;;  %s296_s13 = scalar_lea.vmem [#allocation3], %s2741_s14 }
  0x9e   : > { %s303_s10 = sshll.u32 %s296_s13, 4  ;;  %s2758_s19 = scalar_lea.sflag [#allocation4], %s292_s23  ;;  %s2756_s10 = int_to_ptr.vmem [resolvable:$true] %s303_s10 }
  0x9f   : > { %p2341_p8 = pneg %p2743_p12 }
  0xa3   : > { %s2753_s28 = scalar_lea.hbm %s3052_s0, %s3035_s16  ;;  %s2344_s18 = scalar_lea.hbm %s3052_s0, 1536 }
  0xa4   : > { %s2339_s20 = scalar_lea.hbm %s2753_s28, 768  ;;  %p2345_p13 = scmp.lt.u32.totalorder %s2753_s28, %s3052_s0 }
  0xa5   : > { %p2340_p4 = scmp.ne.s32.totalorder %s2753_s28, %s2339_s20  ;;  %p2346_p0 = scmp.lt.u32.totalorder %s2344_s18, %s2339_s20 }
  0xa6   : > { %p2348_p5 = scmp.lt.u32.totalorder %s2339_s20, %s2753_s28 }
  0xa7   : > { %p2342_p1 = pnand %p2341_p8, %p2340_p4  ;;  %p2347_p2 = por %p2346_p0, %p2345_p13 }
  0xa9   : > { %p2343_p3 = pneg %p2342_p1  ;;  %p2349_p9 = por %p2348_p5, %p2347_p2 }
  0xab   : > { %p2350_p10 = pnand %p2349_p9, %p2343_p3 }
  0xad   : > { %2353 = shalt.err (!%p2350_p10)
}
  0xae   : > { %s2354_s23 = scalar_lea.vmem %s2756_s10, 768  ;;  %s2492_s13 = smov [#allocation3]  }
  0xaf   : > { %p2355_p4 = scmp.ne.s32.totalorder %s2756_s10, %s2354_s23  ;;  %s2359_s29 = sshll.u32 %s2492_s13, 4  ;;  %s2360_s29 = int_to_ptr.vmem [resolvable:$false] %s2359_s29 }
  0xb0   : > { %s2361_s2 = scalar_lea.vmem %s2360_s29, 1536  ;;  %p2362_p6 = scmp.lt.s32.totalorder %s2756_s10, %s2360_s29 }
  0xb1   : > { %p2357_p1 = pnand %p2355_p4, %p2341_p8  ;;  %p2363_p13 = scmp.lt.s32.totalorder %s2361_s2, %s2354_s23 }
  0xb3   : > { %p2358_p11 = pneg %p2357_p1  ;;  %p2364_p0 = por %p2363_p13, %p2362_p6 }
  0xb5   : > { %p2365_p2 = pnand %p2364_p0, %p2358_p11 }
  0xb7   : > { %2368 = shalt.err (!%p2365_p2)
}
  0xb8   : > { %s2493_s16 = smov 384   ;;  %s2494_s20 = smov 24  }
  0xb9   : > { %2109 = dma.hbm_to_vmem [thread:$0]  (!%p2743_p12), %s2753_s28, 768, %s2756_s10, %s2758_s19, %s2493_s16, %s2493_s16, %s2494_s20  }
  0xba   : > { %s313_s17 = sand.u32 1, %s2481_s27   ;;  %s3053_s18 = smul.u32 768, %s2481_s27 }
  0xbb   : > { %s317_s2 = scalar_lea.vmem [#allocation6], %s2741_s14  ;;  %s2800_s3 = scalar_lea.sflag [#allocation7], %s313_s17 }
  0xbc   : > { %s2795_s29 = scalar_lea.hbm %s3026_s1, %s3053_s18  ;;  %s324_s0 = sshll.u32 %s317_s2, 4  ;;  %s2798_s0 = int_to_ptr.vmem [resolvable:$true] %s324_s0 }
  0xbd   : > { %s2369_s4 = scalar_lea.hbm %s2795_s29, 768  ;;  %s2374_s19 = scalar_lea.hbm %s3026_s1, 1536 }
  0xbe   : > { %p2370_p6 = scmp.ne.s32.totalorder %s2795_s29, %s2369_s4  ;;  %p2375_p5 = scmp.lt.u32.totalorder %s2795_s29, %s3026_s1 }
  0xbf   : > { %p2376_p9 = scmp.lt.u32.totalorder %s2374_s19, %s2369_s4  ;;  %p2378_p4 = scmp.lt.u32.totalorder %s2369_s4, %s2795_s29 }
  0xc0   : > { %p2372_p11 = pnand %p2370_p6, %p2341_p8 }
  0xc1   : > { %p2377_p10 = por %p2376_p9, %p2375_p5 }
  0xc2   : > { %p2373_p3 = pneg %p2372_p11 }
  0xc3   : > { %p2379_p1 = por %p2378_p4, %p2377_p10 }
  0xc5   : > { %p2380_p13 = pnand %p2379_p1, %p2373_p3 }
  0xc7   : > { %2383 = shalt.err (!%p2380_p13)
}
  0xc8   : > { %s2384_s14 = scalar_lea.vmem %s2798_s0, 768  ;;  %s2495_s17 = smov [#allocation6]  }
  0xc9   : > { %p2385_p0 = scmp.ne.s32.totalorder %s2798_s0, %s2384_s14  ;;  %s2389_s13 = sshll.u32 %s2495_s17, 4  ;;  %s2390_s13 = int_to_ptr.vmem [resolvable:$false] %s2389_s13 }
  0xca   : > { %s2391_s2 = scalar_lea.vmem %s2390_s13, 1536  ;;  %p2392_p11 = scmp.lt.s32.totalorder %s2798_s0, %s2390_s13 }
  0xcb   : > { %p2387_p2 = pnand %p2385_p0, %p2341_p8  ;;  %p2393_p5 = scmp.lt.s32.totalorder %s2391_s2, %s2384_s14 }
  0xcd   : > { %p2388_p6 = pneg %p2387_p2  ;;  %p2394_p9 = por %p2393_p5, %p2392_p11 }
  0xcf   : > { %p2395_p10 = pnand %p2394_p9, %p2388_p6 }
  0xd1   : > { %2398 = shalt.err (!%p2395_p10)
}
  0xd2   : > { %2112 = dma.hbm_to_vmem [thread:$0]  (!%p2743_p12), %s2795_s29, 768, %s2798_s0, %s2800_s3, %s2493_s16, %s2493_s16, %s2494_s20  }
  0xd3   : > { %p3054_p8 = scmp.ne.s32.totalorder %s3041_s8, 0 }
  0xd4   : > { %s2832_s4 = sand.u32 (!%p3054_p8), 1, %s2473_s25  }
  0xd5   : > { %336 = sbr.rel (%p3054_p8) target bundleno = 1162 (0x48a), region = 48  ;;  %s339_s15 = scalar_lea.sflag (!%p3054_p8), [#allocation4], %s2832_s4 }
  0xd6   : > { %s2835_s28 = smul.u32 (!%p3054_p8), 48, %s2832_s4 }
  0xd8   : > { %s2839_s10 = scalar_lea.vmem (!%p3054_p8), [#allocation3], %s2835_s28 }
  0xdc   : > { %2444 = dma.done.wait (%p2727_p7), %s339_s15, 768  }
  0xdd   : > { %2446 = vsyncadd (%p2727_p7), %s339_s15, 4294966528  ;;  %s347_s0 = sand.u32 1, %s2573_s30   ;;  %s351_s8 = scalar_lea.vmem [#allocation6], %s2835_s28 }
  0xde   : > { %s348_s3 = scalar_lea.sflag [#allocation7], %s347_s0 }
  0xdf   : > { %2448 = dma.done.wait (%p2727_p7), %s348_s3, 768  }
  0xe0   : > { %2450 = vsyncadd (%p2727_p7), %s348_s3, 4294966528  ;;  %p3055_p12 = scmp.eq.s32.totalorder %s2573_s30, 0 }
  0xe2   : > { %2452 = dma.done.wait (%p3055_p12), [#allocation7], 48   ;;  %p3056_p3 = pmov %p3055_p12 }
  0xe4   : > { %2454 = vsyncadd (%p3056_p3), [#allocation7], 4294967248  ;;  %p3057_p4 = pmov %p3056_p3 }
  0xe5   : > { %p3058_p1 = pmov %p3056_p3 }
  0xe6   : > { %2456 = dma.done.wait (%p3057_p4), [#allocation10], 384  }
  0xe7   : > { %2458 = vsyncadd (%p3058_p1), [#allocation10], 4294966912  ;;  %p3059_p13 = pmov %p3058_p1 }
  0xe8   : > { %p3060_p0 = pmov %p3058_p1 }
  0xe9   : > { %2460 = dma.done.wait (%p3059_p13), [#allocation13], 1408  }
  0xea   : > { %2462 = vsyncadd (%p3060_p0), [#allocation13], 4294965888  ;;  %v2496_v0 = vmov 0.0   ;;  %v2497_v1 = vmov 0   ;;  %vm2498_vm0 = vmmov 0   ;;  %v2189_v2 = vld [vmem:[#allocation9] sm:$0xff]   ;;  %v630_v24 = vlaneseq }
  0xeb   : > { %1956 = vmatprep.subr.bf16.mxu1 %v2496_v0  ;;  %472 = vmatprep.mubr.bf16.mxu0 %v2497_v1  ;;  %v421_v3 = vld [vmem:[%s351_s8 + $0x8] sm:$0xff]  ;;  %v424_v4 = vld [vmem:[%s351_s8 + $0x20] sm:$0xff]  ;;  %s2499_s21 = smov 112   ;;  %v423_v7 = vld [vmem:[%s351_s8 + $0x18] sm:$0xff]  ;;  %vm436_vm1 = vcmask 130048   ;;  %vm656_vm2 = vcmask 556032  }
  0xec   : > { %1958 = vmatprep.mubr.msk.bf16.mxu1 %vm2498_vm0, %v2496_v0  ;;  %2187 = vset.pattern.permute.xlu0 %v2497_v1  ;;  %v420_v5 = vld [vmem:[%s351_s8] sm:$0xff]  ;;  %v427_v6 = vpack.c.bf16 %v424_v4, %v421_v3  ;;  %v422_v8 = vld [vmem:[%s351_s8 + $0x10] sm:$0xff]  ;;  %v425_v9 = vld [vmem:[%s351_s8 + $0x28] sm:$0xff]  ;;  %v631_v29 = vshrl.u32 %v630_v24, 7  ;;  %s2500_s16 = smov 127   ;;  %s2501_s20 = smov 126  }
  0xed   : > { %2188 = vset.pattern.permute.xlu1 %v2497_v1  ;;  %434 = vrot.lane.b32.xlu0 %v2189_v2, %s2499_s21  ;;  %v426_v10 = vpack.c.bf16 %v423_v7, %v420_v5  ;;  %v428_v11 = vpack.c.bf16 %v425_v9, %v422_v8  ;;  %v410_v12 = vld [vmem:[%s2839_s10 + $0x8] sm:$0xff]  ;;  %v413_v13 = vld [vmem:[%s2839_s10 + $0x20] sm:$0xff]  ;;  %v412_v18 = vld [vmem:[%s2839_s10 + $0x18] sm:$0xff]  ;;  %s2502_s29 = smov 110   ;;  %s2503_s19 = smov 109   ;;  %vm679_vm3 = vcmask 1039360  }
  0xee   : > { %440 = vmatprep.subr.bf16.mxu0 %v427_v6  ;;  %v416_v14 = vpack.c.bf16 %v413_v13, %v410_v12  ;;  %v611_v15 = vld [vmem:[#allocation11] sm:$0xff]  ;;  %v612_v16 = vld [vmem:[#allocation11 + $0x8] sm:$0xff]  ;;  %v640_v30 = vsub.s32 2, %v631_v29  ;;  %v408_v33 = vld [vmem:[#allocation8] sm:$0x7]  ;;  %v632_v36 = vsub.s32 0, %v631_v29 }
  0xef   : > { %441 = vmatpush1.bf16.msra.mxu0 %v426_v10  ;;  %1957 = vmatpush3.bf16.msra.mxu1 %v428_v11  ;;  %v409_v17 = vld [vmem:[%s2839_s10] sm:$0xff]  ;;  %v411_v19 = vld [vmem:[%s2839_s10 + $0x10] sm:$0xff]  ;;  %v414_v20 = vld [vmem:[%s2839_s10 + $0x28] sm:$0xff]  ;;  %v636_v39 = vsub.s32 1, %v631_v29  ;;  %s2504_s18 = smov 108   ;;  %s2505_s23 = smov 92  }
  0xf0   : > { %527 = vmatprep.subr.bf16.mxu0 %v416_v14  ;;  %1962 = vmatprep.subr.bf16.mxu1 %v2496_v0  ;;  %v415_v21 = vpack.c.bf16 %v412_v18, %v409_v17  ;;  %v417_v22 = vpack.c.bf16 %v414_v20, %v411_v19  ;;  %v641_v41 = vrot.slane %v408_v33, %v640_v30  ;;  %s2506_s14 = smov 91   ;;  %s2507_s17 = smov 90   ;;  %v1648_v3 = vld [vmem:[#allocation14] sm:$0xff]  ;;  %v1649_v4 = vld [vmem:[#allocation14 + $0x8] sm:$0xff]  ;;  %vm877_vm4 = vcmask 1031168   ;;  %v2191_v14 = vld [vmem:[#allocation12] sm:$0xff]  }
  0xf1   : > { %615 = vperm.xlu0 %2187, %v611_v15   ;;  %620 = vperm.xlu1 %2188, %v612_v16   ;;  %v633_v47 = vrot.slane %v408_v33, %v632_v36  ;;  %v637_v50 = vrot.slane %v408_v33, %v636_v39  ;;  %v2190_v8 = vld [vmem:[#allocation12 + $0x8] sm:$0xff]   ;;  %v2192_v18 = vld [vmem:[#allocation12 + $0x10] sm:$0xff]   ;;  %vm989_vm5 = vcmask 900096   ;;  %v2193_v24 = vld [vmem:[#allocation12 + $0x18] sm:$0xff]   ;;  %vm1101_vm6 = vcmask 891904   ;;  %s2948_s13 = scalar_lea.vmem [#allocation15], %s2835_s28 }
  0xf2   : > { %v2194_v29 = vld [vmem:[#allocation12 + $0x20] sm:$0xff]   ;;  %v2195_v33 = vld [vmem:[#allocation12 + $0x28] sm:$0xff]   ;;  %vm1213_vm7 = vcmask 883712   ;;  %v2196_v39 = vld [vmem:[#allocation12 + $0x30] sm:$0xff]   ;;  %vm1325_vm8 = vcmask 752640   ;;  %vm1437_vm9 = vcmask 744448  }
  0xf3   : > { %vm1549_vm10 = vcmask 736256   ;;  %vm1684_vm11 = vcmask 154624   ;;  %s2508_s2 = smov 19   ;;  %vm1687_vm12 = vcmask 556424   ;;  %vm1718_vm13 = vcmask 1047704   ;;  %s2063_s28 = smul.u32 768, %s2573_s30 }
  0xf4   : > { %1685 = vst.msk [vmem:[%s2948_s13] sm:$0xff] %vm1684_vm11, %v2496_v0  ;;  %1686 = vst.msk [vmem:[%s2948_s13 + $0x18] sm:$0xff] %vm1684_vm11, %v2496_v0  ;;  %vm1721_vm14 = vcmask 400384   ;;  %s1740_s15 = sshll.u32 %s2948_s13, 4  ;;  %s1727_s30 = scalar_lea.sflag [#allocation5], %s2832_s4  ;;  %s2978_s15 = int_to_ptr.vmem [resolvable:$true] %s1740_s15 }
  0xf5   : > { %1688 = vst.msk [vmem:[%s2948_s13 + $0x10] sm:$0xff] %vm1687_vm12, %v2496_v0  ;;  %1689 = vst.msk [vmem:[%s2948_s13 + $0x28] sm:$0xff] %vm1687_vm12, %v2496_v0  ;;  %s2976_s3 = scalar_lea.hbm %s3032_s7, %s2063_s28  ;;  %s2399_s8 = scalar_lea.vmem %s2978_s15, 768 }
  0xf6   : > { %p2400_p7 = scmp.ne.s32.totalorder %s2978_s15, %s2399_s8  ;;  %p3061_p2 = scmp.ne.s32.totalorder %s3049_s22, 0 }
  0xf7   : > { %s2509_s21 = smov [#allocation15]  }
  0xf8   : > { %p2401_p6 = pnand %p2400_p7, %p3061_p2 }
  0xfa   : > { %p2402_p11 = pneg %p2401_p6 }
 0x15f   : > { %v435_v23 = vpop.permute.xlu0 %434 }
 0x160   : > { %1900 = vmatmul.mubr.msk.bf16.vlgmr.msra.gmra.mrb[0].mxu0 %vm436_vm1, %v435_v23  ;;  %1959 = vmatmul.mubr.msk.bf16.vlgmr.msra.gmra.mrb[0].mxu1 %vm436_vm1, %v435_v23 }
 0x161   : > { %528 = vmatpush1.bf16.msra.mxu0 %v415_v21  ;;  %1963 = vmatpush3.bf16.msra.mxu1 %v417_v22 }
 0x162   : > { %1964 = vmatprep.mubr.msk.bf16.mxu1 %vm2498_vm0, %v2496_v0  ;;  %559 = vmatprep.mubr.bf16.mxu0 %v2497_v1 }
 0x163   : > { %1968 = vmatprep.subr.bf16.mxu1 %v2496_v0 }
 0x168   : > { %1965 = vmatmul.mubr.msk.bf16.vlgmr.msra.gmra.mrb[4].mxu1 %vm436_vm1, %v2189_v2 }
 0x169   : > { %1970 = vmatprep.mubr.msk.bf16.mxu1 %vm2498_vm0, %v2496_v0 }
 0x16c   : > { %1902 = vmatmul.mubr.msk.bf16.vlgmr.msra.gmra.mrb[0].mxu0 %vm436_vm1, %v2189_v2 }
 0x16d   : > { %720 = vmatprep.mubr.bf16.mxu0 %v2497_v1 }
 0x170   : > { %v616_v32 = vpop.permute.xlu0 %615  ;;  %v621_v38 = vpop.permute.xlu1 %620 }
 0x233   : > { %v517_v25 = vpop.f32.mrb[0].mxu1 }
 0x234   : > { %v1960_v26 = vpop.f32.mrb[1].mxu1 }
 0x235   : > { %v520_v27 = vpop.f32.mrb[2].mxu1 }
 0x236   : > { %v1961_v28 = vpop.f32.mrb[3].mxu1 }
 0x23b   : > { %v604_v31 = vpop.f32.mrb[4].mxu1 }
 0x23c   : > { %v605_v34 = vadd.f32 %v604_v31, %v517_v25  ;;  %v1966_v35 = vpop.f32.mrb[5].mxu1 }
 0x23d   : > { %v607_v37 = vpop.f32.mrb[6].mxu1 }
 0x23e   : > { %v625_v40 = vadd.f32 %v616_v32, %v605_v34  ;;  %v608_v42 = vadd.f32 %v607_v37, %v520_v27  ;;  %v1967_v43 = vpop.f32.mrb[7].mxu1 }
 0x23f   : > { %v561_v44 = vpop.f32.mrb[0].mxu0 }
 0x240   : > { %v628_v45 = vadd.f32 %v621_v38, %v608_v42  ;;  %v623_v46 = vadd.f32 %v616_v32, %v561_v44  ;;  %v563_v48 = vpop.f32.mrb[1].mxu0  ;;  %v647_v52 = vmul.f32 %v641_v41, %v625_v40  ;;  %v2197_v44 = vld [vmem:[#allocation12 + $0x38] sm:$0xff]  }
 0x241   : > { %v624_v49 = vadd.f32 %v616_v32, %v563_v48  ;;  %v565_v51 = vpop.f32.mrb[2].mxu0 }
 0x242   : > { %v650_v53 = vmul.f32 %v641_v41, %v628_v45  ;;  %v626_v54 = vadd.f32 %v621_v38, %v565_v51  ;;  %v567_v55 = vpop.f32.mrb[3].mxu0  ;;  %v645_v58 = vmul.f32 %v633_v47, %v623_v46  ;;  %v2198_v46 = vld [vmem:[#allocation12 + $0x40] sm:$0xff]  }
 0x243   : > { %v627_v56 = vadd.f32 %v621_v38, %v567_v55  ;;  %v646_v60 = vmul.f32 %v637_v50, %v624_v49 }
 0x244   : > { %v653_v57 = vpack.c.bf16 %v650_v53, %v647_v52  ;;  %v648_v59 = vmul.f32 %v633_v47, %v626_v54 }
 0x245   : > { %v649_v61 = vmul.f32 %v637_v50, %v627_v56 }
 0x246   : > { %657 = vst.msk [vmem:[#allocation2 + $0x10] sm:$0xff] %vm656_vm2, %v653_v57  ;;  %v651_v62 = vpack.c.bf16 %v648_v59, %v645_v58 }
 0x247   : > { %v652_v63 = vpack.c.bf16 %v649_v61, %v646_v60 }
 0x248   : > { %673 = vrot.lane.b32.xlu0 %v651_v62, %s2500_s16 }
 0x249   : > { %675 = vrot.lane.b32.xlu1 %v652_v63, %s2500_s16 }
 0x24d   : > { %v660_v2 = vld [vmem:[#allocation2 + $0x10] sm:$0xff] }
 0x24e   : > { %875 = vrot.lane.b32.xlu0 %v660_v2, %s2501_s20  ;;  %677 = vrot.lane.b32.xlu1 %v660_v2, %s2500_s16  ;;  %s2403_s16 = sshll.u32 %s2509_s21, 4  ;;  %s2404_s16 = int_to_ptr.vmem [resolvable:$false] %s2403_s16 }
 0x24f   : > { %p2406_p5 = scmp.lt.s32.totalorder %s2978_s15, %s2404_s16 }
 0x252   : > { %985 = vrot.lane.b32.xlu0 %v652_v63, %s2502_s29  ;;  %873 = vrot.lane.b32.xlu1 %v652_v63, %s2501_s20 }
 0x256   : > { %983 = vrot.lane.b32.xlu0 %v651_v62, %s2502_s29  ;;  %871 = vrot.lane.b32.xlu1 %v651_v62, %s2501_s20  ;;  %s2405_s20 = scalar_lea.vmem %s2404_s16, 1536 }
 0x257   : > { %p2407_p9 = scmp.lt.s32.totalorder %s2405_s20, %s2399_s8 }
 0x259   : > { %p2408_p10 = por %p2407_p9, %p2406_p5 }
 0x25a   : > { %1099 = vrot.lane.b32.xlu0 %v660_v2, %s2503_s19  ;;  %987 = vrot.lane.b32.xlu1 %v660_v2, %s2502_s29 }
 0x25b   : > { %p2409_p8 = pnand %p2408_p10, %p2402_p11 }
 0x25e   : > { %1209 = vrot.lane.b32.xlu0 %v652_v63, %s2504_s18  ;;  %1097 = vrot.lane.b32.xlu1 %v652_v63, %s2503_s19 }
 0x262   : > { %1207 = vrot.lane.b32.xlu0 %v651_v62, %s2504_s18  ;;  %1095 = vrot.lane.b32.xlu1 %v651_v62, %s2503_s19 }
 0x266   : > { %1323 = vrot.lane.b32.xlu0 %v660_v2, %s2505_s23  ;;  %1211 = vrot.lane.b32.xlu1 %v660_v2, %s2504_s18 }
 0x26a   : > { %1433 = vrot.lane.b32.xlu0 %v652_v63, %s2506_s14  ;;  %1321 = vrot.lane.b32.xlu1 %v652_v63, %s2505_s23 }
 0x26e   : > { %1431 = vrot.lane.b32.xlu0 %v651_v62, %s2506_s14  ;;  %1319 = vrot.lane.b32.xlu1 %v651_v62, %s2505_s23 }
 0x272   : > { %1547 = vrot.lane.b32.xlu0 %v660_v2, %s2507_s17  ;;  %1435 = vrot.lane.b32.xlu1 %v660_v2, %s2506_s14 }
 0x276   : > { %1652 = vperm.xlu0 %2187, %v1648_v3   ;;  %1545 = vrot.lane.b32.xlu1 %v652_v63, %s2507_s17 }
 0x27a   : > { %1543 = vrot.lane.b32.xlu1 %v651_v62, %s2507_s17  ;;  %1666 = vrot.lane.b32.xlu0 %v633_v47, %s2503_s19 }
 0x27e   : > { %1657 = vperm.xlu1 %2188, %v1649_v4   ;;  %1670 = vrot.lane.b32.xlu0 %v641_v41, %s2503_s19 }
 0x282   : > { %1668 = vrot.lane.b32.xlu1 %v637_v50, %s2503_s19 }
 0x2ba   : > { %v674_v6 = vpop.permute.xlu0 %673 }
 0x2bb   : > { %v676_v5 = vpop.permute.xlu1 %675 }
 0x2bc   : > { %v680_v10 = vsel %vm679_vm3, %v674_v6, %v676_v5 }
 0x2c0   : > { %v678_v7 = vpop.permute.xlu1 %677  ;;  %v876_v12 = vpop.permute.xlu0 %875 }
 0x2c1   : > { %1969 = vmatpush3.bf16.msra.mxu1 %v678_v7  ;;  %v681_v9 = vsel %vm679_vm3, %v676_v5, %v678_v7 }
 0x2c2   : > { %688 = vmatprep.subr.bf16.mxu0 %v681_v9  ;;  %1974 = vmatprep.subr.bf16.mxu1 %v2496_v0 }
 0x2c3   : > { %689 = vmatpush1.bf16.msra.mxu0 %v680_v10 }
 0x2c4   : > { %1971 = vmatmul.mubr.msk.bf16.vlgmr.msra.gmra.mrb[8].mxu1 %vm436_vm1, %v2190_v8  ;;  %v874_v11 = vpop.permute.xlu1 %873  ;;  %780 = vmatprep.subr.bf16.mxu0 %v652_v63  ;;  %v986_v16 = vpop.permute.xlu0 %985 }
 0x2c5   : > { %1975 = vmatpush3.bf16.msra.mxu1 %v660_v2  ;;  %1976 = vmatprep.mubr.msk.bf16.mxu1 %vm2498_vm0, %v2496_v0  ;;  %v879_v13 = vsel %vm877_vm4, %v874_v11, %v876_v12 }
 0x2c6   : > { %1905 = vmatmul.mubr.msk.bf16.vlgmr.msra.gmra.mrb[4].mxu0 %vm436_vm1, %v2190_v8  ;;  %1980 = vmatprep.subr.bf16.mxu1 %v2496_v0 }
 0x2c7   : > { %781 = vmatpush1.bf16.msra.mxu0 %v651_v62  ;;  %812 = vmatprep.mubr.bf16.mxu0 %v2497_v1 }
 0x2c8   : > { %886 = vmatprep.subr.bf16.mxu0 %v879_v13  ;;  %v872_v15 = vpop.permute.xlu1 %871  ;;  %v984_v19 = vpop.permute.xlu0 %983 }
 0x2c9   : > { %v878_v20 = vsel %vm877_vm4, %v872_v15, %v874_v11  ;;  %v990_v26 = vsel %vm989_vm5, %v984_v19, %v986_v16 }
 0x2cc   : > { %1977 = vmatmul.mubr.msk.bf16.vlgmr.msra.gmra.mrb[12].mxu1 %vm436_vm1, %v2191_v14  ;;  %v988_v17 = vpop.permute.xlu1 %987  ;;  %v1100_v23 = vpop.permute.xlu0 %1099 }
 0x2cd   : > { %1981 = vmatpush3.bf16.msra.mxu1 %v876_v12  ;;  %1982 = vmatprep.mubr.msk.bf16.mxu1 %vm2498_vm0, %v2496_v0  ;;  %v991_v21 = vsel %vm989_vm5, %v986_v16, %v988_v17 }
 0x2ce   : > { %1986 = vmatprep.subr.bf16.mxu1 %v2496_v0 }
 0x2d0   : > { %v1098_v22 = vpop.permute.xlu1 %1097  ;;  %v1210_v27 = vpop.permute.xlu0 %1209 }
 0x2d1   : > { %v1103_v28 = vsel %vm1101_vm6, %v1098_v22, %v1100_v23 }
 0x2d2   : > { %1908 = vmatmul.mubr.msk.bf16.vlgmr.msra.gmra.mrb[4].mxu0 %vm436_vm1, %v2191_v14 }
 0x2d3   : > { %887 = vmatpush1.bf16.msra.mxu0 %v878_v20  ;;  %918 = vmatprep.mubr.bf16.mxu0 %v2497_v1 }
 0x2d4   : > { %998 = vmatprep.subr.bf16.mxu0 %v991_v21  ;;  %1983 = vmatmul.mubr.msk.bf16.vlgmr.msra.gmra.mrb[16].mxu1 %vm436_vm1, %v2192_v18  ;;  %v1096_v25 = vpop.permute.xlu1 %1095  ;;  %v1208_v31 = vpop.permute.xlu0 %1207 }
 0x2d5   : > { %1987 = vmatpush3.bf16.msra.mxu1 %v988_v17  ;;  %1988 = vmatprep.mubr.msk.bf16.mxu1 %vm2498_vm0, %v2496_v0  ;;  %v1102_v34 = vsel %vm1101_vm6, %v1096_v25, %v1098_v22  ;;  %v1214_v41 = vsel %vm1213_vm7, %v1208_v31, %v1210_v27 }
 0x2d6   : > { %1992 = vmatprep.subr.bf16.mxu1 %v2496_v0 }
 0x2d8   : > { %v1212_v30 = vpop.permute.xlu1 %1211  ;;  %v1324_v35 = vpop.permute.xlu0 %1323 }
 0x2d9   : > { %v1215_v36 = vsel %vm1213_vm7, %v1210_v27, %v1212_v30 }
 0x2dc   : > { %1989 = vmatmul.mubr.msk.bf16.vlgmr.msra.gmra.mrb[20].mxu1 %vm436_vm1, %v2193_v24  ;;  %v1322_v32 = vpop.permute.xlu1 %1321  ;;  %v1434_v38 = vpop.permute.xlu0 %1433 }
 0x2dd   : > { %1993 = vmatpush3.bf16.msra.mxu1 %v1100_v23  ;;  %1994 = vmatprep.mubr.msk.bf16.mxu1 %vm2498_vm0, %v2496_v0  ;;  %v1327_v43 = vsel %vm1325_vm8, %v1322_v32, %v1324_v35 }
 0x2de   : > { %1911 = vmatmul.mubr.msk.bf16.vlgmr.msra.gmra.mrb[4].mxu0 %vm436_vm1, %v2192_v18  ;;  %1998 = vmatprep.subr.bf16.mxu1 %v2496_v0 }
 0x2df   : > { %999 = vmatpush1.bf16.msra.mxu0 %v990_v26  ;;  %1030 = vmatprep.mubr.bf16.mxu0 %v2497_v1 }
 0x2e0   : > { %1110 = vmatprep.subr.bf16.mxu0 %v1103_v28  ;;  %v1320_v37 = vpop.permute.xlu1 %1319  ;;  %v1432_v42 = vpop.permute.xlu0 %1431 }
 0x2e1   : > { %v1326_v47 = vsel %vm1325_vm8, %v1320_v37, %v1322_v32  ;;  %v1438_v50 = vsel %vm1437_vm9, %v1432_v42, %v1434_v38 }
 0x2e4   : > { %1995 = vmatmul.mubr.msk.bf16.vlgmr.msra.gmra.mrb[24].mxu1 %vm436_vm1, %v2194_v29  ;;  %v1436_v40 = vpop.permute.xlu1 %1435  ;;  %v1548_v45 = vpop.permute.xlu0 %1547 }
 0x2e5   : > { %1999 = vmatpush3.bf16.msra.mxu1 %v1212_v30  ;;  %2000 = vmatprep.mubr.msk.bf16.mxu1 %vm2498_vm0, %v2496_v0  ;;  %v1439_v48 = vsel %vm1437_vm9, %v1434_v38, %v1436_v40 }
 0x2e6   : > { %2004 = vmatprep.subr.bf16.mxu1 %v2496_v0 }
 0x2e8   : > { %v1546_v49 = vpop.permute.xlu1 %1545 }
 0x2e9   : > { %v1551_v51 = vsel %vm1549_vm10, %v1546_v49, %v1548_v45 }
 0x2ea   : > { %1914 = vmatmul.mubr.msk.bf16.vlgmr.msra.gmra.mrb[4].mxu0 %vm436_vm1, %v2193_v24 }
 0x2eb   : > { %1111 = vmatpush1.bf16.msra.mxu0 %v1102_v34  ;;  %1142 = vmatprep.mubr.bf16.mxu0 %v2497_v1 }
 0x2ec   : > { %1222 = vmatprep.subr.bf16.mxu0 %v1215_v36  ;;  %2001 = vmatmul.mubr.msk.bf16.vlgmr.msra.gmra.mrb[28].mxu1 %vm436_vm1, %v2195_v33  ;;  %v1544_v52 = vpop.permute.xlu1 %1543 }
 0x2ed   : > { %2005 = vmatpush3.bf16.msra.mxu1 %v1324_v35  ;;  %2006 = vmatprep.mubr.msk.bf16.mxu1 %vm2498_vm0, %v2496_v0  ;;  %v1550_v53 = vsel %vm1549_vm10, %v1544_v52, %v1546_v49 }
 0x2ee   : > { %2010 = vmatprep.subr.bf16.mxu1 %v2496_v0 }
 0x2f4   : > { %2007 = vmatmul.mubr.msk.bf16.vlgmr.msra.gmra.mrb[32].mxu1 %vm436_vm1, %v2196_v39 }
 0x2f5   : > { %2011 = vmatpush3.bf16.msra.mxu1 %v1436_v40  ;;  %2012 = vmatprep.mubr.msk.bf16.mxu1 %vm2498_vm0, %v2496_v0  ;;  %v1653_v31 = vpop.permute.xlu0 %1652 }
 0x2f6   : > { %1917 = vmatmul.mubr.msk.bf16.vlgmr.msra.gmra.mrb[4].mxu0 %vm436_vm1, %v2194_v29  ;;  %2016 = vmatprep.subr.bf16.mxu1 %v2496_v0 }
 0x2f7   : > { %1223 = vmatpush1.bf16.msra.mxu0 %v1214_v41  ;;  %1254 = vmatprep.mubr.bf16.mxu0 %v2497_v1 }
 0x2f8   : > { %1334 = vmatprep.subr.bf16.mxu0 %v1327_v43 }
 0x2f9   : > { %v1667_v38 = vpop.permute.xlu0 %1666 }
 0x2fc   : > { %2013 = vmatmul.mubr.msk.bf16.vlgmr.msra.gmra.mrb[36].mxu1 %vm436_vm1, %v2197_v44 }
 0x2fd   : > { %2017 = vmatpush3.bf16.msra.mxu1 %v1548_v45  ;;  %2018 = vmatprep.mubr.msk.bf16.mxu1 %vm2498_vm0, %v2496_v0  ;;  %v1671_v43 = vpop.permute.xlu0 %1670 }
 0x302   : > { %1920 = vmatmul.mubr.msk.bf16.vlgmr.msra.gmra.mrb[4].mxu0 %vm436_vm1, %v2195_v33 }
 0x303   : > { %1335 = vmatpush1.bf16.msra.mxu0 %v1326_v47  ;;  %1366 = vmatprep.mubr.bf16.mxu0 %v2497_v1 }
 0x304   : > { %1446 = vmatprep.subr.bf16.mxu0 %v1439_v48  ;;  %2019 = vmatmul.mubr.msk.bf16.vlgmr.msra.gmra.mrb[40].mxu1 %vm436_vm1, %v2198_v46  ;;  %v1658_v48 = vpop.permute.xlu1 %1657 }
 0x308   : > { %v1669_v49 = vpop.permute.xlu1 %1668 }
 0x309   : > { %v1674_v52 = vsel %vm1101_vm6, %v1669_v49, %v1671_v43 }
 0x30e   : > { %1923 = vmatmul.mubr.msk.bf16.vlgmr.msra.gmra.mrb[4].mxu0 %vm436_vm1, %v2196_v39 }
 0x30f   : > { %1447 = vmatpush1.bf16.msra.mxu0 %v1438_v50  ;;  %1478 = vmatprep.mubr.bf16.mxu0 %v2497_v1 }
 0x310   : > { %1558 = vmatprep.subr.bf16.mxu0 %v1551_v51 }
 0x31a   : > { %1926 = vmatmul.mubr.msk.bf16.vlgmr.msra.gmra.mrb[4].mxu0 %vm436_vm1, %v2197_v44 }
 0x31b   : > { %1559 = vmatpush1.bf16.msra.mxu0 %v1550_v53  ;;  %1590 = vmatprep.mubr.bf16.mxu0 %v2497_v1 }
 0x326   : > { %1929 = vmatmul.mubr.msk.bf16.vlgmr.msra.gmra.mrb[4].mxu0 %vm436_vm1, %v2198_v46 }
 0x397   : > { %v765_v54 = vpop.f32.mrb[8].mxu1 }
 0x398   : > { %v1972_v55 = vpop.f32.mrb[9].mxu1 }
 0x399   : > { %v768_v56 = vpop.f32.mrb[10].mxu1 }
 0x39a   : > { %v1973_v57 = vpop.f32.mrb[11].mxu1 }
 0x39f   : > { %v857_v58 = vpop.f32.mrb[12].mxu1 }
 0x3a0   : > { %v858_v59 = vadd.f32 %v857_v58, %v765_v54  ;;  %v1978_v60 = vpop.f32.mrb[13].mxu1  ;;  %v1673_v54 = vsel %vm1101_vm6, %v1667_v38, %v1669_v49 }
 0x3a1   : > { %v860_v61 = vpop.f32.mrb[14].mxu1 }
 0x3a2   : > { %v861_v62 = vadd.f32 %v860_v61, %v768_v56  ;;  %v1979_v63 = vpop.f32.mrb[15].mxu1 }
 0x3a7   : > { %v963_v2 = vpop.f32.mrb[16].mxu1 }
 0x3a8   : > { %v972_v3 = vadd.f32 %v963_v2, %v858_v59  ;;  %v1984_v4 = vpop.f32.mrb[17].mxu1 }
 0x3a9   : > { %v966_v5 = vpop.f32.mrb[18].mxu1 }
 0x3aa   : > { %v975_v6 = vadd.f32 %v966_v5, %v861_v62  ;;  %v1985_v7 = vpop.f32.mrb[19].mxu1 }
 0x3af   : > { %v1075_v8 = vpop.f32.mrb[20].mxu1 }
 0x3b0   : > { %v1084_v1 = vadd.f32 %v1075_v8, %v972_v3  ;;  %v1990_v9 = vpop.f32.mrb[21].mxu1 }
 0x3b1   : > { %v1078_v10 = vpop.f32.mrb[22].mxu1 }
 0x3b2   : > { %v1087_v11 = vadd.f32 %v1078_v10, %v975_v6  ;;  %v1991_v12 = vpop.f32.mrb[23].mxu1 }
 0x3b7   : > { %v1187_v13 = vpop.f32.mrb[24].mxu1 }
 0x3b8   : > { %v1196_v14 = vadd.f32 %v1187_v13, %v1084_v1  ;;  %v1996_v15 = vpop.f32.mrb[25].mxu1 }
 0x3b9   : > { %v1190_v16 = vpop.f32.mrb[26].mxu1 }
 0x3ba   : > { %v1199_v17 = vadd.f32 %v1190_v16, %v1087_v11  ;;  %v1997_v18 = vpop.f32.mrb[27].mxu1 }
 0x3bf   : > { %v1299_v19 = vpop.f32.mrb[28].mxu1 }
 0x3c0   : > { %v1308_v20 = vadd.f32 %v1299_v19, %v1196_v14  ;;  %v2002_v21 = vpop.f32.mrb[29].mxu1 }
 0x3c1   : > { %v1302_v22 = vpop.f32.mrb[30].mxu1 }
 0x3c2   : > { %v1311_v23 = vadd.f32 %v1302_v22, %v1199_v17  ;;  %v2003_v24 = vpop.f32.mrb[31].mxu1 }
 0x3c7   : > { %v1411_v25 = vpop.f32.mrb[32].mxu1 }
 0x3c8   : > { %v1420_v26 = vadd.f32 %v1411_v25, %v1308_v20  ;;  %v2008_v27 = vpop.f32.mrb[33].mxu1 }
 0x3c9   : > { %v1414_v28 = vpop.f32.mrb[34].mxu1 }
 0x3ca   : > { %v1423_v29 = vadd.f32 %v1414_v28, %v1311_v23  ;;  %v2009_v30 = vpop.f32.mrb[35].mxu1 }
 0x3cf   : > { %v1523_v32 = vpop.f32.mrb[36].mxu1 }
 0x3d0   : > { %v1532_v33 = vadd.f32 %v1523_v32, %v1420_v26  ;;  %v2014_v34 = vpop.f32.mrb[37].mxu1 }
 0x3d1   : > { %v1526_v35 = vpop.f32.mrb[38].mxu1 }
 0x3d2   : > { %v1535_v36 = vadd.f32 %v1526_v35, %v1423_v29  ;;  %v2015_v37 = vpop.f32.mrb[39].mxu1 }
 0x3d7   : > { %v1635_v39 = vpop.f32.mrb[40].mxu1 }
 0x3d8   : > { %v1644_v40 = vadd.f32 %v1635_v39, %v1532_v33  ;;  %v2020_v41 = vpop.f32.mrb[41].mxu1 }
 0x3d9   : > { %v1638_v42 = vpop.f32.mrb[42].mxu1 }
 0x3da   : > { %v1662_v44 = vadd.f32 %v1653_v31, %v1644_v40  ;;  %v1647_v45 = vadd.f32 %v1638_v42, %v1535_v36  ;;  %v2021_v46 = vpop.f32.mrb[43].mxu1 }
 0x3dc   : > { %v1680_v47 = vmul.f32 %v1671_v43, %v1662_v44  ;;  %v1665_v0 = vadd.f32 %v1658_v48, %v1647_v45 }
 0x3de   : > { %1700 = vrot.lane.b32.xlu1 %v1680_v47, %s2508_s2  ;;  %v1683_v2 = vmul.f32 %v1671_v43, %v1665_v0 }
 0x3f9   : > { %v1592_v50 = vpop.f32.mrb[4].mxu0 }
 0x3fa   : > { %v1660_v51 = vadd.f32 %v1653_v31, %v1592_v50  ;;  %v1594_v53 = vpop.f32.mrb[5].mxu0 }
 0x3fb   : > { %v1661_v55 = vadd.f32 %v1653_v31, %v1594_v53  ;;  %v1596_v56 = vpop.f32.mrb[6].mxu0 }
 0x3fc   : > { %v1678_v57 = vmul.f32 %v1673_v54, %v1660_v51  ;;  %v1598_v58 = vpop.f32.mrb[7].mxu0  ;;  %v1663_v60 = vadd.f32 %v1658_v48, %v1596_v56 }
 0x3fd   : > { %v1679_v59 = vmul.f32 %v1674_v52, %v1661_v55  ;;  %v1664_v61 = vadd.f32 %v1658_v48, %v1598_v58 }
 0x3fe   : > { %1696 = vrot.lane.b32.xlu1 %v1678_v57, %s2508_s2  ;;  %v1681_v63 = vmul.f32 %v1673_v54, %v1663_v60 }
 0x3ff   : > { %v1682_v62 = vmul.f32 %v1674_v52, %v1664_v61  ;;  %1698 = vrot.lane.b32.xlu0 %v1679_v59, %s2508_s2 }
 0x402   : > { %1704 = vrot.lane.b32.xlu1 %v1682_v62, %s2508_s2 }
 0x403   : > { %1702 = vrot.lane.b32.xlu0 %v1681_v63, %s2508_s2 }
 0x407   : > { %1706 = vrot.lane.b32.xlu0 %v1683_v2, %s2508_s2 }
 0x450   : > { %v1701_v3 = vpop.permute.xlu1 %1700 }
 0x470   : > { %v1697_v4 = vpop.permute.xlu1 %1696 }
 0x471   : > { %1719 = vst.msk [vmem:[%s2948_s13] sm:$0xff] %vm1718_vm13, %v1697_v4  ;;  %v1699_v5 = vpop.permute.xlu0 %1698 }
 0x472   : > { %v1708_v6 = vsel %vm1684_vm11, %v1697_v4, %v1699_v5  ;;  %v1709_v7 = vsel %vm1684_vm11, %v1699_v5, %v1701_v3 }
 0x473   : > { %1720 = vst [vmem:[%s2948_s13 + $0x8] sm:$0xff] %v1708_v6  ;;  %1722 = vst.msk [vmem:[%s2948_s13 + $0x10] sm:$0xff] %vm1721_vm14, %v1709_v7 }
 0x474   : > { %v1705_v8 = vpop.permute.xlu1 %1704 }
 0x475   : > { %v1703_v1 = vpop.permute.xlu0 %1702 }
 0x476   : > { %v1710_v9 = vsel %vm1684_vm11, %v1703_v1, %v1705_v8  ;;  %1723 = vst.msk [vmem:[%s2948_s13 + $0x18] sm:$0xff] %vm1718_vm13, %v1703_v1 }
 0x477   : > { %1724 = vst [vmem:[%s2948_s13 + $0x20] sm:$0xff] %v1710_v9 }
 0x479   : > { %v1707_v10 = vpop.permute.xlu0 %1706 }
 0x47a   : > { %v1711_v11 = vsel %vm1684_vm11, %v1705_v8, %v1707_v10 }
 0x47b   : > { %1725 = vst.msk [vmem:[%s2948_s13 + $0x28] sm:$0xff] %vm1721_vm14, %v1711_v11 }
 0x47c   : > { %2412 = shalt.err (!%p2409_p8)
}
 0x47d   : > { %s2413_s29 = scalar_lea.hbm %s2976_s3, 768  ;;  %s2417_s23 = scalar_lea.hbm %s3032_s7, 1536 }
 0x47e   : > { %p2414_p12 = scmp.ne.s32.totalorder %s2976_s3, %s2413_s29  ;;  %p2418_p1 = scmp.lt.u32.totalorder %s2976_s3, %s3032_s7 }
 0x47f   : > { %p2419_p13 = scmp.lt.u32.totalorder %s2417_s23, %s2413_s29  ;;  %p2421_p7 = scmp.lt.u32.totalorder %s2413_s29, %s2976_s3 }
 0x480   : > { %p2415_p3 = pnand %p2414_p12, %p3061_p2 }
 0x481   : > { %p2420_p0 = por %p2419_p13, %p2418_p1 }
 0x482   : > { %p2416_p4 = pneg %p2415_p3 }
 0x483   : > { %p2422_p6 = por %p2421_p7, %p2420_p0 }
 0x485   : > { %p2423_p11 = pnand %p2422_p6, %p2416_p4 }
 0x487   : > { %2426 = shalt.err (!%p2423_p11)
}
 0x488   : > { %s2510_s13 = smov 384   ;;  %s2511_s2 = smov 24  }
 0x489   : > { %2088 = dma.vmem_to_hbm [thread:$0]  (%p3061_p2), %s2978_s15, 768, %s2976_s3, %s1727_s30, %s2510_s13, %s2510_s13, %s2511_s2  }
 0x48a PF: > { %s1755_s28 = sand.u32 1, %s2469_s24   ;;  %p3062_p5 = scmp.ne.s32.totalorder %s3050_s12, 0 }
 0x48b   : > { %p3063_p9 = scmp.ge.s32.totalorder %s2481_s27, 2  ;;  %s1756_s10 = scalar_lea.sflag [#allocation5], %s1755_s28 }
 0x48d   : > { %p2114_p10 = pnand %p3063_p9, %p3062_p5 }
 0x48f   : > { %2464 = dma.done.wait (!%p2114_p10), %s1756_s10, 768  }
 0x490   : > { %2466 = vsyncadd (!%p2114_p10), %s1756_s10, 4294966528  ;;  %p25_p8 = scmp.ge.s32.totalorder %s2711_s11, 4   ;;  %s3064_s24 = smov %s2473_s25 }
 0x491   : > { %s3065_s25 = smov %s2477_s26  ;;  %s3066_s26 = smov %s2723_s9 }
 0x492   : > { %s3067_s27 = smov %s2711_s11  ;;  %27 = sbr.rel (!%p25_p8) target bundleno = 14 (0xe), region = 126 }
 0x499   :  { %1761 = vsyncpa [#allocation4], 1 }
 0x49a   :  { %1763 = vsyncpa [#allocation4 + $0x1], 1 }
 0x49b   :  { %1764 = vsyncpa [#allocation7], 1 }
 0x49c   :  { %1766 = vsyncpa [#allocation7 + $0x1], 1 }
 0x49d   :  { %1767 = vsyncpa [#allocation10], 1 }
 0x49e   :  { %1768 = vsyncpa [#allocation13], 1 }
 0x49f   :  { %1769 = vsyncpa [#allocation5], 1 }
 0x4a0   :  { %1771 = vsyncpa [#allocation5 + $0x1], 1 }

// kernel: dpid_forward.5
= control target key start
LH: loop header
LB: loop body
LE: loop exit
PB: predicated region body
PF: predicated region fallthrough
CT: control target
= control target key end

     0   :  { %11 = vsyncpa [#allocation4], 0  ;;  %s4015_s0 = inlined_call_operand.hbm [shape: f32[2,3,324], index: 0, kind: input, shape index: {}]   ;;  %s4016_s1 = inlined_call_operand.hbm [shape: f32[1,324], index: 1, kind: input, shape index: {}]   ;;  %s4017_s2 = inlined_call_operand.hbm [shape: bf16[144,3], index: 2, kind: input, shape index: {}]   ;;  %s4018_s3 = inlined_call_operand.hbm [shape: f32[16,1], index: 3, kind: input, shape index: {}]   ;;  %s4019_s4 = inlined_call_operand.hbm [shape: bf16[144,16], index: 4, kind: input, shape index: {}]   ;;  %s4020_s5 = inlined_call_operand.hbm [shape: f32[16,1], index: 5, kind: input, shape index: {}]   ;;  %s4021_s6 = inlined_call_operand.hbm [shape: f32[2,16,324], index: 6, kind: output, shape index: {}]  }
   0x1   :  { %13 = vsyncpa [#allocation4 + $0x1], 0 }
   0x2   :  { %14 = vsyncpa [#allocation7], 0 }
   0x3   :  { %15 = vsyncpa [#allocation10], 0 }
   0x4   :  { %16 = vsyncpa [#allocation13], 0 }
   0x5   :  { %17 = vsyncpa [#allocation5], 0 }
   0x6   :  { %19 = vsyncpa [#allocation5 + $0x1], 0  ;;  %s3387_s21 = smov 0   ;;  %s3389_s22 = smov 0  }
   0x7   :  { %s3391_s23 = smov 0   ;;  %s3393_s24 = smov 0  }
   0x8 LB: > { %s3326_s25 = smov [#allocation6]   ;;  %s3408_s27 = sadd.s32 4294967295, %s3324_s24   ;;  %s3324_s24 = sphi %s3393_s24, %s4050_s24   ;;  %s3320_s23 = sphi %s3391_s23, %s4049_s23   ;;  %s3316_s22 = sphi %s3389_s22, %s4048_s22   ;;  %s3312_s21 = sphi %s3387_s21, %s4047_s21  }
   0x9   : > { %s200_s26 = sshll.u32 %s3326_s25, 4  ;;  %p2655_p0 = scmp.ge.s32.totalorder %s3324_s24, 1  ;;  %s3413_s26 = int_to_ptr.vmem [resolvable:$true] %s200_s26 }
   0xa   : > { %p4024_p1 = scmp.eq.s32.totalorder %s3408_s27, 0  ;;  %p187_p2 = scmp.lt.s32.totalorder %s3324_s24, 3 }
   0xb   : > { %s3327_s29 = smov [#allocation9]   ;;  %s3328_s8 = smov [#allocation8]  }
   0xc   : > { %p3415_p3 = pnand %p2655_p0, %p187_p2  ;;  %s223_s30 = sshll.u32 %s3327_s29, 4  ;;  %s3422_s30 = int_to_ptr.vmem [resolvable:$true] %s223_s30 }
   0xd   : > { %s210_s9 = sshll.u32 %s3328_s8, 4  ;;  %s3076_s12 = scalar_lea.hbm %s4016_s1, 48  ;;  %s3430_s9 = int_to_ptr.vmem [resolvable:$true] %s210_s9 }
   0xe   : > { %s4027_s28 = scalar_select %p3415_p3, 1, 0 }
   0xf   : > { %p2963_p5 = pneg %p3415_p3  ;;  %p3077_p7 = scmp.ne.s32.totalorder %s4016_s1, %s3076_s12 }
  0x10   : > { %p3083_p11 = scmp.lt.u32.totalorder %s3076_s12, %s4016_s1 }
  0x11   : > { %p3426_p6 = pnand %p2963_p5, %p4024_p1 }
  0x13   : > { %p3440_p8 = pneg %p3426_p6 }
  0x15   : > { %p3079_p9 = pnand %p3440_p8, %p3077_p7 }
  0x17   : > { %p3080_p10 = pneg %p3079_p9 }
  0x19   : > { %p3085_p12 = pnand %p3083_p11, %p3080_p10 }
  0x1b   : > { %3088 = shalt.err (!%p3085_p12)
}
  0x1c   : > { %s3089_s18 = scalar_lea.vmem %s3413_s26, 48  ;;  %s3096_s19 = scalar_lea.vmem %s3413_s26, 64 }
  0x1d   : > { %p3090_p13 = scmp.ne.s32.totalorder %s3413_s26, %s3089_s18  ;;  %p3097_p5 = scmp.lt.s32.totalorder %s3413_s26, %s3413_s26 }
  0x1e   : > { %p3098_p7 = scmp.lt.s32.totalorder %s3096_s19, %s3089_s18 }
  0x1f   : > { %p3092_p0 = pnand %p3090_p13, %p3440_p8 }
  0x20   : > { %p3099_p9 = por %p3098_p7, %p3097_p5 }
  0x21   : > { %p3093_p2 = pneg %p3092_p0 }
  0x23   : > { %p3100_p4 = pnand %p3099_p9, %p3093_p2 }
  0x25   : > { %3103 = shalt.err (!%p3100_p4)
}
  0x26   : > { %2966 = dma.hbm_to_vmem [thread:$0]  (!%p3426_p6), %s4016_s1, 48, %s3413_s26, [#allocation7]  }
  0x27   : > { %s3104_s10 = scalar_lea.hbm %s4018_s3, 256 }
  0x28   : > { %p3105_p10 = scmp.ne.s32.totalorder %s4018_s3, %s3104_s10  ;;  %p3111_p4 = scmp.lt.u32.totalorder %s3104_s10, %s4018_s3 }
  0x2a   : > { %p3107_p11 = pnand %p3105_p10, %p3440_p8 }
  0x2c   : > { %p3108_p12 = pneg %p3107_p11 }
  0x2e   : > { %p3113_p13 = pnand %p3111_p4, %p3108_p12 }
  0x30   : > { %3116 = shalt.err (!%p3113_p13)
}
  0x31   : > { %s3117_s26 = scalar_lea.vmem %s3422_s30, 256  ;;  %p3125_p7 = scmp.lt.s32.totalorder %s3422_s30, %s3422_s30 }
  0x32   : > { %p3118_p0 = scmp.ne.s32.totalorder %s3422_s30, %s3117_s26  ;;  %p3126_p9 = scmp.lt.s32.totalorder %s3117_s26, %s3117_s26 }
  0x34   : > { %p3120_p2 = pnand %p3118_p0, %p3440_p8  ;;  %p3127_p10 = por %p3126_p9, %p3125_p7 }
  0x36   : > { %p3121_p5 = pneg %p3120_p2 }
  0x38   : > { %p3128_p11 = pnand %p3127_p10, %p3121_p5 }
  0x3a   : > { %3131 = shalt.err (!%p3128_p11)
}
  0x3b   : > { %s4022_s16 = smov 128   ;;  %s4023_s17 = smov 8  }
  0x3c   : > { %2972 = dma.hbm_to_vmem [thread:$0]  (!%p3426_p6), %s4018_s3, 256, %s3422_s30, [#allocation10], %s4022_s16, %s4022_s16, %s4023_s17  }
  0x3d   : > { %s3132_s29 = scalar_lea.hbm %s4017_s2, 1152 }
  0x3e   : > { %p3133_p12 = scmp.ne.s32.totalorder %s4017_s2, %s3132_s29  ;;  %p3139_p0 = scmp.lt.u32.totalorder %s3132_s29, %s4017_s2 }
  0x40   : > { %p3135_p4 = pnand %p3133_p12, %p3440_p8 }
  0x42   : > { %p3136_p13 = pneg %p3135_p4 }
  0x44   : > { %p3141_p2 = pnand %p3139_p0, %p3136_p13 }
  0x46   : > { %3144 = shalt.err (!%p3141_p2)
}
  0x47   : > { %s3145_s30 = scalar_lea.vmem %s3430_s9, 1152  ;;  %p3153_p10 = scmp.lt.s32.totalorder %s3430_s9, %s3430_s9 }
  0x48   : > { %p3146_p5 = scmp.ne.s32.totalorder %s3430_s9, %s3145_s30  ;;  %p3154_p11 = scmp.lt.s32.totalorder %s3145_s30, %s3145_s30 }
  0x4a   : > { %p3148_p7 = pnand %p3146_p5, %p3440_p8  ;;  %p3155_p12 = por %p3154_p11, %p3153_p10 }
  0x4c   : > { %p3149_p9 = pneg %p3148_p7 }
  0x4e   : > { %p3156_p4 = pnand %p3155_p12, %p3149_p9 }
  0x50   : > { %3159 = shalt.err (!%p3156_p4)
}
  0x51   : > { %s3331_s13 = smov 64   ;;  %s3332_s14 = smov 4  }
  0x52   : > { %2969 = dma.hbm_to_vmem [thread:$0]  (!%p3426_p6), %s4017_s2, 1152, %s3430_s9, [#allocation7], %s3331_s13, %s3331_s13, %s3332_s14  }
  0x53   : > { %s3333_s19 = smov [#allocation11]   ;;  %s3334_s25 = smov [#allocation12]  }
  0x54   : > { %s236_s20 = sshll.u32 %s3333_s19, 4  ;;  %s249_s29 = sshll.u32 %s3334_s25, 4  ;;  %s237_s20 = int_to_ptr.vmem [resolvable:$true] %s236_s20  ;;  %s250_s29 = int_to_ptr.vmem [resolvable:$true] %s249_s29 }
  0x55   : > { %s3160_s11 = scalar_lea.hbm %s4019_s4, 1152 }
  0x56   : > { %p3161_p13 = scmp.ne.s32.totalorder %s4019_s4, %s3160_s11  ;;  %p3167_p5 = scmp.lt.u32.totalorder %s3160_s11, %s4019_s4 }
  0x58   : > { %p3163_p0 = pnand %p3161_p13, %p3440_p8 }
  0x5a   : > { %p3164_p2 = pneg %p3163_p0 }
  0x5c   : > { %p3169_p7 = pnand %p3167_p5, %p3164_p2 }
  0x5e   : > { %3172 = shalt.err (!%p3169_p7)
}
  0x5f   : > { %s3173_s9 = scalar_lea.vmem %s237_s20, 1152  ;;  %p3181_p12 = scmp.lt.s32.totalorder %s237_s20, %s237_s20 }
  0x60   : > { %p3174_p9 = scmp.ne.s32.totalorder %s237_s20, %s3173_s9  ;;  %p3182_p4 = scmp.lt.s32.totalorder %s3173_s9, %s3173_s9 }
  0x62   : > { %p3176_p10 = pnand %p3174_p9, %p3440_p8  ;;  %p3183_p1 = por %p3182_p4, %p3181_p12 }
  0x64   : > { %p3177_p11 = pneg %p3176_p10 }
  0x66   : > { %p3184_p3 = pnand %p3183_p1, %p3177_p11 }
  0x68   : > { %3187 = shalt.err (!%p3184_p3)
}
  0x69   : > { %2975 = dma.hbm_to_vmem [thread:$0]  (!%p3426_p6), %s4019_s4, 1152, %s237_s20, [#allocation10], %s3331_s13, %s3331_s13, %s3332_s14  }
  0x6a   : > { %s3188_s19 = scalar_lea.hbm %s4020_s5, 256 }
  0x6b   : > { %p3189_p13 = scmp.ne.s32.totalorder %s4020_s5, %s3188_s19  ;;  %p3195_p3 = scmp.lt.u32.totalorder %s3188_s19, %s4020_s5 }
  0x6d   : > { %p3191_p0 = pnand %p3189_p13, %p3440_p8 }
  0x6f   : > { %p3192_p1 = pneg %p3191_p0 }
  0x71   : > { %p3197_p2 = pnand %p3195_p3, %p3192_p1 }
  0x73   : > { %3200 = shalt.err (!%p3197_p2)
}
  0x74   : > { %s3201_s12 = scalar_lea.vmem %s250_s29, 256  ;;  %p3209_p10 = scmp.lt.s32.totalorder %s250_s29, %s250_s29 }
  0x75   : > { %p3202_p5 = scmp.ne.s32.totalorder %s250_s29, %s3201_s12  ;;  %p3210_p11 = scmp.lt.s32.totalorder %s3201_s12, %s3201_s12 }
  0x77   : > { %p3204_p7 = pnand %p3202_p5, %p3440_p8  ;;  %p3211_p12 = por %p3210_p11, %p3209_p10 }
  0x79   : > { %p3205_p9 = pneg %p3204_p7 }
  0x7b   : > { %p3212_p4 = pnand %p3211_p12, %p3205_p9 }
  0x7d   : > { %3215 = shalt.err (!%p3212_p4)
}
  0x7e   : > { %s4030_s13 = smov 8   ;;  %s4031_s14 = smov 128  }
  0x7f   : > { %2978 = dma.hbm_to_vmem [thread:$0]  (!%p3426_p6), %s4020_s5, 256, %s250_s29, [#allocation13], %s4031_s14, %s4031_s14, %s4030_s13  }
  0x80   : > { %s2654_s7 = sadd.s32 4294967294, %s3324_s24   ;;  %s3552_s15 = sadd.s32 1, %s3324_s24  }
  0x81   : > { %s32_s9 = sadd.s32 1, %s3320_s23  ;;  %s29_s26 = ssub.s32 %s3324_s24, %s3552_s15 }
  0x82   : > { %p39_p8 = scmp.ne.s32.totalorder %s3320_s23, %s3316_s22  ;;  %p30_p13 = scmp.eq.s32.totalorder %s29_s26, 0 }
  0x83   : > { %p40_p0 = scmp.eq.s32.totalorder %s3324_s24, 0  ;;  %p45_p1 = scmp.ne.s32.totalorder %s3316_s22, %s3312_s21 }
  0x84   : > { %p174_p3 = scmp.eq.s32.totalorder %s3408_s27, 1  ;;  %p4032_p5 = scmp.eq.s32.totalorder %s3408_s27, 0 }
  0x85   : > { %s3564_s18 = scalar_select %p30_p13, %s3320_s23, %s32_s9  }
  0x86   : > { %p41_p2 = por %p40_p0, %p39_p8  ;;  %p3568_p7 = por %p4032_p5, %p45_p1 }
  0x87   : > { %p3572_p6 = por %p174_p3, %p39_p8  ;;  %p180_p9 = scmp.eq.s32.totalorder %s2654_s7, 1 }
  0x88   : > { %p2992_p10 = scmp.lt.s32.totalorder %s3324_s24, 2  ;;  %s263_s17 = sand.u32 1, %s3320_s23  }
  0x89   : > { %s4034_s29 = scalar_select %p3572_p6, 1, 0 }
  0x8a   : > { %p3578_p11 = por %p180_p9, %p45_p1  ;;  %s2934_s25 = smul.u32 12, %s263_s17 }
  0x8b   : > { %p3582_p12 = pnand %p2992_p10, %p41_p2  ;;  %s2935_s10 = smul.u32 192, %s3324_s24 }
  0x8c   : > { %s4035_s19 = scalar_select %p3578_p11, 1, 0 }
  0x8d   : > { %s3590_s13 = scalar_lea.hbm %s4015_s0, %s2935_s10  ;;  %s267_s14 = scalar_lea.vmem [#allocation3], %s2934_s25 }
  0x8e   : > { %s275_s20 = sshll.u32 %s267_s14, 4  ;;  %s264_s30 = scalar_lea.sflag [#allocation4], %s263_s17  ;;  %s3592_s20 = int_to_ptr.vmem [resolvable:$true] %s275_s20 }
  0x8f   : > { %s3216_s7 = scalar_lea.hbm %s3590_s13, 192  ;;  %p3218_p8 = pneg %p3582_p12 }
  0x90   : > { %p3217_p4 = scmp.ne.s32.totalorder %s3590_s13, %s3216_s7  ;;  %s3221_s10 = scalar_lea.hbm %s4015_s0, 384 }
  0x91   : > { %p3222_p1 = scmp.lt.u32.totalorder %s3590_s13, %s4015_s0  ;;  %p3223_p3 = scmp.lt.u32.totalorder %s3221_s10, %s3216_s7 }
  0x92   : > { %p3219_p13 = pnand %p3218_p8, %p3217_p4  ;;  %p3225_p5 = scmp.lt.u32.totalorder %s3216_s7, %s3590_s13 }
  0x93   : > { %p3224_p2 = por %p3223_p3, %p3222_p1 }
  0x94   : > { %p3220_p0 = pneg %p3219_p13 }
  0x95   : > { %p3226_p9 = por %p3225_p5, %p3224_p2 }
  0x97   : > { %p3227_p10 = pnand %p3226_p9, %p3220_p0 }
  0x99   : > { %3230 = shalt.err (!%p3227_p10)
}
  0x9a   : > { %s3231_s17 = scalar_lea.vmem %s3592_s20, 192  ;;  %s3335_s25 = smov [#allocation3]  }
  0x9b   : > { %p3232_p4 = scmp.ne.s32.totalorder %s3592_s20, %s3231_s17  ;;  %s3236_s14 = sshll.u32 %s3335_s25, 4  ;;  %s3237_s14 = int_to_ptr.vmem [resolvable:$false] %s3236_s14 }
  0x9c   : > { %s3238_s9 = scalar_lea.vmem %s3237_s14, 384  ;;  %p3239_p6 = scmp.lt.s32.totalorder %s3592_s20, %s3237_s14 }
  0x9d   : > { %p3234_p13 = pnand %p3232_p4, %p3218_p8  ;;  %p3240_p1 = scmp.lt.s32.totalorder %s3238_s9, %s3231_s17 }
  0x9f   : > { %p3235_p11 = pneg %p3234_p13  ;;  %p3241_p3 = por %p3240_p1, %p3239_p6 }
  0xa1   : > { %p3242_p2 = pnand %p3241_p3, %p3235_p11 }
  0xa3   : > { %3245 = shalt.err (!%p3242_p2)
}
  0xa4   : > { %2982 = dma.hbm_to_vmem [thread:$0]  (!%p3582_p12), %s3590_s13, 192, %s3592_s20, %s264_s30  }
  0xa5   : > { %p4037_p0 = scmp.ne.s32.totalorder %s4027_s28, 0 }
  0xa6   : > { %s3622_s7 = sand.u32 (!%p4037_p0), 1, %s3316_s22  }
  0xa7   : > { %284 = sbr.rel (%p4037_p0) target bundleno = 1331 (0x533), region = 44  ;;  %s287_s10 = scalar_lea.sflag (!%p4037_p0), [#allocation4], %s3622_s7 }
  0xa8   : > { %s2936_s26 = smul.u32 (!%p4037_p0), 12, %s3622_s7 }
  0xaa   : > { %s290_s11 = scalar_lea.vmem (!%p4037_p0), [#allocation3], %s2936_s26 }
  0xae   : > { %3291 = dma.done.wait (%p3568_p7), %s287_s10, 192  }
  0xaf   : > { %3293 = vsyncadd (%p3568_p7), %s287_s10, 4294967104  ;;  %p4038_p6 = scmp.eq.s32.totalorder %s3408_s27, 0 }
  0xb1   : > { %3295 = dma.done.wait (%p4038_p6), [#allocation7], 1200   ;;  %p4039_p11 = pmov %p4038_p6 }
  0xb2   : > { %p4040_p12 = pmov %p4038_p6 }
  0xb3   : > { %3297 = vsyncadd (%p4039_p11), [#allocation7], 4294966096 }
  0xb4   : > { %3299 = dma.done.wait (%p4040_p12), [#allocation10], 1408   ;;  %p4041_p8 = pmov %p4038_p6 }
  0xb5   : > { %p4042_p5 = pmov %p4038_p6 }
  0xb6   : > { %3301 = vsyncadd (%p4041_p8), [#allocation10], 4294965888 }
  0xb7   : > { %3303 = dma.done.wait (%p4042_p5), [#allocation13], 256   ;;  %p4043_p9 = pmov %p4042_p5 }
  0xb8   : > { %v3336_v0 = vmov 0.0   ;;  %v341_v1 = vld [vmem:[%s290_s11] sm:$0x77]  ;;  %vm3337_vm0 = vmmov 0   ;;  %v342_v4 = vld [vmem:[%s290_s11 + $0x8] sm:$0x7]  ;;  %v1417_v10 = vlaneseq }
  0xb9   : > { %3305 = vsyncadd (%p4043_p9), [#allocation13], 4294967040  ;;  %2762 = vmatprep.subr.bf16.mxu1 %v3336_v0  ;;  %2764 = vmatprep.mubr.msk.bf16.mxu1 %vm3337_vm0, %v3336_v0  ;;  %v3645_v2 = vpack.c.bf16 %v341_v1, %v341_v1  ;;  %v344_v3 = vcombine.high %v341_v1, %v341_v1  ;;  %s3338_s28 = smov 127   ;;  %v3339_v6 = vmov 0   ;;  %v3656_v7 = vpack.c.bf16 %v342_v4, %v342_v4  ;;  %s3340_s16 = smov 126   ;;  %v1399_v8 = vld [vmem:[#allocation9 + $0x8] sm:$0xff] }
  0xba   : > { %419 = vmatprep.mubr.bf16.mxu0 %v3339_v6  ;;  %3056 = vset.pattern.permute.xlu1 %v3339_v6  ;;  %s3341_s8 = smov 110   ;;  %s3342_s13 = smov 109   ;;  %v1398_v9 = vld [vmem:[#allocation9] sm:$0xff]  ;;  %v1418_v11 = vshrl.u32 %v1417_v10, 7  ;;  %v340_v12 = vld [vmem:[#allocation6] sm:$0x7] }
  0xbb   : > { %361 = vrot.lane.b32.xlu1 %v3645_v2, %s3338_s28  ;;  %v3649_v5 = vpack.c.bf16 %v344_v3, %v344_v3  ;;  %3055 = vset.pattern.permute.xlu0 %v3339_v6  ;;  %s3343_s20 = smov 108   ;;  %s3344_s30 = smov 92   ;;  %vm374_vm1 = vcmask 1040384   ;;  %vm367_vm2 = vcmask 1039360   ;;  %vm375_vm3 = vcmask 1041408   ;;  %v3058_v29 = vld [vmem:[#allocation8 + $0x8] sm:$0xff]  }
  0xbc   : > { %s3345_s12 = smov 91   ;;  %s3346_s17 = smov 90   ;;  %v1419_v13 = vsub.s32 0, %v1418_v11  ;;  %v1427_v14 = vsub.s32 2, %v1418_v11  ;;  %v1423_v15 = vsub.s32 1, %v1418_v11  ;;  %v3347_v21 = vmov 65535  }
  0xbd   : > { %363 = vrot.lane.b32.xlu0 %v3649_v5, %s3338_s28  ;;  %v376_v22 = vsel %vm374_vm1, 4294967295, %v3347_v21  ;;  %vm585_vm4 = vcmask 1031168   ;;  %vm370_vm5 = vcmask 23552   ;;  %v3059_v39 = vld [vmem:[#allocation8] sm:$0xff]   ;;  %vm703_vm6 = vcmask 900096   ;;  %v3060_v46 = vld [vmem:[#allocation8 + $0x10] sm:$0xff]  }
  0xbe   : > { %v1420_v16 = vrot.slane %v340_v12, %v1419_v13  ;;  %v1424_v17 = vrot.slane %v340_v12, %v1423_v15  ;;  %v1428_v18 = vrot.slane %v340_v12, %v1427_v14  ;;  %v3706_v25 = vsel %vm375_vm3, %v376_v22, 0  ;;  %v3061_v53 = vld [vmem:[#allocation8 + $0x18] sm:$0xff]   ;;  %v3062_v61 = vld [vmem:[#allocation8 + $0x20] sm:$0xff]   ;;  %v3064_v14 = vld [vmem:[#allocation8 + $0x30] sm:$0xff]   ;;  %s3348_s25 = smov 19   ;;  %s2937_s14 = smul.u32 48, %s3622_s7 }
  0xbf   : > { %581 = vrot.lane.b32.xlu1 %v3649_v5, %s3340_s16  ;;  %v483_v30 = vand.u32 %v3706_v25, %v3649_v5  ;;  %v486_v33 = vand.u32 %v3706_v25, %v3656_v7  ;;  %v480_v35 = vand.u32 %v3706_v25, %v3645_v2  ;;  %vm821_vm7 = vcmask 891904   ;;  %v3065_v21 = vld [vmem:[#allocation8 + $0x38] sm:$0xff]   ;;  %s2938_s26 = smul.u32 768, %s3408_s27  ;;  %s2520_s27 = scalar_lea.sflag [#allocation5], %s3622_s7 }
  0xc0   : > { %vm939_vm8 = vcmask 883712   ;;  %vm1057_vm9 = vcmask 752640   ;;  %vm1175_vm10 = vcmask 744448   ;;  %vm1293_vm11 = vcmask 736256   ;;  %s3924_s9 = scalar_lea.vmem [#allocation14], %s2937_s14  ;;  %p4044_p10 = scmp.ne.s32.totalorder %s4034_s29, 0 }
  0xc1   : > { %365 = vrot.lane.b32.xlu0 %v3656_v7, %s3338_s28  ;;  %vm1447_vm12 = vcmask 154624   ;;  %vm1449_vm13 = vcmask 556424   ;;  %vm1469_vm14 = vcmask 1047704   ;;  %vm1472_vm15 = vcmask 400384   ;;  %s2533_s10 = sshll.u32 %s3924_s9, 4  ;;  %s3968_s10 = int_to_ptr.vmem [resolvable:$true] %s2533_s10 }
  0xc2   : > { %1448 = vst.msk [vmem:[#allocation2] sm:$0xff] %vm1447_vm12, %v3339_v6  ;;  %vm1500_vm1 = vcmask 130048   ;;  %2481 = vst.msk [vmem:[%s3924_s9] sm:$0xff] %vm1447_vm12, %v3336_v0 }
  0xc3   : > { %579 = vrot.lane.b32.xlu1 %v3645_v2, %s3340_s16  ;;  %1450 = vst.msk [vmem:[#allocation2 + $0x10] sm:$0xff] %vm1449_vm13, %v3339_v6  ;;  %2483 = vst.msk [vmem:[%s3924_s9 + $0x10] sm:$0xff] %vm1449_vm13, %v3336_v0 }
  0xc4   : > { %2482 = vst.msk [vmem:[%s3924_s9 + $0x18] sm:$0xff] %vm1447_vm12, %v3336_v0 }
  0xc5   : > { %583 = vrot.lane.b32.xlu0 %v3656_v7, %s3340_s16  ;;  %2484 = vst.msk [vmem:[%s3924_s9 + $0x28] sm:$0xff] %vm1449_vm13, %v3336_v0 }
  0xc7   : > { %701 = vrot.lane.b32.xlu1 %v3656_v7, %s3341_s8 }
  0xc9   : > { %699 = vrot.lane.b32.xlu0 %v3649_v5, %s3341_s8 }
  0xcb   : > { %817 = vrot.lane.b32.xlu1 %v3649_v5, %s3342_s13 }
  0xcd   : > { %697 = vrot.lane.b32.xlu0 %v3645_v2, %s3341_s8 }
  0xcf   : > { %815 = vrot.lane.b32.xlu1 %v3645_v2, %s3342_s13 }
  0xd1   : > { %819 = vrot.lane.b32.xlu0 %v3656_v7, %s3342_s13 }
  0xd3   : > { %937 = vrot.lane.b32.xlu1 %v3656_v7, %s3343_s20 }
  0xd5   : > { %935 = vrot.lane.b32.xlu0 %v3649_v5, %s3343_s20 }
  0xd7   : > { %1053 = vrot.lane.b32.xlu1 %v3649_v5, %s3344_s30 }
  0xd9   : > { %933 = vrot.lane.b32.xlu0 %v3645_v2, %s3343_s20 }
  0xdb   : > { %1051 = vrot.lane.b32.xlu1 %v3645_v2, %s3344_s30 }
  0xdd   : > { %1055 = vrot.lane.b32.xlu0 %v3656_v7, %s3344_s30 }
  0xdf   : > { %1173 = vrot.lane.b32.xlu1 %v3656_v7, %s3345_s12 }
  0xe1   : > { %1171 = vrot.lane.b32.xlu0 %v3649_v5, %s3345_s12 }
  0xe3   : > { %1289 = vrot.lane.b32.xlu1 %v3649_v5, %s3346_s17 }
  0xe5   : > { %1169 = vrot.lane.b32.xlu0 %v3645_v2, %s3345_s12 }
  0xe7   : > { %1287 = vrot.lane.b32.xlu1 %v3645_v2, %s3346_s17 }
  0xe9   : > { %1291 = vrot.lane.b32.xlu0 %v3656_v7, %s3346_s17 }
  0xeb   : > { %1407 = vperm.xlu1 %3056, %v1399_v8   ;;  %v3063_v8 = vld [vmem:[#allocation8 + $0x28] sm:$0xff]  }
  0xed   : > { %1402 = vperm.xlu0 %3055, %v1398_v9  }
  0xef   : > { %1429 = vrot.lane.b32.xlu1 %v1420_v16, %s3342_s13 }
  0xf1   : > { %1431 = vrot.lane.b32.xlu0 %v1424_v17, %s3342_s13 }
  0xf3   : > { %1433 = vrot.lane.b32.xlu1 %v1428_v18, %s3342_s13 }
 0x12d   : > { %v362_v20 = vpop.permute.xlu1 %361 }
 0x12f   : > { %v364_v19 = vpop.permute.xlu0 %363 }
 0x130   : > { %v368_v23 = vsel %vm367_vm2, %v362_v20, %v364_v19 }
 0x131   : > { %v582_v31 = vpop.permute.xlu1 %581  ;;  %v379_v32 = vand.u32 %v3706_v25, %v368_v23 }
 0x133   : > { %v366_v24 = vpop.permute.xlu0 %365 }
 0x134   : > { %v385_v26 = vand.u32 %v3706_v25, %v366_v24  ;;  %v369_v27 = vsel %vm367_vm2, %v364_v19, %v366_v24 }
 0x135   : > { %v382_v28 = vand.u32 %v3706_v25, %v369_v27  ;;  %v580_v38 = vpop.permute.xlu1 %579 }
 0x136   : > { %2763 = vmatpush3.bf16.msra.mxu1 %v385_v26  ;;  %v586_v42 = vsel %vm585_vm4, %v580_v38, %v582_v31 }
 0x137   : > { %387 = vmatprep.subr.bf16.mxu0 %v382_v28  ;;  %2768 = vmatprep.subr.bf16.mxu1 %v3336_v0  ;;  %v584_v34 = vpop.permute.xlu0 %583  ;;  %v592_v45 = vand.u32 %v586_v42, %v3706_v25  ;;  %v3066_v28 = vld [vmem:[#allocation8 + $0x40] sm:$0xff]  }
 0x138   : > { %388 = vmatpush1.bf16.msra.mxu0 %v379_v32  ;;  %v587_v36 = vsel %vm585_vm4, %v582_v31, %v584_v34  ;;  %v598_v40 = vand.u32 %v584_v34, %v3706_v25 }
 0x139   : > { %2765 = vmatmul.mubr.msk.bf16.vlgmr.msra.gmra.mrb[0].mxu1 %vm370_vm5, %v3058_v29  ;;  %488 = vmatprep.subr.bf16.mxu0 %v483_v30  ;;  %v595_v37 = vand.u32 %v587_v36, %v3706_v25  ;;  %v702_v43 = vpop.permute.xlu1 %701 }
 0x13a   : > { %2769 = vmatpush3.bf16.msra.mxu1 %v486_v33  ;;  %2770 = vmatprep.mubr.msk.bf16.mxu1 %vm3337_vm0, %v3336_v0  ;;  %v716_v49 = vand.u32 %v702_v43, %v3706_v25 }
 0x13b   : > { %2670 = vmatmul.mubr.msk.bf16.vlgmr.msra.gmra.mrb[0].mxu0 %vm370_vm5, %v3058_v29  ;;  %2774 = vmatprep.subr.bf16.mxu1 %v3336_v0  ;;  %v700_v41 = vpop.permute.xlu0 %699 }
 0x13c   : > { %489 = vmatpush1.bf16.msra.mxu0 %v480_v35  ;;  %520 = vmatprep.mubr.bf16.mxu0 %v3339_v6  ;;  %v705_v44 = vsel %vm703_vm6, %v700_v41, %v702_v43 }
 0x13d   : > { %600 = vmatprep.subr.bf16.mxu0 %v595_v37  ;;  %v713_v47 = vand.u32 %v705_v44, %v3706_v25  ;;  %v818_v50 = vpop.permute.xlu1 %817 }
 0x13f   : > { %v698_v48 = vpop.permute.xlu0 %697 }
 0x140   : > { %v704_v52 = vsel %vm703_vm6, %v698_v48, %v700_v41 }
 0x141   : > { %2771 = vmatmul.mubr.msk.bf16.vlgmr.msra.gmra.mrb[4].mxu1 %vm370_vm5, %v3059_v39  ;;  %v816_v54 = vpop.permute.xlu1 %815  ;;  %v710_v58 = vand.u32 %v704_v52, %v3706_v25 }
 0x142   : > { %2775 = vmatpush3.bf16.msra.mxu1 %v598_v40  ;;  %2776 = vmatprep.mubr.msk.bf16.mxu1 %vm3337_vm0, %v3336_v0  ;;  %v822_v2 = vsel %vm821_vm7, %v816_v54, %v818_v50 }
 0x143   : > { %2780 = vmatprep.subr.bf16.mxu1 %v3336_v0  ;;  %v820_v51 = vpop.permute.xlu0 %819  ;;  %v828_v5 = vand.u32 %v822_v2, %v3706_v25 }
 0x144   : > { %v823_v55 = vsel %vm821_vm7, %v818_v50, %v820_v51  ;;  %v834_v56 = vand.u32 %v820_v51, %v3706_v25 }
 0x145   : > { %v831_v59 = vand.u32 %v823_v55, %v3706_v25  ;;  %v938_v60 = vpop.permute.xlu1 %937 }
 0x146   : > { %v952_v63 = vand.u32 %v938_v60, %v3706_v25 }
 0x147   : > { %2673 = vmatmul.mubr.msk.bf16.vlgmr.msra.gmra.mrb[0].mxu0 %vm370_vm5, %v3059_v39  ;;  %v936_v57 = vpop.permute.xlu0 %935 }
 0x148   : > { %601 = vmatpush1.bf16.msra.mxu0 %v592_v45  ;;  %632 = vmatprep.mubr.bf16.mxu0 %v3339_v6  ;;  %v941_v3 = vsel %vm939_vm8, %v936_v57, %v938_v60 }
 0x149   : > { %2777 = vmatmul.mubr.msk.bf16.vlgmr.msra.gmra.mrb[8].mxu1 %vm370_vm5, %v3060_v46  ;;  %718 = vmatprep.subr.bf16.mxu0 %v713_v47  ;;  %v1054_v1 = vpop.permute.xlu1 %1053  ;;  %v949_v7 = vand.u32 %v941_v3, %v3706_v25 }
 0x14a   : > { %2781 = vmatpush3.bf16.msra.mxu1 %v716_v49  ;;  %2782 = vmatprep.mubr.msk.bf16.mxu1 %vm3337_vm0, %v3336_v0 }
 0x14b   : > { %2786 = vmatprep.subr.bf16.mxu1 %v3336_v0  ;;  %v934_v62 = vpop.permute.xlu0 %933 }
 0x14c   : > { %v940_v13 = vsel %vm939_vm8, %v934_v62, %v936_v57 }
 0x14d   : > { %v1052_v9 = vpop.permute.xlu1 %1051  ;;  %v946_v18 = vand.u32 %v940_v13, %v3706_v25 }
 0x14e   : > { %v1058_v23 = vsel %vm1057_vm9, %v1052_v9, %v1054_v1 }
 0x14f   : > { %v1056_v4 = vpop.permute.xlu0 %1055  ;;  %v1064_v26 = vand.u32 %v1058_v23, %v3706_v25 }
 0x150   : > { %v1070_v10 = vand.u32 %v1056_v4, %v3706_v25  ;;  %v1059_v16 = vsel %vm1057_vm9, %v1054_v1, %v1056_v4 }
 0x151   : > { %2783 = vmatmul.mubr.msk.bf16.vlgmr.msra.gmra.mrb[12].mxu1 %vm370_vm5, %v3061_v53  ;;  %v1174_v12 = vpop.permute.xlu1 %1173  ;;  %v1067_v19 = vand.u32 %v1059_v16, %v3706_v25 }
 0x152   : > { %2787 = vmatpush3.bf16.msra.mxu1 %v834_v56  ;;  %2788 = vmatprep.mubr.msk.bf16.mxu1 %vm3337_vm0, %v3336_v0  ;;  %v1188_v17 = vand.u32 %v1174_v12, %v3706_v25 }
 0x153   : > { %2676 = vmatmul.mubr.msk.bf16.vlgmr.msra.gmra.mrb[0].mxu0 %vm370_vm5, %v3060_v46  ;;  %2792 = vmatprep.subr.bf16.mxu1 %v3336_v0  ;;  %v1172_v11 = vpop.permute.xlu0 %1171 }
 0x154   : > { %719 = vmatpush1.bf16.msra.mxu0 %v710_v58  ;;  %750 = vmatprep.mubr.bf16.mxu0 %v3339_v6  ;;  %v1177_v24 = vsel %vm1175_vm10, %v1172_v11, %v1174_v12 }
 0x155   : > { %836 = vmatprep.subr.bf16.mxu0 %v831_v59  ;;  %v1185_v27 = vand.u32 %v1177_v24, %v3706_v25  ;;  %v1290_v30 = vpop.permute.xlu1 %1289 }
 0x157   : > { %v1170_v15 = vpop.permute.xlu0 %1169 }
 0x158   : > { %v1176_v29 = vsel %vm1175_vm10, %v1170_v15, %v1172_v11 }
 0x159   : > { %2789 = vmatmul.mubr.msk.bf16.vlgmr.msra.gmra.mrb[16].mxu1 %vm370_vm5, %v3062_v61  ;;  %v1182_v32 = vand.u32 %v1176_v29, %v3706_v25  ;;  %v1288_v34 = vpop.permute.xlu1 %1287 }
 0x15a   : > { %2793 = vmatpush3.bf16.msra.mxu1 %v952_v63  ;;  %2794 = vmatprep.mubr.msk.bf16.mxu1 %vm3337_vm0, %v3336_v0  ;;  %v1294_v35 = vsel %vm1293_vm11, %v1288_v34, %v1290_v30 }
 0x15b   : > { %2798 = vmatprep.subr.bf16.mxu1 %v3336_v0  ;;  %v1292_v20 = vpop.permute.xlu0 %1291  ;;  %v1300_v36 = vand.u32 %v1294_v35, %v3706_v25 }
 0x15c   : > { %v1306_v22 = vand.u32 %v1292_v20, %v3706_v25  ;;  %v1295_v31 = vsel %vm1293_vm11, %v1290_v30, %v1292_v20 }
 0x15d   : > { %v1303_v33 = vand.u32 %v1295_v31, %v3706_v25 }
 0x15f   : > { %2679 = vmatmul.mubr.msk.bf16.vlgmr.msra.gmra.mrb[0].mxu0 %vm370_vm5, %v3061_v53 }
 0x160   : > { %837 = vmatpush1.bf16.msra.mxu0 %v828_v5  ;;  %868 = vmatprep.mubr.bf16.mxu0 %v3339_v6 }
 0x161   : > { %2795 = vmatmul.mubr.msk.bf16.vlgmr.msra.gmra.mrb[20].mxu1 %vm370_vm5, %v3063_v8  ;;  %954 = vmatprep.subr.bf16.mxu0 %v949_v7 }
 0x162   : > { %2799 = vmatpush3.bf16.msra.mxu1 %v1070_v10  ;;  %2800 = vmatprep.mubr.msk.bf16.mxu1 %vm3337_vm0, %v3336_v0 }
 0x163   : > { %2804 = vmatprep.subr.bf16.mxu1 %v3336_v0 }
 0x169   : > { %2801 = vmatmul.mubr.msk.bf16.vlgmr.msra.gmra.mrb[24].mxu1 %vm370_vm5, %v3064_v14 }
 0x16a   : > { %2805 = vmatpush3.bf16.msra.mxu1 %v1188_v17  ;;  %2806 = vmatprep.mubr.msk.bf16.mxu1 %vm3337_vm0, %v3336_v0  ;;  %v1408_v15 = vpop.permute.xlu1 %1407 }
 0x16b   : > { %2682 = vmatmul.mubr.msk.bf16.vlgmr.msra.gmra.mrb[0].mxu0 %vm370_vm5, %v3062_v61  ;;  %2810 = vmatprep.subr.bf16.mxu1 %v3336_v0 }
 0x16c   : > { %955 = vmatpush1.bf16.msra.mxu0 %v946_v18  ;;  %986 = vmatprep.mubr.bf16.mxu0 %v3339_v6  ;;  %v1403_v23 = vpop.permute.xlu0 %1402 }
 0x16d   : > { %1072 = vmatprep.subr.bf16.mxu0 %v1067_v19 }
 0x171   : > { %2807 = vmatmul.mubr.msk.bf16.vlgmr.msra.gmra.mrb[28].mxu1 %vm370_vm5, %v3065_v21 }
 0x172   : > { %2811 = vmatpush3.bf16.msra.mxu1 %v1306_v22  ;;  %2812 = vmatprep.mubr.msk.bf16.mxu1 %vm3337_vm0, %v3336_v0 }
 0x173   : > { %2816 = vmatprep.subr.bf16.mxu1 %v3336_v0 }
 0x177   : > { %2685 = vmatmul.mubr.msk.bf16.vlgmr.msra.gmra.mrb[0].mxu0 %vm370_vm5, %v3063_v8 }
 0x178   : > { %1073 = vmatpush1.bf16.msra.mxu0 %v1064_v26  ;;  %1104 = vmatprep.mubr.bf16.mxu0 %v3339_v6 }
 0x179   : > { %2813 = vmatmul.mubr.msk.bf16.vlgmr.msra.gmra.mrb[32].mxu1 %vm370_vm5, %v3066_v28  ;;  %1190 = vmatprep.subr.bf16.mxu0 %v1185_v27 }
 0x17a   : > { %2818 = vmatprep.mubr.msk.bf16.mxu1 %vm3337_vm0, %v3336_v0 }
 0x183   : > { %2688 = vmatmul.mubr.msk.bf16.vlgmr.msra.gmra.mrb[0].mxu0 %vm370_vm5, %v3064_v14 }
 0x184   : > { %1191 = vmatpush1.bf16.msra.mxu0 %v1182_v32  ;;  %1222 = vmatprep.mubr.bf16.mxu0 %v3339_v6 }
 0x185   : > { %1308 = vmatprep.subr.bf16.mxu0 %v1303_v33 }
 0x18f   : > { %2691 = vmatmul.mubr.msk.bf16.vlgmr.msra.gmra.mrb[0].mxu0 %vm370_vm5, %v3065_v21  ;;  %v1430_v21 = vpop.permute.xlu1 %1429 }
 0x190   : > { %1309 = vmatpush1.bf16.msra.mxu0 %v1300_v36  ;;  %1340 = vmatprep.mubr.bf16.mxu0 %v3339_v6  ;;  %v1432_v36 = vpop.permute.xlu0 %1431 }
 0x193   : > { %v3809_v31 = vpop.permute.xlu1 %1433 }
 0x19b   : > { %2694 = vmatmul.mubr.msk.bf16.vlgmr.msra.gmra.mrb[0].mxu0 %vm370_vm5, %v3066_v28 }
 0x19c   : > { %1536 = vmatprep.mubr.bf16.mxu0 %v3339_v6 }
 0x20c   : > { %v464_v37 = vpop.f32.mrb[0].mxu1 }
 0x20d   : > { %v2766_v38 = vpop.f32.mrb[1].mxu1 }
 0x20e   : > { %v467_v39 = vpop.f32.mrb[2].mxu1 }
 0x20f   : > { %v2767_v40 = vpop.f32.mrb[3].mxu1 }
 0x210   : > { %v3816_v40 = vsel %vm821_vm7, %v1430_v21, %v1432_v36 }
 0x214   : > { %v565_v41 = vpop.f32.mrb[4].mxu1 }
 0x215   : > { %v566_v42 = vadd.f32 %v565_v41, %v464_v37  ;;  %v2772_v25 = vpop.f32.mrb[5].mxu1 }
 0x216   : > { %v568_v43 = vpop.f32.mrb[6].mxu1  ;;  %v3820_v25 = vsel %vm821_vm7, %v1432_v36, %v3809_v31 }
 0x217   : > { %v569_v44 = vadd.f32 %v568_v43, %v467_v39  ;;  %v2773_v45 = vpop.f32.mrb[7].mxu1 }
 0x21c   : > { %v677_v46 = vpop.f32.mrb[8].mxu1 }
 0x21d   : > { %v686_v47 = vadd.f32 %v677_v46, %v566_v42  ;;  %v2778_v48 = vpop.f32.mrb[9].mxu1 }
 0x21e   : > { %v680_v49 = vpop.f32.mrb[10].mxu1 }
 0x21f   : > { %v689_v50 = vadd.f32 %v680_v49, %v569_v44  ;;  %v2779_v51 = vpop.f32.mrb[11].mxu1 }
 0x224   : > { %v795_v52 = vpop.f32.mrb[12].mxu1 }
 0x225   : > { %v804_v53 = vadd.f32 %v795_v52, %v686_v47  ;;  %v2784_v54 = vpop.f32.mrb[13].mxu1 }
 0x226   : > { %v798_v55 = vpop.f32.mrb[14].mxu1 }
 0x227   : > { %v807_v56 = vadd.f32 %v798_v55, %v689_v50  ;;  %v2785_v57 = vpop.f32.mrb[15].mxu1 }
 0x22c   : > { %v913_v58 = vpop.f32.mrb[16].mxu1 }
 0x22d   : > { %v922_v59 = vadd.f32 %v913_v58, %v804_v53  ;;  %v2790_v60 = vpop.f32.mrb[17].mxu1 }
 0x22e   : > { %v916_v61 = vpop.f32.mrb[18].mxu1  ;;  %v2458_v60 = vld [vmem:[#allocation12 + $0x8] sm:$0xff] }
 0x22f   : > { %v925_v62 = vadd.f32 %v916_v61, %v807_v56  ;;  %v2791_v63 = vpop.f32.mrb[19].mxu1 }
 0x234   : > { %v1031_v1 = vpop.f32.mrb[20].mxu1 }
 0x235   : > { %v1040_v2 = vadd.f32 %v1031_v1, %v922_v59  ;;  %v2796_v3 = vpop.f32.mrb[21].mxu1  ;;  %v2457_v59 = vld [vmem:[#allocation12] sm:$0xff] }
 0x236   : > { %v1034_v4 = vpop.f32.mrb[22].mxu1  ;;  %v3067_v1 = vld [vmem:[#allocation11 + $0x8] sm:$0xff]  }
 0x237   : > { %v1043_v5 = vadd.f32 %v1034_v4, %v925_v62  ;;  %v2797_v7 = vpop.f32.mrb[23].mxu1 }
 0x23c   : > { %v1149_v8 = vpop.f32.mrb[24].mxu1 }
 0x23d   : > { %v1158_v9 = vadd.f32 %v1149_v8, %v1040_v2  ;;  %v2802_v10 = vpop.f32.mrb[25].mxu1  ;;  %v3068_v8 = vld [vmem:[#allocation11] sm:$0xff]  }
 0x23e   : > { %v1152_v11 = vpop.f32.mrb[26].mxu1 }
 0x23f   : > { %v1161_v12 = vadd.f32 %v1152_v11, %v1043_v5  ;;  %v2803_v13 = vpop.f32.mrb[27].mxu1 }
 0x244   : > { %v1267_v14 = vpop.f32.mrb[28].mxu1 }
 0x245   : > { %v1276_v16 = vadd.f32 %v1267_v14, %v1158_v9  ;;  %v2808_v17 = vpop.f32.mrb[29].mxu1 }
 0x246   : > { %v1270_v18 = vpop.f32.mrb[30].mxu1 }
 0x247   : > { %v1279_v19 = vadd.f32 %v1270_v18, %v1161_v12  ;;  %v2809_v20 = vpop.f32.mrb[31].mxu1  ;;  %v3069_v12 = vld [vmem:[#allocation11 + $0x10] sm:$0xff]   ;;  %v3070_v18 = vld [vmem:[#allocation11 + $0x18] sm:$0xff]  }
 0x24c   : > { %v1385_v22 = vpop.f32.mrb[32].mxu1 }
 0x24d   : > { %v1394_v24 = vadd.f32 %v1385_v22, %v1276_v16  ;;  %v2814_v26 = vpop.f32.mrb[33].mxu1 }
 0x24e   : > { %v1388_v27 = vpop.f32.mrb[34].mxu1 }
 0x24f   : > { %v1397_v28 = vadd.f32 %v1388_v27, %v1279_v19  ;;  %v1412_v29 = vadd.f32 %v1403_v23, %v1394_v24  ;;  %v2815_v30 = vpop.f32.mrb[35].mxu1 }
 0x251   : > { %v1415_v32 = vadd.f32 %v1408_v15, %v1397_v28  ;;  %v1443_v33 = vmul.f32 %v3809_v31, %v1412_v29  ;;  %v3072_v28 = vld [vmem:[#allocation11 + $0x28] sm:$0xff]  }
 0x253   : > { %v1446_v34 = vmul.f32 %v3809_v31, %v1415_v32 }
 0x255   : > { %v1453_v35 = vpack.c.bf16 %v1446_v34, %v1443_v33 }
 0x26e   : > { %v1342_v37 = vpop.f32.mrb[0].mxu0 }
 0x26f   : > { %v1410_v38 = vadd.f32 %v1403_v23, %v1342_v37  ;;  %v1344_v39 = vpop.f32.mrb[1].mxu0 }
 0x270   : > { %v1411_v41 = vadd.f32 %v1403_v23, %v1344_v39  ;;  %v1346_v42 = vpop.f32.mrb[2].mxu0  ;;  %v3071_v23 = vld [vmem:[#allocation11 + $0x20] sm:$0xff]  }
 0x271   : > { %v1413_v43 = vadd.f32 %v1408_v15, %v1346_v42  ;;  %v1348_v44 = vpop.f32.mrb[3].mxu0  ;;  %v1441_v46 = vmul.f32 %v3816_v40, %v1410_v38 }
 0x272   : > { %v1414_v45 = vadd.f32 %v1408_v15, %v1348_v44  ;;  %v1442_v48 = vmul.f32 %v3820_v25, %v1411_v41  ;;  %v3074_v41 = vld [vmem:[#allocation11 + $0x38] sm:$0xff]  }
 0x273   : > { %v1444_v47 = vmul.f32 %v3816_v40, %v1413_v43  ;;  %v3075_v43 = vld [vmem:[#allocation11 + $0x40] sm:$0xff]  }
 0x274   : > { %v1445_v49 = vmul.f32 %v3820_v25, %v1414_v45 }
 0x275   : > { %v1451_v50 = vpack.c.bf16 %v1444_v47, %v1441_v46 }
 0x276   : > { %v1452_v51 = vpack.c.bf16 %v1445_v49, %v1442_v48 }
 0x277   : > { %1457 = vrot.lane.b32.xlu0 %v1451_v50, %s3348_s25 }
 0x278   : > { %1459 = vrot.lane.b32.xlu1 %v1452_v51, %s3348_s25 }
 0x27b   : > { %1461 = vrot.lane.b32.xlu0 %v1453_v35, %s3348_s25  ;;  %v3073_v35 = vld [vmem:[#allocation11 + $0x30] sm:$0xff]  }
 0x2e9   : > { %v1458_v52 = vpop.permute.xlu0 %1457 }
 0x2ea   : > { %1470 = vst.msk [vmem:[#allocation2] sm:$0xff] %vm1469_vm14, %v1458_v52  ;;  %v1460_v53 = vpop.permute.xlu1 %1459 }
 0x2eb   : > { %v1464_v54 = vsel %vm1447_vm12, %v1458_v52, %v1460_v53 }
 0x2ec   : > { %1491 = vrot.lane.b32.xlu1 %v1464_v54, %s3338_s28 }
 0x2ed   : > { %v1462_v55 = vpop.permute.xlu0 %1461 }
 0x2ee   : > { %v1465_v56 = vsel %vm1447_vm12, %v1460_v53, %v1462_v55 }
 0x2ef   : > { %1473 = vst.msk [vmem:[#allocation2 + $0x10] sm:$0xff] %vm1472_vm15, %v1465_v56 }
 0x2f1   : > { %v1474_v57 = vld [vmem:[#allocation2] sm:$0xff] }
 0x2f2   : > { %1489 = vrot.lane.b32.xlu1 %v1474_v57, %s3338_s28 }
 0x2f6   : > { %v1476_v58 = vld [vmem:[#allocation2 + $0x10] sm:$0xff] }
 0x2f7   : > { %1493 = vrot.lane.b32.xlu0 %v1476_v58, %s3338_s28  ;;  %1691 = vrot.lane.b32.xlu1 %v1476_v58, %s3340_s16 }
 0x2fb   : > { %1689 = vrot.lane.b32.xlu0 %v1464_v54, %s3340_s16  ;;  %1800 = vrot.lane.b32.xlu1 %v1464_v54, %s3341_s8 }
 0x2ff   : > { %1687 = vrot.lane.b32.xlu0 %v1474_v57, %s3340_s16  ;;  %1798 = vrot.lane.b32.xlu1 %v1474_v57, %s3341_s8  ;;  %s3966_s16 = scalar_lea.hbm %s4021_s6, %s2938_s26 }
 0x303   : > { %1802 = vrot.lane.b32.xlu0 %v1476_v58, %s3341_s8  ;;  %1913 = vrot.lane.b32.xlu1 %v1476_v58, %s3342_s13  ;;  %s3246_s8 = scalar_lea.vmem %s3968_s10, 768 }
 0x304   : > { %p3247_p7 = scmp.ne.s32.totalorder %s3968_s10, %s3246_s8 }
 0x306   : > { %p3248_p4 = pnand %p3247_p7, %p4044_p10 }
 0x307   : > { %1911 = vrot.lane.b32.xlu0 %v1464_v54, %s3342_s13  ;;  %2022 = vrot.lane.b32.xlu1 %v1464_v54, %s3343_s20 }
 0x308   : > { %p3249_p13 = pneg %p3248_p4 }
 0x30b   : > { %1909 = vrot.lane.b32.xlu0 %v1474_v57, %s3342_s13  ;;  %2020 = vrot.lane.b32.xlu1 %v1474_v57, %s3343_s20  ;;  %s3349_s13 = smov [#allocation14]  }
 0x30f   : > { %2024 = vrot.lane.b32.xlu0 %v1476_v58, %s3343_s20  ;;  %2135 = vrot.lane.b32.xlu1 %v1476_v58, %s3344_s30  ;;  %s3250_s20 = sshll.u32 %s3349_s13, 4  ;;  %s3251_s20 = int_to_ptr.vmem [resolvable:$false] %s3250_s20 }
 0x310   : > { %p3253_p1 = scmp.lt.s32.totalorder %s3968_s10, %s3251_s20 }
 0x313   : > { %2133 = vrot.lane.b32.xlu0 %v1464_v54, %s3344_s30  ;;  %2244 = vrot.lane.b32.xlu1 %v1464_v54, %s3345_s12 }
 0x317   : > { %2131 = vrot.lane.b32.xlu0 %v1474_v57, %s3344_s30  ;;  %2242 = vrot.lane.b32.xlu1 %v1474_v57, %s3345_s12  ;;  %s3252_s30 = scalar_lea.vmem %s3251_s20, 1536 }
 0x318   : > { %p3254_p3 = scmp.lt.s32.totalorder %s3252_s30, %s3246_s8 }
 0x31a   : > { %p3255_p2 = por %p3254_p3, %p3253_p1 }
 0x31b   : > { %2246 = vrot.lane.b32.xlu0 %v1476_v58, %s3345_s12  ;;  %2357 = vrot.lane.b32.xlu1 %v1476_v58, %s3346_s17 }
 0x31c   : > { %p3256_p0 = pnand %p3255_p2, %p3249_p13 }
 0x31f   : > { %2355 = vrot.lane.b32.xlu0 %v1464_v54, %s3346_s17  ;;  %2461 = vperm.xlu1 %3056, %v2457_v59  }
 0x323   : > { %2353 = vrot.lane.b32.xlu0 %v1474_v57, %s3346_s17 }
 0x327   : > { %2466 = vperm.xlu0 %3055, %v2458_v60  }
 0x35e   : > { %v1492_v61 = vpop.permute.xlu1 %1491 }
 0x364   : > { %v1490_v62 = vpop.permute.xlu1 %1489 }
 0x365   : > { %v1495_v3 = vsel %vm367_vm2, %v1490_v62, %v1492_v61 }
 0x369   : > { %v1494_v63 = vpop.permute.xlu0 %1493  ;;  %v1692_v5 = vpop.permute.xlu1 %1691 }
 0x36a   : > { %2817 = vmatpush3.bf16.msra.mxu1 %v1494_v63  ;;  %v1496_v2 = vsel %vm367_vm2, %v1492_v61, %v1494_v63 }
 0x36b   : > { %1504 = vmatprep.subr.bf16.mxu0 %v1496_v2  ;;  %2822 = vmatprep.subr.bf16.mxu1 %v3336_v0 }
 0x36c   : > { %1505 = vmatpush1.bf16.msra.mxu0 %v1495_v3 }
 0x36d   : > { %2819 = vmatmul.mubr.msk.bf16.vlgmr.msra.gmra.mrb[36].mxu1 %vm1500_vm1, %v3067_v1  ;;  %v1690_v4 = vpop.permute.xlu0 %1689  ;;  %1596 = vmatprep.subr.bf16.mxu0 %v1464_v54  ;;  %v1801_v10 = vpop.permute.xlu1 %1800 }
 0x36e   : > { %2823 = vmatpush3.bf16.msra.mxu1 %v1476_v58  ;;  %2824 = vmatprep.mubr.msk.bf16.mxu1 %vm3337_vm0, %v3336_v0  ;;  %v1694_v7 = vsel %vm585_vm4, %v1690_v4, %v1692_v5 }
 0x36f   : > { %2697 = vmatmul.mubr.msk.bf16.vlgmr.msra.gmra.mrb[4].mxu0 %vm1500_vm1, %v3067_v1  ;;  %2828 = vmatprep.subr.bf16.mxu1 %v3336_v0 }
 0x370   : > { %1597 = vmatpush1.bf16.msra.mxu0 %v1474_v57  ;;  %1628 = vmatprep.mubr.bf16.mxu0 %v3339_v6 }
 0x371   : > { %1701 = vmatprep.subr.bf16.mxu0 %v1694_v7  ;;  %v1688_v9 = vpop.permute.xlu0 %1687  ;;  %v1799_v14 = vpop.permute.xlu1 %1798 }
 0x372   : > { %v1693_v13 = vsel %vm585_vm4, %v1688_v9, %v1690_v4  ;;  %v1804_v20 = vsel %vm703_vm6, %v1799_v14, %v1801_v10 }
 0x375   : > { %2825 = vmatmul.mubr.msk.bf16.vlgmr.msra.gmra.mrb[40].mxu1 %vm1500_vm1, %v3068_v8  ;;  %v1803_v11 = vpop.permute.xlu0 %1802  ;;  %v1914_v17 = vpop.permute.xlu1 %1913 }
 0x376   : > { %2829 = vmatpush3.bf16.msra.mxu1 %v1692_v5  ;;  %2830 = vmatprep.mubr.msk.bf16.mxu1 %vm3337_vm0, %v3336_v0  ;;  %v1805_v15 = vsel %vm703_vm6, %v1801_v10, %v1803_v11 }
 0x377   : > { %2834 = vmatprep.subr.bf16.mxu1 %v3336_v0 }
 0x379   : > { %v1912_v16 = vpop.permute.xlu0 %1911  ;;  %v2023_v21 = vpop.permute.xlu1 %2022 }
 0x37a   : > { %v1916_v22 = vsel %vm821_vm7, %v1912_v16, %v1914_v17 }
 0x37b   : > { %2700 = vmatmul.mubr.msk.bf16.vlgmr.msra.gmra.mrb[4].mxu0 %vm1500_vm1, %v3068_v8 }
 0x37c   : > { %1702 = vmatpush1.bf16.msra.mxu0 %v1693_v13  ;;  %1733 = vmatprep.mubr.bf16.mxu0 %v3339_v6 }
 0x37d   : > { %1812 = vmatprep.subr.bf16.mxu0 %v1805_v15  ;;  %2831 = vmatmul.mubr.msk.bf16.vlgmr.msra.gmra.mrb[44].mxu1 %vm1500_vm1, %v3069_v12  ;;  %v1910_v19 = vpop.permute.xlu0 %1909  ;;  %v2021_v26 = vpop.permute.xlu1 %2020 }
 0x37e   : > { %2835 = vmatpush3.bf16.msra.mxu1 %v1803_v11  ;;  %2836 = vmatprep.mubr.msk.bf16.mxu1 %vm3337_vm0, %v3336_v0  ;;  %v1915_v29 = vsel %vm821_vm7, %v1910_v19, %v1912_v16  ;;  %v2026_v37 = vsel %vm939_vm8, %v2021_v26, %v2023_v21 }
 0x37f   : > { %2840 = vmatprep.subr.bf16.mxu1 %v3336_v0 }
 0x381   : > { %v2025_v24 = vpop.permute.xlu0 %2024  ;;  %v2136_v30 = vpop.permute.xlu1 %2135 }
 0x382   : > { %v2027_v32 = vsel %vm939_vm8, %v2023_v21, %v2025_v24 }
 0x385   : > { %2837 = vmatmul.mubr.msk.bf16.vlgmr.msra.gmra.mrb[48].mxu1 %vm1500_vm1, %v3070_v18  ;;  %v2134_v27 = vpop.permute.xlu0 %2133  ;;  %v2245_v34 = vpop.permute.xlu1 %2244 }
 0x386   : > { %2841 = vmatpush3.bf16.msra.mxu1 %v1914_v17  ;;  %2842 = vmatprep.mubr.msk.bf16.mxu1 %vm3337_vm0, %v3336_v0  ;;  %v2138_v39 = vsel %vm1057_vm9, %v2134_v27, %v2136_v30 }
 0x387   : > { %2703 = vmatmul.mubr.msk.bf16.vlgmr.msra.gmra.mrb[4].mxu0 %vm1500_vm1, %v3069_v12  ;;  %2846 = vmatprep.subr.bf16.mxu1 %v3336_v0 }
 0x388   : > { %1813 = vmatpush1.bf16.msra.mxu0 %v1804_v20  ;;  %1844 = vmatprep.mubr.bf16.mxu0 %v3339_v6 }
 0x389   : > { %1923 = vmatprep.subr.bf16.mxu0 %v1916_v22  ;;  %v2132_v33 = vpop.permute.xlu0 %2131  ;;  %v2243_v38 = vpop.permute.xlu1 %2242 }
 0x38a   : > { %v2137_v44 = vsel %vm1057_vm9, %v2132_v33, %v2134_v27  ;;  %v2248_v47 = vsel %vm1175_vm10, %v2243_v38, %v2245_v34 }
 0x38d   : > { %2843 = vmatmul.mubr.msk.bf16.vlgmr.msra.gmra.mrb[52].mxu1 %vm1500_vm1, %v3071_v23  ;;  %v2247_v36 = vpop.permute.xlu0 %2246  ;;  %v2358_v42 = vpop.permute.xlu1 %2357 }
 0x38e   : > { %2847 = vmatpush3.bf16.msra.mxu1 %v2025_v24  ;;  %2848 = vmatprep.mubr.msk.bf16.mxu1 %vm3337_vm0, %v3336_v0  ;;  %v2249_v45 = vsel %vm1175_vm10, %v2245_v34, %v2247_v36 }
 0x38f   : > { %2852 = vmatprep.subr.bf16.mxu1 %v3336_v0 }
 0x391   : > { %v2356_v46 = vpop.permute.xlu0 %2355 }
 0x392   : > { %v2360_v48 = vsel %vm1293_vm11, %v2356_v46, %v2358_v42 }
 0x393   : > { %2706 = vmatmul.mubr.msk.bf16.vlgmr.msra.gmra.mrb[4].mxu0 %vm1500_vm1, %v3070_v18 }
 0x394   : > { %1924 = vmatpush1.bf16.msra.mxu0 %v1915_v29  ;;  %1955 = vmatprep.mubr.bf16.mxu0 %v3339_v6 }
 0x395   : > { %2034 = vmatprep.subr.bf16.mxu0 %v2027_v32  ;;  %2849 = vmatmul.mubr.msk.bf16.vlgmr.msra.gmra.mrb[56].mxu1 %vm1500_vm1, %v3072_v28  ;;  %v2354_v49 = vpop.permute.xlu0 %2353 }
 0x396   : > { %2853 = vmatpush3.bf16.msra.mxu1 %v2136_v30  ;;  %2854 = vmatprep.mubr.msk.bf16.mxu1 %vm3337_vm0, %v3336_v0  ;;  %v2359_v50 = vsel %vm1293_vm11, %v2354_v49, %v2356_v46 }
 0x397   : > { %2858 = vmatprep.subr.bf16.mxu1 %v3336_v0 }
 0x39d   : > { %2855 = vmatmul.mubr.msk.bf16.vlgmr.msra.gmra.mrb[60].mxu1 %vm1500_vm1, %v3073_v35 }
 0x39e   : > { %2859 = vmatpush3.bf16.msra.mxu1 %v2247_v36  ;;  %2860 = vmatprep.mubr.msk.bf16.mxu1 %vm3337_vm0, %v3336_v0 }
 0x39f   : > { %2709 = vmatmul.mubr.msk.bf16.vlgmr.msra.gmra.mrb[4].mxu0 %vm1500_vm1, %v3071_v23  ;;  %2864 = vmatprep.subr.bf16.mxu1 %v3336_v0 }
 0x3a0   : > { %2035 = vmatpush1.bf16.msra.mxu0 %v2026_v37  ;;  %2066 = vmatprep.mubr.bf16.mxu0 %v3339_v6 }
 0x3a1   : > { %2145 = vmatprep.subr.bf16.mxu0 %v2138_v39  ;;  %v2462_v39 = vpop.permute.xlu1 %2461 }
 0x3a5   : > { %2861 = vmatmul.mubr.msk.bf16.vlgmr.msra.gmra.mrb[64].mxu1 %vm1500_vm1, %v3074_v41 }
 0x3a6   : > { %2865 = vmatpush3.bf16.msra.mxu1 %v2358_v42  ;;  %2866 = vmatprep.mubr.msk.bf16.mxu1 %vm3337_vm0, %v3336_v0 }
 0x3ab   : > { %2712 = vmatmul.mubr.msk.bf16.vlgmr.msra.gmra.mrb[4].mxu0 %vm1500_vm1, %v3072_v28 }
 0x3ac   : > { %2146 = vmatpush1.bf16.msra.mxu0 %v2137_v44  ;;  %2177 = vmatprep.mubr.bf16.mxu0 %v3339_v6 }
 0x3ad   : > { %2256 = vmatprep.subr.bf16.mxu0 %v2249_v45  ;;  %2867 = vmatmul.mubr.msk.bf16.vlgmr.msra.gmra.mrb[68].mxu1 %vm1500_vm1, %v3075_v43 }
 0x3b7   : > { %2715 = vmatmul.mubr.msk.bf16.vlgmr.msra.gmra.mrb[4].mxu0 %vm1500_vm1, %v3073_v35 }
 0x3b8   : > { %2257 = vmatpush1.bf16.msra.mxu0 %v2248_v47  ;;  %2288 = vmatprep.mubr.bf16.mxu0 %v3339_v6 }
 0x3b9   : > { %2367 = vmatprep.subr.bf16.mxu0 %v2360_v48 }
 0x3c3   : > { %2718 = vmatmul.mubr.msk.bf16.vlgmr.msra.gmra.mrb[4].mxu0 %vm1500_vm1, %v3074_v41 }
 0x3c4   : > { %2368 = vmatpush1.bf16.msra.mxu0 %v2359_v50  ;;  %2399 = vmatprep.mubr.bf16.mxu0 %v3339_v6 }
 0x3cf   : > { %2721 = vmatmul.mubr.msk.bf16.vlgmr.msra.gmra.mrb[4].mxu0 %vm1500_vm1, %v3075_v43 }
 0x440   : > { %v1581_v51 = vpop.f32.mrb[36].mxu1 }
 0x441   : > { %v2820_v52 = vpop.f32.mrb[37].mxu1 }
 0x442   : > { %v1584_v53 = vpop.f32.mrb[38].mxu1 }
 0x443   : > { %v2821_v54 = vpop.f32.mrb[39].mxu1 }
 0x448   : > { %v1673_v55 = vpop.f32.mrb[40].mxu1 }
 0x449   : > { %v1674_v56 = vadd.f32 %v1673_v55, %v1581_v51  ;;  %v2826_v57 = vpop.f32.mrb[41].mxu1  ;;  %v2467_v51 = vpop.permute.xlu0 %2466 }
 0x44a   : > { %v1676_v58 = vpop.f32.mrb[42].mxu1 }
 0x44b   : > { %v1677_v59 = vadd.f32 %v1676_v58, %v1584_v53  ;;  %v2827_v60 = vpop.f32.mrb[43].mxu1 }
 0x450   : > { %v1778_v61 = vpop.f32.mrb[44].mxu1 }
 0x451   : > { %v1787_v62 = vadd.f32 %v1778_v61, %v1674_v56  ;;  %v2832_v63 = vpop.f32.mrb[45].mxu1 }
 0x452   : > { %v1781_v1 = vpop.f32.mrb[46].mxu1 }
 0x453   : > { %v1790_v2 = vadd.f32 %v1781_v1, %v1677_v59  ;;  %v2833_v3 = vpop.f32.mrb[47].mxu1 }
 0x458   : > { %v1889_v4 = vpop.f32.mrb[48].mxu1 }
 0x459   : > { %v1898_v6 = vadd.f32 %v1889_v4, %v1787_v62  ;;  %v2838_v5 = vpop.f32.mrb[49].mxu1 }
 0x45a   : > { %v1892_v7 = vpop.f32.mrb[50].mxu1 }
 0x45b   : > { %v1901_v8 = vadd.f32 %v1892_v7, %v1790_v2  ;;  %v2839_v9 = vpop.f32.mrb[51].mxu1 }
 0x460   : > { %v2000_v10 = vpop.f32.mrb[52].mxu1 }
 0x461   : > { %v2009_v11 = vadd.f32 %v2000_v10, %v1898_v6  ;;  %v2844_v12 = vpop.f32.mrb[53].mxu1 }
 0x462   : > { %v2003_v13 = vpop.f32.mrb[54].mxu1 }
 0x463   : > { %v2012_v14 = vadd.f32 %v2003_v13, %v1901_v8  ;;  %v2845_v15 = vpop.f32.mrb[55].mxu1 }
 0x468   : > { %v2111_v16 = vpop.f32.mrb[56].mxu1 }
 0x469   : > { %v2120_v17 = vadd.f32 %v2111_v16, %v2009_v11  ;;  %v2850_v18 = vpop.f32.mrb[57].mxu1 }
 0x46a   : > { %v2114_v19 = vpop.f32.mrb[58].mxu1 }
 0x46b   : > { %v2123_v20 = vadd.f32 %v2114_v19, %v2012_v14  ;;  %v2851_v21 = vpop.f32.mrb[59].mxu1 }
 0x470   : > { %v2222_v22 = vpop.f32.mrb[60].mxu1 }
 0x471   : > { %v2231_v23 = vadd.f32 %v2222_v22, %v2120_v17  ;;  %v2856_v24 = vpop.f32.mrb[61].mxu1 }
 0x472   : > { %v2225_v26 = vpop.f32.mrb[62].mxu1 }
 0x473   : > { %v2234_v27 = vadd.f32 %v2225_v26, %v2123_v20  ;;  %v2857_v28 = vpop.f32.mrb[63].mxu1 }
 0x478   : > { %v2333_v29 = vpop.f32.mrb[64].mxu1 }
 0x479   : > { %v2342_v30 = vadd.f32 %v2333_v29, %v2231_v23  ;;  %v2862_v32 = vpop.f32.mrb[65].mxu1 }
 0x47a   : > { %v2336_v33 = vpop.f32.mrb[66].mxu1 }
 0x47b   : > { %v2345_v34 = vadd.f32 %v2336_v33, %v2234_v27  ;;  %v2863_v35 = vpop.f32.mrb[67].mxu1 }
 0x480   : > { %v2444_v36 = vpop.f32.mrb[68].mxu1 }
 0x481   : > { %v2453_v37 = vadd.f32 %v2444_v36, %v2342_v30  ;;  %v2868_v38 = vpop.f32.mrb[69].mxu1 }
 0x482   : > { %v2447_v41 = vpop.f32.mrb[70].mxu1 }
 0x483   : > { %v2471_v42 = vadd.f32 %v2462_v39, %v2453_v37  ;;  %v2456_v43 = vadd.f32 %v2447_v41, %v2345_v34  ;;  %v2869_v44 = vpop.f32.mrb[71].mxu1 }
 0x485   : > { %v2477_v45 = vmul.f32 %v2471_v42, %v3809_v31  ;;  %v2474_v57 = vadd.f32 %v2467_v51, %v2456_v43 }
 0x487   : > { %2495 = vrot.lane.b32.xlu1 %v2477_v45, %s3348_s25  ;;  %v2480_v59 = vmul.f32 %v2474_v57, %v3809_v31 }
 0x4a2   : > { %v2401_v46 = vpop.f32.mrb[4].mxu0 }
 0x4a3   : > { %v2469_v47 = vadd.f32 %v2462_v39, %v2401_v46  ;;  %v2403_v48 = vpop.f32.mrb[5].mxu0 }
 0x4a4   : > { %v2470_v49 = vadd.f32 %v2462_v39, %v2403_v48  ;;  %v2405_v50 = vpop.f32.mrb[6].mxu0 }
 0x4a5   : > { %v2475_v0 = vmul.f32 %v2469_v47, %v3816_v40  ;;  %v2407_v52 = vpop.f32.mrb[7].mxu0  ;;  %v2472_v54 = vadd.f32 %v2467_v51, %v2405_v50 }
 0x4a6   : > { %v2476_v53 = vmul.f32 %v2470_v49, %v3820_v25  ;;  %v2473_v55 = vadd.f32 %v2467_v51, %v2407_v52 }
 0x4a7   : > { %2491 = vrot.lane.b32.xlu1 %v2475_v0, %s3348_s25  ;;  %v2478_v58 = vmul.f32 %v2472_v54, %v3816_v40 }
 0x4a8   : > { %v2479_v56 = vmul.f32 %v2473_v55, %v3820_v25  ;;  %2493 = vrot.lane.b32.xlu0 %v2476_v53, %s3348_s25 }
 0x4ab   : > { %2499 = vrot.lane.b32.xlu1 %v2479_v56, %s3348_s25 }
 0x4ac   : > { %2497 = vrot.lane.b32.xlu0 %v2478_v58, %s3348_s25 }
 0x4b0   : > { %2501 = vrot.lane.b32.xlu0 %v2480_v59, %s3348_s25 }
 0x4f9   : > { %v2496_v60 = vpop.permute.xlu1 %2495 }
 0x519   : > { %v2492_v61 = vpop.permute.xlu1 %2491 }
 0x51a   : > { %2513 = vst.msk [vmem:[%s3924_s9] sm:$0xff] %vm1469_vm14, %v2492_v61  ;;  %v2494_v25 = vpop.permute.xlu0 %2493 }
 0x51b   : > { %v2503_v62 = vsel %vm1447_vm12, %v2492_v61, %v2494_v25  ;;  %v2504_v40 = vsel %vm1447_vm12, %v2494_v25, %v2496_v60 }
 0x51c   : > { %2514 = vst [vmem:[%s3924_s9 + $0x8] sm:$0xff] %v2503_v62  ;;  %2515 = vst.msk [vmem:[%s3924_s9 + $0x10] sm:$0xff] %vm1472_vm15, %v2504_v40 }
 0x51d   : > { %v2500_v63 = vpop.permute.xlu1 %2499 }
 0x51e   : > { %v2498_v31 = vpop.permute.xlu0 %2497 }
 0x51f   : > { %v2505_v1 = vsel %vm1447_vm12, %v2498_v31, %v2500_v63  ;;  %2516 = vst.msk [vmem:[%s3924_s9 + $0x18] sm:$0xff] %vm1469_vm14, %v2498_v31 }
 0x520   : > { %2517 = vst [vmem:[%s3924_s9 + $0x20] sm:$0xff] %v2505_v1 }
 0x522   : > { %v2502_v2 = vpop.permute.xlu0 %2501 }
 0x523   : > { %v2506_v3 = vsel %vm1447_vm12, %v2500_v63, %v2502_v2 }
 0x524   : > { %2518 = vst.msk [vmem:[%s3924_s9 + $0x28] sm:$0xff] %vm1472_vm15, %v2506_v3 }
 0x525   : > { %3259 = shalt.err (!%p3256_p0)
}
 0x526   : > { %s3260_s12 = scalar_lea.hbm %s3966_s16, 768  ;;  %s3264_s14 = scalar_lea.hbm %s4021_s6, 1536 }
 0x527   : > { %p3261_p6 = scmp.ne.s32.totalorder %s3966_s16, %s3260_s12  ;;  %p3265_p8 = scmp.lt.u32.totalorder %s3966_s16, %s4021_s6 }
 0x528   : > { %p3266_p5 = scmp.lt.u32.totalorder %s3264_s14, %s3260_s12  ;;  %p3268_p7 = scmp.lt.u32.totalorder %s3260_s12, %s3966_s16 }
 0x529   : > { %p3262_p11 = pnand %p3261_p6, %p4044_p10 }
 0x52a   : > { %p3267_p9 = por %p3266_p5, %p3265_p8 }
 0x52b   : > { %p3263_p12 = pneg %p3262_p11 }
 0x52c   : > { %p3269_p4 = por %p3268_p7, %p3267_p9 }
 0x52e   : > { %p3270_p13 = pnand %p3269_p4, %p3263_p12 }
 0x530   : > { %3273 = shalt.err (!%p3270_p13)
}
 0x531   : > { %s3350_s11 = smov 384   ;;  %s3351_s28 = smov 24  }
 0x532   : > { %2961 = dma.vmem_to_hbm [thread:$0]  (%p4044_p10), %s3968_s10, 768, %s3966_s16, %s2520_s27, %s3350_s11, %s3350_s11, %s3351_s28  }
 0x533 PF: > { %s2548_s8 = sand.u32 1, %s3312_s21   ;;  %p4045_p1 = scmp.ne.s32.totalorder %s4035_s19, 0 }
 0x534   : > { %p4046_p3 = scmp.ge.s32.totalorder %s3324_s24, 2  ;;  %s2549_s13 = scalar_lea.sflag [#allocation5], %s2548_s8 }
 0x536   : > { %p2984_p2 = pnand %p4046_p3, %p4045_p1 }
 0x538   : > { %3307 = dma.done.wait (!%p2984_p2), %s2549_s13, 768  }
 0x539   : > { %3309 = vsyncadd (!%p2984_p2), %s2549_s13, 4294966528  ;;  %p22_p0 = scmp.ge.s32.totalorder %s3552_s15, 4   ;;  %s4047_s21 = smov %s3316_s22 }
 0x53a   : > { %s4048_s22 = smov %s3320_s23  ;;  %s4049_s23 = smov %s3564_s18 }
 0x53b   : > { %s4050_s24 = smov %s3552_s15  ;;  %24 = sbr.rel (!%p22_p0) target bundleno = 8 (0x8), region = 109 }
 0x542   :  { %2554 = vsyncpa [#allocation4], 1 }
 0x543   :  { %2556 = vsyncpa [#allocation4 + $0x1], 1 }
 0x544   :  { %2557 = vsyncpa [#allocation7], 1 }
 0x545   :  { %2558 = vsyncpa [#allocation10], 1 }
 0x546   :  { %2559 = vsyncpa [#allocation13], 1 }
 0x547   :  { %2560 = vsyncpa [#allocation5], 1 }
 0x548   :  { %2562 = vsyncpa [#allocation5 + $0x1], 1 }

// kernel: dpid_forward.6
= control target key start
LH: loop header
LB: loop body
LE: loop exit
PB: predicated region body
PF: predicated region fallthrough
CT: control target
= control target key end

     0   :  { %s4775_s0 = inlined_call_operand.hbm [shape: f32[2,16,324], index: 0, kind: input, shape index: {}]   ;;  %s4776_s1 = inlined_call_operand.hbm [shape: f32[1,324], index: 1, kind: input, shape index: {}]   ;;  %s4777_s2 = inlined_call_operand.hbm [shape: bf16[72,16], index: 2, kind: input, shape index: {}]   ;;  %s4778_s3 = inlined_call_operand.hbm [shape: f32[8,1], index: 3, kind: input, shape index: {}]   ;;  %s4779_s4 = inlined_call_operand.hbm [shape: bf16[72,24], index: 4, kind: input, shape index: {}]   ;;  %s4780_s5 = inlined_call_operand.hbm [shape: f32[8,1], index: 5, kind: input, shape index: {}]   ;;  %s4781_s6 = inlined_call_operand.hbm [shape: bf16[16,32], index: 6, kind: input, shape index: {}]   ;;  %s4782_s7 = inlined_call_operand.hbm [shape: f32[16,1], index: 7, kind: input, shape index: {}]   ;;  %s4783_s8 = inlined_call_operand.hbm [shape: f32[2,16,324], index: 8, kind: output, shape index: {}]  }
   0x1   :  { %4787 = sst [smem:[#allocation24_spill]] %s4776_s1 }
   0x2   :  { %4788 = sst [smem:[#allocation25_spill]] %s4777_s2 }
   0x3   :  { %13 = vsyncpa [#allocation4], 0 }
   0x4   :  { %15 = vsyncpa [#allocation4 + $0x1], 0 }
   0x5   :  { %16 = vsyncpa [#allocation7], 0 }
   0x6   :  { %17 = vsyncpa [#allocation10], 0 }
   0x7   :  { %18 = vsyncpa [#allocation13], 0 }
   0x8   :  { %19 = vsyncpa [#allocation16], 0 }
   0x9   :  { %20 = vsyncpa [#allocation5], 0 }
   0xa   :  { %22 = vsyncpa [#allocation5 + $0x1], 0  ;;  %s3842_s27 = smov 0   ;;  %s3844_s28 = smov 0  }
   0xb   :  { %s3846_s29 = smov 0   ;;  %s3848_s30 = smov 0  }
   0xc LB: > { %s3766_s9 = smov [#allocation6]   ;;  %s3863_s11 = sadd.s32 4294967295, %s3764_s30   ;;  %s3764_s30 = sphi %s3848_s30, %s4814_s30   ;;  %s3760_s29 = sphi %s3846_s29, %s4813_s29   ;;  %s3756_s28 = sphi %s3844_s28, %s4812_s28   ;;  %s3752_s27 = sphi %s3842_s27, %s4811_s27  }
   0xd   : > { %s245_s10 = sshll.u32 %s3766_s9, 4  ;;  %p3028_p0 = scmp.ge.s32.totalorder %s3764_s30, 1  ;;  %s3868_s10 = int_to_ptr.vmem [resolvable:$true] %s245_s10 }
   0xe   : > { %p4784_p1 = scmp.eq.s32.totalorder %s3863_s11, 0  ;;  %p232_p2 = scmp.lt.s32.totalorder %s3764_s30, 3 }
   0xf   : > { %s3767_s13 = smov [#allocation9]   ;;  %s3768_s15 = smov [#allocation12]  }
  0x10   : > { %p3870_p3 = pnand %p3028_p0, %p232_p2  ;;  %s269_s14 = sshll.u32 %s3767_s13, 4  ;;  %s3877_s14 = int_to_ptr.vmem [resolvable:$true] %s269_s14 }
  0x11   : > { %s293_s16 = sshll.u32 %s3768_s15, 4  ;;  %s3769_s18 = smov [#allocation8]   ;;  %s3885_s16 = int_to_ptr.vmem [resolvable:$true] %s293_s16 }
  0x12   : > { %s4789_s12 = scalar_select %p3870_p3, 1, 0 }
  0x13   : > { %p3344_p5 = pneg %p3870_p3  ;;  %s3887_s19 = sshll.u32 %s3769_s18, 4  ;;  %s256_s19 = int_to_ptr.vmem [resolvable:$true] %s3887_s19 }
  0x14   : > { %s4791_s1 = sld [smem:[#allocation24_spill]] }
  0x15   : > { %p3881_p6 = pnand %p3344_p5, %p4784_p1 }
  0x17   : > { %p3897_p8 = pneg %p3881_p6 }
  0x1a   : > { %s3456_s22 = scalar_lea.hbm %s4791_s1, 48 }
  0x1b   : > { %p3457_p7 = scmp.ne.s32.totalorder %s4791_s1, %s3456_s22  ;;  %p3463_p11 = scmp.lt.u32.totalorder %s3456_s22, %s4791_s1 }
  0x1d   : > { %p3459_p9 = pnand %p3897_p8, %p3457_p7 }
  0x1f   : > { %p3460_p10 = pneg %p3459_p9 }
  0x21   : > { %p3465_p12 = pnand %p3463_p11, %p3460_p10 }
  0x23   : > { %3468 = shalt.err (!%p3465_p12)
}
  0x24   : > { %s3469_s13 = scalar_lea.vmem %s3868_s10, 48  ;;  %s3476_s15 = scalar_lea.vmem %s3868_s10, 64 }
  0x25   : > { %p3470_p13 = scmp.ne.s32.totalorder %s3868_s10, %s3469_s13  ;;  %p3477_p5 = scmp.lt.s32.totalorder %s3868_s10, %s3868_s10 }
  0x26   : > { %p3478_p7 = scmp.lt.s32.totalorder %s3476_s15, %s3469_s13 }
  0x27   : > { %p3472_p0 = pnand %p3470_p13, %p3897_p8 }
  0x28   : > { %p3479_p9 = por %p3478_p7, %p3477_p5 }
  0x29   : > { %p3473_p2 = pneg %p3472_p0 }
  0x2b   : > { %p3480_p4 = pnand %p3479_p9, %p3473_p2 }
  0x2d   : > { %3483 = shalt.err (!%p3480_p4)
}
  0x2e   : > { %3347 = dma.hbm_to_vmem [thread:$0]  (!%p3881_p6), %s4791_s1, 48, %s3868_s10, [#allocation7]  }
  0x2f   : > { %s3484_s23 = scalar_lea.hbm %s4778_s3, 128 }
  0x30   : > { %p3485_p10 = scmp.ne.s32.totalorder %s4778_s3, %s3484_s23  ;;  %p3491_p4 = scmp.lt.u32.totalorder %s3484_s23, %s4778_s3 }
  0x32   : > { %p3487_p11 = pnand %p3485_p10, %p3897_p8 }
  0x34   : > { %p3488_p12 = pneg %p3487_p11 }
  0x36   : > { %p3493_p13 = pnand %p3491_p4, %p3488_p12 }
  0x38   : > { %3496 = shalt.err (!%p3493_p13)
}
  0x39   : > { %s3497_s10 = scalar_lea.vmem %s3877_s14, 128  ;;  %p3505_p7 = scmp.lt.s32.totalorder %s3877_s14, %s3877_s14 }
  0x3a   : > { %p3498_p0 = scmp.ne.s32.totalorder %s3877_s14, %s3497_s10  ;;  %p3506_p9 = scmp.lt.s32.totalorder %s3497_s10, %s3497_s10 }
  0x3c   : > { %p3500_p2 = pnand %p3498_p0, %p3897_p8  ;;  %p3507_p10 = por %p3506_p9, %p3505_p7 }
  0x3e   : > { %p3501_p5 = pneg %p3500_p2 }
  0x40   : > { %p3508_p11 = pnand %p3507_p10, %p3501_p5 }
  0x42   : > { %3511 = shalt.err (!%p3508_p11)
}
  0x43   : > { %3353 = dma.hbm_to_vmem [thread:$0]  (!%p3881_p6), %s4778_s3, 128, %s3877_s14, [#allocation10]  }
  0x44   : > { %s3512_s22 = scalar_lea.hbm %s4780_s5, 128 }
  0x45   : > { %p3513_p12 = scmp.ne.s32.totalorder %s4780_s5, %s3512_s22  ;;  %p3519_p0 = scmp.lt.u32.totalorder %s3512_s22, %s4780_s5 }
  0x47   : > { %p3515_p4 = pnand %p3513_p12, %p3897_p8 }
  0x49   : > { %p3516_p13 = pneg %p3515_p4 }
  0x4b   : > { %p3521_p2 = pnand %p3519_p0, %p3516_p13 }
  0x4d   : > { %3524 = shalt.err (!%p3521_p2)
}
  0x4e   : > { %s3525_s14 = scalar_lea.vmem %s3885_s16, 128  ;;  %p3533_p10 = scmp.lt.s32.totalorder %s3885_s16, %s3885_s16 }
  0x4f   : > { %p3526_p5 = scmp.ne.s32.totalorder %s3885_s16, %s3525_s14  ;;  %p3534_p11 = scmp.lt.s32.totalorder %s3525_s14, %s3525_s14 }
  0x51   : > { %p3528_p7 = pnand %p3526_p5, %p3897_p8  ;;  %p3535_p12 = por %p3534_p11, %p3533_p10 }
  0x53   : > { %p3529_p9 = pneg %p3528_p7 }
  0x55   : > { %p3536_p4 = pnand %p3535_p12, %p3529_p9 }
  0x57   : > { %3539 = shalt.err (!%p3536_p4)
}
  0x58   : > { %3359 = dma.hbm_to_vmem [thread:$0]  (!%p3881_p6), %s4780_s5, 128, %s3885_s16, [#allocation13]  }
  0x59   : > { %s4793_s2 = sld [smem:[#allocation25_spill]] }
  0x5f   : > { %s3540_s20 = scalar_lea.hbm %s4793_s2, 576 }
  0x60   : > { %p3541_p13 = scmp.ne.s32.totalorder %s4793_s2, %s3540_s20  ;;  %p3547_p5 = scmp.lt.u32.totalorder %s3540_s20, %s4793_s2 }
  0x62   : > { %p3543_p0 = pnand %p3541_p13, %p3897_p8 }
  0x64   : > { %p3544_p2 = pneg %p3543_p0 }
  0x66   : > { %p3549_p7 = pnand %p3547_p5, %p3544_p2 }
  0x68   : > { %3552 = shalt.err (!%p3549_p7)
}
  0x69   : > { %s3553_s26 = scalar_lea.vmem %s256_s19, 576  ;;  %p3561_p12 = scmp.lt.s32.totalorder %s256_s19, %s256_s19 }
  0x6a   : > { %p3554_p9 = scmp.ne.s32.totalorder %s256_s19, %s3553_s26  ;;  %p3562_p4 = scmp.lt.s32.totalorder %s3553_s26, %s3553_s26 }
  0x6c   : > { %p3556_p10 = pnand %p3554_p9, %p3897_p8  ;;  %p3563_p1 = por %p3562_p4, %p3561_p12 }
  0x6e   : > { %p3557_p11 = pneg %p3556_p10 }
  0x70   : > { %p3564_p3 = pnand %p3563_p1, %p3557_p11 }
  0x72   : > { %3567 = shalt.err (!%p3564_p3)
}
  0x73   : > { %s3770_s16 = smov 64   ;;  %s3771_s9 = smov 4  }
  0x74   : > { %3350 = dma.hbm_to_vmem [thread:$0]  (!%p3881_p6), %s4793_s2, 576, %s256_s19, [#allocation7], %s3770_s16, %s3770_s16, %s3771_s9  }
  0x75   : > { %s3772_s10 = smov [#allocation11]   ;;  %s3773_s18 = smov [#allocation14]  }
  0x76   : > { %s279_s15 = sshll.u32 %s3772_s10, 4  ;;  %s303_s20 = sshll.u32 %s3773_s18, 4  ;;  %s280_s15 = int_to_ptr.vmem [resolvable:$true] %s279_s15  ;;  %s3987_s20 = int_to_ptr.vmem [resolvable:$true] %s303_s20 }
  0x77   : > { %s3568_s23 = scalar_lea.hbm %s4779_s4, 576 }
  0x78   : > { %p3569_p1 = scmp.ne.s32.totalorder %s4779_s4, %s3568_s23  ;;  %p3575_p0 = scmp.lt.u32.totalorder %s3568_s23, %s4779_s4 }
  0x7a   : > { %p3571_p3 = pnand %p3569_p1, %p3897_p8 }
  0x7c   : > { %p3572_p13 = pneg %p3571_p3 }
  0x7e   : > { %p3577_p2 = pnand %p3575_p0, %p3572_p13 }
  0x80   : > { %3580 = shalt.err (!%p3577_p2)
}
  0x81   : > { %s3581_s13 = scalar_lea.vmem %s280_s15, 576  ;;  %p3589_p10 = scmp.lt.s32.totalorder %s280_s15, %s280_s15 }
  0x82   : > { %p3582_p5 = scmp.ne.s32.totalorder %s280_s15, %s3581_s13  ;;  %p3590_p11 = scmp.lt.s32.totalorder %s3581_s13, %s3581_s13 }
  0x84   : > { %p3584_p7 = pnand %p3582_p5, %p3897_p8  ;;  %p3591_p12 = por %p3590_p11, %p3589_p10 }
  0x86   : > { %p3585_p9 = pneg %p3584_p7 }
  0x88   : > { %p3592_p4 = pnand %p3591_p12, %p3585_p9 }
  0x8a   : > { %3595 = shalt.err (!%p3592_p4)
}
  0x8b   : > { %3356 = dma.hbm_to_vmem [thread:$0]  (!%p3881_p6), %s4779_s4, 576, %s280_s15, [#allocation10], %s3770_s16, %s3770_s16, %s3771_s9  }
  0x8c   : > { %s3596_s23 = scalar_lea.hbm %s4781_s6, 128 }
  0x8d   : > { %p3597_p1 = scmp.ne.s32.totalorder %s4781_s6, %s3596_s23  ;;  %p3603_p0 = scmp.lt.u32.totalorder %s3596_s23, %s4781_s6 }
  0x8f   : > { %p3599_p3 = pnand %p3597_p1, %p3897_p8 }
  0x91   : > { %p3600_p13 = pneg %p3599_p3 }
  0x93   : > { %p3605_p2 = pnand %p3603_p0, %p3600_p13 }
  0x95   : > { %3608 = shalt.err (!%p3605_p2)
}
  0x96   : > { %s3609_s15 = scalar_lea.vmem %s3987_s20, 128  ;;  %p3617_p10 = scmp.lt.s32.totalorder %s3987_s20, %s3987_s20 }
  0x97   : > { %p3610_p5 = scmp.ne.s32.totalorder %s3987_s20, %s3609_s15  ;;  %p3618_p11 = scmp.lt.s32.totalorder %s3609_s15, %s3609_s15 }
  0x99   : > { %p3612_p7 = pnand %p3610_p5, %p3897_p8  ;;  %p3619_p12 = por %p3618_p11, %p3617_p10 }
  0x9b   : > { %p3613_p9 = pneg %p3612_p7 }
  0x9d   : > { %p3620_p4 = pnand %p3619_p12, %p3613_p9 }
  0x9f   : > { %3623 = shalt.err (!%p3620_p4)
}
  0xa0   : > { %3362 = dma.hbm_to_vmem [thread:$0]  (!%p3881_p6), %s4781_s6, 128, %s3987_s20, [#allocation13], %s3770_s16, %s3770_s16, %s3771_s9  }
  0xa1   : > { %s3774_s18 = smov [#allocation15]   ;;  %s3624_s24 = scalar_lea.hbm %s4782_s7, 256 }
  0xa2   : > { %s316_s21 = sshll.u32 %s3774_s18, 4  ;;  %p3625_p1 = scmp.ne.s32.totalorder %s4782_s7, %s3624_s24  ;;  %s317_s21 = int_to_ptr.vmem [resolvable:$true] %s316_s21 }
  0xa3   : > { %p3631_p0 = scmp.lt.u32.totalorder %s3624_s24, %s4782_s7 }
  0xa4   : > { %p3627_p3 = pnand %p3625_p1, %p3897_p8 }
  0xa6   : > { %p3628_p13 = pneg %p3627_p3 }
  0xa8   : > { %p3633_p2 = pnand %p3631_p0, %p3628_p13 }
  0xaa   : > { %3636 = shalt.err (!%p3633_p2)
}
  0xab   : > { %s3637_s16 = scalar_lea.vmem %s317_s21, 256  ;;  %p3645_p10 = scmp.lt.s32.totalorder %s317_s21, %s317_s21 }
  0xac   : > { %p3638_p5 = scmp.ne.s32.totalorder %s317_s21, %s3637_s16  ;;  %p3646_p11 = scmp.lt.s32.totalorder %s3637_s16, %s3637_s16 }
  0xae   : > { %p3640_p7 = pnand %p3638_p5, %p3897_p8  ;;  %p3647_p12 = por %p3646_p11, %p3645_p10 }
  0xb0   : > { %p3641_p9 = pneg %p3640_p7 }
  0xb2   : > { %p3648_p4 = pnand %p3647_p12, %p3641_p9 }
  0xb4   : > { %3651 = shalt.err (!%p3648_p4)
}
  0xb5   : > { %s3775_s9 = smov 128   ;;  %s3776_s25 = smov 8  }
  0xb6   : > { %3365 = dma.hbm_to_vmem [thread:$0]  (!%p3881_p6), %s4782_s7, 256, %s317_s21, [#allocation16], %s3775_s9, %s3775_s9, %s3776_s25  }
  0xb7   : > { %s3027_s10 = sadd.s32 4294967294, %s3764_s30   ;;  %s4056_s18 = sadd.s32 1, %s3764_s30  }
  0xb8   : > { %s35_s22 = sadd.s32 1, %s3760_s29  ;;  %s32_s23 = ssub.s32 %s3764_s30, %s4056_s18 }
  0xb9   : > { %p42_p8 = scmp.ne.s32.totalorder %s3760_s29, %s3756_s28  ;;  %p33_p1 = scmp.eq.s32.totalorder %s32_s23, 0 }
  0xba   : > { %p43_p3 = scmp.eq.s32.totalorder %s3764_s30, 0  ;;  %p48_p13 = scmp.ne.s32.totalorder %s3756_s28, %s3752_s27 }
  0xbb   : > { %p219_p0 = scmp.eq.s32.totalorder %s3863_s11, 1  ;;  %p4794_p5 = scmp.eq.s32.totalorder %s3863_s11, 0 }
  0xbc   : > { %s4068_s24 = scalar_select %p33_p1, %s3760_s29, %s35_s22  }
  0xbd   : > { %p44_p2 = por %p43_p3, %p42_p8  ;;  %p4072_p7 = por %p4794_p5, %p48_p13 }
  0xbe   : > { %p4076_p6 = por %p219_p0, %p42_p8  ;;  %p225_p9 = scmp.eq.s32.totalorder %s3027_s10, 1 }
  0xbf   : > { %p3381_p10 = scmp.lt.s32.totalorder %s3764_s30, 2  ;;  %s330_s26 = sand.u32 1, %s3760_s29  }
  0xc0   : > { %s4796_s21 = scalar_select %p4076_p6, 1, 0 }
  0xc1   : > { %p4082_p11 = por %p225_p9, %p48_p13  ;;  %s3308_s19 = smul.u32 48, %s330_s26 }
  0xc2   : > { %p4086_p12 = pnand %p3381_p10, %p44_p2  ;;  %s3309_s16 = smul.u32 768, %s3764_s30 }
  0xc3   : > { %s4797_s14 = scalar_select %p4082_p11, 1, 0 }
  0xc4   : > { %s4094_s20 = scalar_lea.hbm %s4775_s0, %s3309_s16  ;;  %s334_s13 = scalar_lea.vmem [#allocation3], %s3308_s19 }
  0xc5   : > { %s341_s10 = sshll.u32 %s334_s13, 4  ;;  %s4098_s22 = scalar_lea.sflag [#allocation4], %s330_s26  ;;  %s4096_s10 = int_to_ptr.vmem [resolvable:$true] %s341_s10 }
  0xc6   : > { %s3652_s23 = scalar_lea.hbm %s4094_s20, 768  ;;  %p3654_p8 = pneg %p4086_p12 }
  0xc7   : > { %p3653_p4 = scmp.ne.s32.totalorder %s4094_s20, %s3652_s23  ;;  %s3657_s25 = scalar_lea.hbm %s4775_s0, 1536 }
  0xc8   : > { %p3658_p13 = scmp.lt.u32.totalorder %s4094_s20, %s4775_s0  ;;  %p3659_p0 = scmp.lt.u32.totalorder %s3657_s25, %s3652_s23 }
  0xc9   : > { %p3655_p1 = pnand %p3654_p8, %p3653_p4  ;;  %p3661_p5 = scmp.lt.u32.totalorder %s3652_s23, %s4094_s20 }
  0xca   : > { %p3660_p2 = por %p3659_p0, %p3658_p13 }
  0xcb   : > { %p3656_p3 = pneg %p3655_p1 }
  0xcc   : > { %p3662_p9 = por %p3661_p5, %p3660_p2 }
  0xce   : > { %p3663_p10 = pnand %p3662_p9, %p3656_p3 }
  0xd0   : > { %3666 = shalt.err (!%p3663_p10)
}
  0xd1   : > { %s3667_s26 = scalar_lea.vmem %s4096_s10, 768  ;;  %s3777_s19 = smov [#allocation3]  }
  0xd2   : > { %p3668_p4 = scmp.ne.s32.totalorder %s4096_s10, %s3667_s26  ;;  %s3672_s13 = sshll.u32 %s3777_s19, 4  ;;  %s3673_s13 = int_to_ptr.vmem [resolvable:$false] %s3672_s13 }
  0xd3   : > { %s3674_s1 = scalar_lea.vmem %s3673_s13, 1536  ;;  %p3675_p6 = scmp.lt.s32.totalorder %s4096_s10, %s3673_s13 }
  0xd4   : > { %p3670_p1 = pnand %p3668_p4, %p3654_p8  ;;  %p3676_p13 = scmp.lt.s32.totalorder %s3674_s1, %s3667_s26 }
  0xd6   : > { %p3671_p11 = pneg %p3670_p1  ;;  %p3677_p0 = por %p3676_p13, %p3675_p6 }
  0xd8   : > { %p3678_p2 = pnand %p3677_p0, %p3671_p11 }
  0xda   : > { %3681 = shalt.err (!%p3678_p2)
}
  0xdb   : > { %s3778_s2 = smov 384   ;;  %s3779_s23 = smov 24  }
  0xdc   : > { %3369 = dma.hbm_to_vmem [thread:$0]  (!%p4086_p12), %s4094_s20, 768, %s4096_s10, %s4098_s22, %s3778_s2, %s3778_s2, %s3779_s23  }
  0xdd   : > { %p4799_p8 = scmp.ne.s32.totalorder %s4789_s12, 0 }
  0xde   : > { %s4129_s16 = sand.u32 (!%p4799_p8), 1, %s3756_s28  }
  0xdf   : > { %353 = sbr.rel (%p4799_p8) target bundleno = 1568 (0x620), region = 52  ;;  %s356_s25 = scalar_lea.sflag (!%p4799_p8), [#allocation4], %s4129_s16 }
  0xe0   : > { %s3310_s9 = smul.u32 (!%p4799_p8), 48, %s4129_s16 }
  0xe2   : > { %s359_s26 = scalar_lea.vmem (!%p4799_p8), [#allocation3], %s3310_s9 }
  0xe6   : > { %3727 = dma.done.wait (%p4072_p7), %s356_s25, 768  }
  0xe7   : > { %3729 = vsyncadd (%p4072_p7), %s356_s25, 4294966528  ;;  %p4800_p6 = scmp.eq.s32.totalorder %s3863_s11, 0 }
  0xe9   : > { %3731 = dma.done.wait (%p4800_p6), [#allocation7], 624   ;;  %p4801_p11 = pmov %p4800_p6 }
  0xea   : > { %p4802_p12 = pmov %p4800_p6 }
  0xeb   : > { %3733 = vsyncadd (%p4801_p11), [#allocation7], 4294966672 }
  0xec   : > { %3735 = dma.done.wait (%p4802_p12), [#allocation10], 704   ;;  %p4803_p3 = pmov %p4800_p6 }
  0xee   : > { %3737 = vsyncadd (%p4803_p3), [#allocation10], 4294966592  ;;  %p4804_p5 = pmov %p4803_p3 }
  0xef   : > { %p4805_p9 = pmov %p4803_p3 }
  0xf0   : > { %3739 = dma.done.wait (%p4804_p5), [#allocation13], 256  }
  0xf1   : > { %3741 = vsyncadd (%p4805_p9), [#allocation13], 4294967040  ;;  %p4806_p7 = pmov %p4803_p3 }
  0xf2   : > { %p4807_p10 = pmov %p4803_p3 }
  0xf3   : > { %3743 = dma.done.wait (%p4806_p7), [#allocation16], 256  }
  0xf4   : > { %3745 = vsyncadd (%p4807_p10), [#allocation16], 4294967040  ;;  %v3780_v0 = vmov 0.0   ;;  %v4156_v1 = vld [vmem:[%s359_s26 + $0x8] sm:$0xff]  ;;  %v4158_v2 = vld [vmem:[%s359_s26 + $0x20] sm:$0xff]  ;;  %vm433_vm0 = vcmask 556032   ;;  %v1343_v13 = vlaneseq }
  0xf5   : > { %3156 = vmatprep.subr.bf16.mxu1 %v3780_v0  ;;  %v4160_v3 = vld [vmem:[%s359_s26] sm:$0xff]  ;;  %v4164_v4 = vpack.c.bf16 %v4158_v2, %v4156_v1  ;;  %v4166_v5 = vld [vmem:[%s359_s26 + $0x18] sm:$0xff]  ;;  %v4168_v6 = vld [vmem:[%s359_s26 + $0x10] sm:$0xff]  ;;  %vm3781_vm1 = vmmov 0   ;;  %s3782_s12 = smov 127   ;;  %v3783_v10 = vmov 0  }
  0xf6   : > { %v4170_v7 = vld [vmem:[%s359_s26 + $0x28] sm:$0xff]  ;;  %3158 = vmatprep.mubr.msk.bf16.mxu1 %vm3781_vm1, %v3780_v0  ;;  %v4176_v8 = vpack.c.bf16 %v4166_v5, %v4160_v3  ;;  %497 = vmatprep.mubr.bf16.mxu0 %v3783_v10  ;;  %s3784_s17 = smov 126   ;;  %s3785_s15 = smov 110   ;;  %v1344_v14 = vshrl.u32 %v1343_v13, 7  ;;  %v421_v15 = vld [vmem:[#allocation6] sm:$0x7] }
  0xf7   : > { %v430_v9 = vpack.c.bf16 %v4170_v7, %v4168_v6  ;;  %451 = vrot.lane.b32.xlu0 %v4164_v4, %s3782_s12  ;;  %3452 = vset.pattern.permute.xlu1 %v3783_v10  ;;  %s3786_s20 = smov 109   ;;  %s3787_s10 = smov 108   ;;  %v1330_v12 = vld [vmem:[#allocation9] sm:$0xff]  ;;  %vm455_vm2 = vcmask 1039360   ;;  %vm461_vm3 = vcmask 130048   ;;  %vm637_vm4 = vcmask 1031168  }
  0xf8   : > { %449 = vrot.lane.b32.xlu1 %v4176_v8, %s3782_s12  ;;  %3451 = vset.pattern.permute.xlu0 %v3783_v10  ;;  %s3788_s22 = smov 92   ;;  %s3789_s19 = smov 91   ;;  %v1345_v16 = vsub.s32 0, %v1344_v14  ;;  %v1349_v17 = vsub.s32 1, %v1344_v14  ;;  %v1353_v18 = vsub.s32 2, %v1344_v14  ;;  %vm737_vm5 = vcmask 900096  }
  0xf9   : > { %434 = vst.msk [vmem:[#allocation2 + $0x10] sm:$0xff] %vm433_vm0, %v430_v9  ;;  %s3790_s13 = smov 90   ;;  %v445_v27 = vld [vmem:[#allocation8 + $0x4] sm:$0xf]  ;;  %v444_v33 = vld [vmem:[#allocation8] sm:$0xf] }
  0xfa   : > { %v1346_v19 = vrot.slane %v421_v15, %v1345_v16  ;;  %v1354_v20 = vrot.slane %v421_v15, %v1353_v18  ;;  %v1350_v21 = vrot.slane %v421_v15, %v1349_v17  ;;  %v630_v39 = vld [vmem:[#allocation8 + $0x8] sm:$0xf]  ;;  %vm837_vm6 = vcmask 891904   ;;  %v730_v45 = vld [vmem:[#allocation8 + $0xc] sm:$0xf]  ;;  %s3791_s1 = smov 19  }
  0xfb   : > { %vm937_vm7 = vcmask 883712   ;;  %v830_v51 = vld [vmem:[#allocation8 + $0x10] sm:$0xf]  ;;  %vm1037_vm8 = vcmask 752640   ;;  %v930_v57 = vld [vmem:[#allocation8 + $0x14] sm:$0xf] }
  0xfc   : > { %633 = vrot.lane.b32.xlu1 %v4164_v4, %s3784_s17  ;;  %vm1137_vm9 = vcmask 744448   ;;  %v1030_v62 = vld [vmem:[#allocation8 + $0x18] sm:$0xf]  ;;  %vm1237_vm10 = vcmask 736256   ;;  %v1130_v14 = vld [vmem:[#allocation8 + $0x1c] sm:$0xf] }
  0xfd   : > { %v1230_v17 = vld [vmem:[#allocation8 + $0x20] sm:$0xf]  ;;  %vm435_vm11 = vcmask 154624   ;;  %vm437_vm12 = vcmask 556424   ;;  %vm1406_vm13 = vcmask 1043456   ;;  %s3792_s2 = smov 112  }
  0xfe   : > { %436 = vst.msk [vmem:[#allocation2 + $0x18] sm:$0xff] %vm435_vm11, %v3783_v10  ;;  %vm1388_vm14 = vcmask 1043608   ;;  %vm1391_vm15 = vcmask 396288   ;;  %vm1402_vm0 = vcmask 64512   ;;  %s3793_s23 = smov 104   ;;  %s4678_s25 = scalar_lea.vmem [#allocation17], %s3310_s9 }
  0xff   : > { %438 = vst.msk [vmem:[#allocation2 + $0x28] sm:$0xff] %vm437_vm12, %v3783_v10  ;;  %2835 = vst.msk [vmem:[%s4678_s25 + $0x10] sm:$0xff] %vm437_vm12, %v3780_v0  ;;  %s3311_s9 = smul.u32 768, %s3863_s11  ;;  %s2887_s26 = sshll.u32 %s4678_s25, 4  ;;  %s4727_s26 = int_to_ptr.vmem [resolvable:$true] %s2887_s26 }
 0x100   : > { %v4189_v11 = vld [vmem:[#allocation2 + $0x10] sm:$0xff]  ;;  %631 = vrot.lane.b32.xlu1 %v4176_v8, %s3784_s17  ;;  %2833 = vst.msk [vmem:[%s4678_s25] sm:$0xff] %vm435_vm11, %v3780_v0  ;;  %2834 = vst.msk [vmem:[%s4678_s25 + $0x18] sm:$0xff] %vm435_vm11, %v3780_v0  ;;  %s2874_s11 = scalar_lea.sflag [#allocation5], %s4129_s16  ;;  %p4808_p1 = scmp.ne.s32.totalorder %s4796_s21, 0 }
 0x101   : > { %453 = vrot.lane.b32.xlu0 %v4189_v11, %s3782_s12  ;;  %2836 = vst.msk [vmem:[%s4678_s25 + $0x28] sm:$0xff] %vm437_vm12, %v3780_v0 }
 0x104   : > { %735 = vrot.lane.b32.xlu1 %v4189_v11, %s3785_s15 }
 0x105   : > { %635 = vrot.lane.b32.xlu0 %v4189_v11, %s3784_s17 }
 0x108   : > { %833 = vrot.lane.b32.xlu1 %v4164_v4, %s3786_s20 }
 0x109   : > { %733 = vrot.lane.b32.xlu0 %v4164_v4, %s3785_s15 }
 0x10c   : > { %831 = vrot.lane.b32.xlu1 %v4176_v8, %s3786_s20 }
 0x10d   : > { %731 = vrot.lane.b32.xlu0 %v4176_v8, %s3785_s15 }
 0x110   : > { %935 = vrot.lane.b32.xlu1 %v4189_v11, %s3787_s10 }
 0x111   : > { %835 = vrot.lane.b32.xlu0 %v4189_v11, %s3786_s20 }
 0x114   : > { %1033 = vrot.lane.b32.xlu1 %v4164_v4, %s3788_s22 }
 0x115   : > { %933 = vrot.lane.b32.xlu0 %v4164_v4, %s3787_s10 }
 0x118   : > { %1031 = vrot.lane.b32.xlu1 %v4176_v8, %s3788_s22 }
 0x119   : > { %931 = vrot.lane.b32.xlu0 %v4176_v8, %s3787_s10 }
 0x11c   : > { %1135 = vrot.lane.b32.xlu1 %v4189_v11, %s3789_s19 }
 0x11d   : > { %1035 = vrot.lane.b32.xlu0 %v4189_v11, %s3788_s22 }
 0x120   : > { %1233 = vrot.lane.b32.xlu1 %v4164_v4, %s3790_s13 }
 0x121   : > { %1133 = vrot.lane.b32.xlu0 %v4164_v4, %s3789_s19 }
 0x124   : > { %1231 = vrot.lane.b32.xlu1 %v4176_v8, %s3790_s13 }
 0x125   : > { %1131 = vrot.lane.b32.xlu0 %v4176_v8, %s3789_s19 }
 0x128   : > { %1355 = vrot.lane.b32.xlu1 %v1346_v19, %s3786_s20 }
 0x129   : > { %1235 = vrot.lane.b32.xlu0 %v4189_v11, %s3790_s13 }
 0x12c   : > { %1357 = vrot.lane.b32.xlu1 %v1350_v21, %s3786_s20 }
 0x12d   : > { %1333 = vperm.xlu0 %3451, %v1330_v12  }
 0x131   : > { %1359 = vrot.lane.b32.xlu0 %v1354_v20, %s3786_s20 }
 0x169   : > { %v452_v22 = vpop.permute.xlu0 %451 }
 0x16a   : > { %v450_v23 = vpop.permute.xlu1 %449 }
 0x16b   : > { %v456_v28 = vsel %vm455_vm2, %v450_v23, %v452_v22 }
 0x16e   : > { %v634_v25 = vpop.permute.xlu1 %633 }
 0x172   : > { %v632_v31 = vpop.permute.xlu1 %631 }
 0x173   : > { %v454_v24 = vpop.permute.xlu0 %453  ;;  %v638_v35 = vsel %vm637_vm4, %v632_v31, %v634_v25 }
 0x174   : > { %3157 = vmatpush3.bf16.msra.mxu1 %v454_v24  ;;  %v457_v26 = vsel %vm455_vm2, %v452_v22, %v454_v24 }
 0x175   : > { %465 = vmatprep.subr.bf16.mxu0 %v457_v26  ;;  %3162 = vmatprep.subr.bf16.mxu1 %v3780_v0 }
 0x176   : > { %466 = vmatpush1.bf16.msra.mxu0 %v456_v28  ;;  %v736_v34 = vpop.permute.xlu1 %735 }
 0x177   : > { %3159 = vmatmul.mubr.msk.bf16.vlgmr.msra.gmra.mrb[0].mxu1 %vm461_vm3, %v445_v27  ;;  %549 = vmatprep.subr.bf16.mxu0 %v4164_v4  ;;  %v636_v29 = vpop.permute.xlu0 %635 }
 0x178   : > { %3163 = vmatpush3.bf16.msra.mxu1 %v4189_v11  ;;  %3164 = vmatprep.mubr.msk.bf16.mxu1 %vm3781_vm1, %v3780_v0  ;;  %v639_v30 = vsel %vm637_vm4, %v634_v25, %v636_v29 }
 0x179   : > { %3046 = vmatmul.mubr.msk.bf16.vlgmr.msra.gmra.mrb[0].mxu0 %vm461_vm3, %v445_v27  ;;  %3168 = vmatprep.subr.bf16.mxu1 %v3780_v0 }
 0x17a   : > { %550 = vmatpush1.bf16.msra.mxu0 %v4176_v8  ;;  %581 = vmatprep.mubr.bf16.mxu0 %v3783_v10  ;;  %v834_v38 = vpop.permute.xlu1 %833 }
 0x17b   : > { %646 = vmatprep.subr.bf16.mxu0 %v639_v30  ;;  %v734_v32 = vpop.permute.xlu0 %733 }
 0x17c   : > { %v739_v36 = vsel %vm737_vm5, %v734_v32, %v736_v34 }
 0x17e   : > { %v832_v43 = vpop.permute.xlu1 %831 }
 0x17f   : > { %3165 = vmatmul.mubr.msk.bf16.vlgmr.msra.gmra.mrb[4].mxu1 %vm461_vm3, %v444_v33  ;;  %v732_v37 = vpop.permute.xlu0 %731  ;;  %v4273_v47 = vsel %vm837_vm6, %v832_v43, %v834_v38 }
 0x180   : > { %3169 = vmatpush3.bf16.msra.mxu1 %v636_v29  ;;  %3170 = vmatprep.mubr.msk.bf16.mxu1 %vm3781_vm1, %v3780_v0  ;;  %v738_v41 = vsel %vm737_vm5, %v732_v37, %v734_v32 }
 0x181   : > { %3048 = vmatmul.mubr.msk.bf16.vlgmr.msra.gmra.mrb[4].mxu0 %vm461_vm3, %v444_v33  ;;  %3174 = vmatprep.subr.bf16.mxu1 %v3780_v0 }
 0x182   : > { %647 = vmatpush1.bf16.msra.mxu0 %v638_v35  ;;  %678 = vmatprep.mubr.bf16.mxu0 %v3783_v10  ;;  %v936_v46 = vpop.permute.xlu1 %935 }
 0x183   : > { %746 = vmatprep.subr.bf16.mxu0 %v739_v36  ;;  %v4257_v40 = vpop.permute.xlu0 %835 }
 0x184   : > { %v4265_v42 = vsel %vm837_vm6, %v834_v38, %v4257_v40 }
 0x186   : > { %v1034_v50 = vpop.permute.xlu1 %1033 }
 0x187   : > { %3171 = vmatmul.mubr.msk.bf16.vlgmr.msra.gmra.mrb[8].mxu1 %vm461_vm3, %v630_v39  ;;  %v934_v44 = vpop.permute.xlu0 %933 }
 0x188   : > { %3175 = vmatpush3.bf16.msra.mxu1 %v736_v34  ;;  %3176 = vmatprep.mubr.msk.bf16.mxu1 %vm3781_vm1, %v3780_v0  ;;  %v939_v48 = vsel %vm937_vm7, %v934_v44, %v936_v46 }
 0x189   : > { %3050 = vmatmul.mubr.msk.bf16.vlgmr.msra.gmra.mrb[8].mxu0 %vm461_vm3, %v630_v39  ;;  %3180 = vmatprep.subr.bf16.mxu1 %v3780_v0 }
 0x18a   : > { %747 = vmatpush1.bf16.msra.mxu0 %v738_v41  ;;  %778 = vmatprep.mubr.bf16.mxu0 %v3783_v10  ;;  %v1032_v55 = vpop.permute.xlu1 %1031 }
 0x18b   : > { %846 = vmatprep.subr.bf16.mxu0 %v4265_v42  ;;  %v932_v49 = vpop.permute.xlu0 %931  ;;  %v1038_v59 = vsel %vm1037_vm8, %v1032_v55, %v1034_v50 }
 0x18c   : > { %v938_v53 = vsel %vm937_vm7, %v932_v49, %v934_v44 }
 0x18e   : > { %v1136_v58 = vpop.permute.xlu1 %1135 }
 0x18f   : > { %3177 = vmatmul.mubr.msk.bf16.vlgmr.msra.gmra.mrb[12].mxu1 %vm461_vm3, %v730_v45  ;;  %v1036_v52 = vpop.permute.xlu0 %1035 }
 0x190   : > { %3181 = vmatpush3.bf16.msra.mxu1 %v4257_v40  ;;  %3182 = vmatprep.mubr.msk.bf16.mxu1 %vm3781_vm1, %v3780_v0  ;;  %v1039_v54 = vsel %vm1037_vm8, %v1034_v50, %v1036_v52 }
 0x191   : > { %3052 = vmatmul.mubr.msk.bf16.vlgmr.msra.gmra.mrb[12].mxu0 %vm461_vm3, %v730_v45  ;;  %3186 = vmatprep.subr.bf16.mxu1 %v3780_v0 }
 0x192   : > { %847 = vmatpush1.bf16.msra.mxu0 %v4273_v47  ;;  %878 = vmatprep.mubr.bf16.mxu0 %v3783_v10  ;;  %v1234_v9 = vpop.permute.xlu1 %1233 }
 0x193   : > { %946 = vmatprep.subr.bf16.mxu0 %v939_v48  ;;  %v1134_v56 = vpop.permute.xlu0 %1133 }
 0x194   : > { %v1139_v60 = vsel %vm1137_vm9, %v1134_v56, %v1136_v58 }
 0x196   : > { %v1232_v15 = vpop.permute.xlu1 %1231 }
 0x197   : > { %3183 = vmatmul.mubr.msk.bf16.vlgmr.msra.gmra.mrb[16].mxu1 %vm461_vm3, %v830_v51  ;;  %v1132_v61 = vpop.permute.xlu0 %1131  ;;  %v1238_v16 = vsel %vm1237_vm10, %v1232_v15, %v1234_v9 }
 0x198   : > { %3187 = vmatpush3.bf16.msra.mxu1 %v936_v46  ;;  %3188 = vmatprep.mubr.msk.bf16.mxu1 %vm3781_vm1, %v3780_v0  ;;  %v1138_v12 = vsel %vm1137_vm9, %v1132_v61, %v1134_v56 }
 0x199   : > { %3054 = vmatmul.mubr.msk.bf16.vlgmr.msra.gmra.mrb[16].mxu0 %vm461_vm3, %v830_v51  ;;  %3192 = vmatprep.subr.bf16.mxu1 %v3780_v0 }
 0x19a   : > { %947 = vmatpush1.bf16.msra.mxu0 %v938_v53  ;;  %978 = vmatprep.mubr.bf16.mxu0 %v3783_v10 }
 0x19b   : > { %1046 = vmatprep.subr.bf16.mxu0 %v1039_v54  ;;  %v1236_v63 = vpop.permute.xlu0 %1235 }
 0x19c   : > { %v1239_v13 = vsel %vm1237_vm10, %v1234_v9, %v1236_v63 }
 0x19f   : > { %3189 = vmatmul.mubr.msk.bf16.vlgmr.msra.gmra.mrb[20].mxu1 %vm461_vm3, %v930_v57 }
 0x1a0   : > { %3193 = vmatpush3.bf16.msra.mxu1 %v1036_v52  ;;  %3194 = vmatprep.mubr.msk.bf16.mxu1 %vm3781_vm1, %v3780_v0 }
 0x1a1   : > { %3056 = vmatmul.mubr.msk.bf16.vlgmr.msra.gmra.mrb[20].mxu0 %vm461_vm3, %v930_v57  ;;  %3198 = vmatprep.subr.bf16.mxu1 %v3780_v0 }
 0x1a2   : > { %1047 = vmatpush1.bf16.msra.mxu0 %v1038_v59  ;;  %1078 = vmatprep.mubr.bf16.mxu0 %v3783_v10 }
 0x1a3   : > { %1146 = vmatprep.subr.bf16.mxu0 %v1139_v60 }
 0x1a7   : > { %3195 = vmatmul.mubr.msk.bf16.vlgmr.msra.gmra.mrb[24].mxu1 %vm461_vm3, %v1030_v62 }
 0x1a8   : > { %3199 = vmatpush3.bf16.msra.mxu1 %v1136_v58  ;;  %3200 = vmatprep.mubr.msk.bf16.mxu1 %vm3781_vm1, %v3780_v0 }
 0x1a9   : > { %3058 = vmatmul.mubr.msk.bf16.vlgmr.msra.gmra.mrb[24].mxu0 %vm461_vm3, %v1030_v62  ;;  %3204 = vmatprep.subr.bf16.mxu1 %v3780_v0 }
 0x1aa   : > { %1147 = vmatpush1.bf16.msra.mxu0 %v1138_v12  ;;  %1178 = vmatprep.mubr.bf16.mxu0 %v3783_v10 }
 0x1ab   : > { %1246 = vmatprep.subr.bf16.mxu0 %v1239_v13 }
 0x1af   : > { %3201 = vmatmul.mubr.msk.bf16.vlgmr.msra.gmra.mrb[28].mxu1 %vm461_vm3, %v1130_v14 }
 0x1b0   : > { %3205 = vmatpush3.bf16.msra.mxu1 %v1236_v63  ;;  %3206 = vmatprep.mubr.msk.bf16.mxu1 %vm3781_vm1, %v3780_v0 }
 0x1b1   : > { %3060 = vmatmul.mubr.msk.bf16.vlgmr.msra.gmra.mrb[28].mxu0 %vm461_vm3, %v1130_v14  ;;  %3210 = vmatprep.subr.bf16.mxu1 %v3780_v0 }
 0x1b2   : > { %1247 = vmatpush1.bf16.msra.mxu0 %v1238_v16  ;;  %1278 = vmatprep.mubr.bf16.mxu0 %v3783_v10 }
 0x1b7   : > { %3207 = vmatmul.mubr.msk.bf16.vlgmr.msra.gmra.mrb[32].mxu1 %vm461_vm3, %v1230_v17 }
 0x1b8   : > { %3212 = vmatprep.mubr.msk.bf16.mxu1 %vm3781_vm1, %v3780_v0 }
 0x1b9   : > { %3062 = vmatmul.mubr.msk.bf16.vlgmr.msra.gmra.mrb[32].mxu0 %vm461_vm3, %v1230_v17 }
 0x1ba   : > { %1448 = vmatprep.mubr.bf16.mxu0 %v3783_v10 }
 0x24a   : > { %v540_v18 = vpop.f32.mrb[0].mxu1 }
 0x24b   : > { %v3160_v19 = vpop.f32.mrb[1].mxu1 }
 0x24c   : > { %v499_v20 = vpop.f32.mrb[0].mxu0  ;;  %v543_v21 = vpop.f32.mrb[2].mxu1 }
 0x24d   : > { %v501_v22 = vpop.f32.mrb[1].mxu0  ;;  %v3161_v23 = vpop.f32.mrb[3].mxu1 }
 0x24e   : > { %v503_v24 = vpop.f32.mrb[2].mxu0 }
 0x24f   : > { %v504_v25 = vpop.f32.mrb[3].mxu0 }
 0x252   : > { %v624_v26 = vpop.f32.mrb[4].mxu1 }
 0x253   : > { %v625_v27 = vadd.f32 %v624_v26, %v540_v18  ;;  %v3166_v28 = vpop.f32.mrb[5].mxu1 }
 0x254   : > { %v583_v29 = vpop.f32.mrb[4].mxu0  ;;  %v627_v30 = vpop.f32.mrb[6].mxu1 }
 0x255   : > { %v584_v31 = vadd.f32 %v583_v29, %v499_v20  ;;  %v585_v32 = vpop.f32.mrb[5].mxu0  ;;  %v3167_v33 = vpop.f32.mrb[7].mxu1 }
 0x256   : > { %v586_v34 = vadd.f32 %v585_v32, %v501_v22  ;;  %v587_v35 = vpop.f32.mrb[6].mxu0 }
 0x257   : > { %v588_v36 = vpop.f32.mrb[7].mxu0 }
 0x25a   : > { %v721_v37 = vpop.f32.mrb[8].mxu1 }
 0x25b   : > { %v729_v38 = vadd.f32 %v721_v37, %v625_v27  ;;  %v3172_v39 = vpop.f32.mrb[9].mxu1 }
 0x25c   : > { %v680_v41 = vpop.f32.mrb[8].mxu0  ;;  %v724_v43 = vpop.f32.mrb[10].mxu1 }
 0x25d   : > { %v727_v44 = vadd.f32 %v680_v41, %v584_v31  ;;  %v682_v45 = vpop.f32.mrb[9].mxu0  ;;  %v3173_v46 = vpop.f32.mrb[11].mxu1 }
 0x25e   : > { %v728_v48 = vadd.f32 %v682_v45, %v586_v34  ;;  %v684_v49 = vpop.f32.mrb[10].mxu0 }
 0x25f   : > { %v685_v50 = vpop.f32.mrb[11].mxu0 }
 0x262   : > { %v821_v51 = vpop.f32.mrb[12].mxu1 }
 0x263   : > { %v829_v52 = vadd.f32 %v821_v51, %v729_v38  ;;  %v3178_v53 = vpop.f32.mrb[13].mxu1 }
 0x264   : > { %v780_v54 = vpop.f32.mrb[12].mxu0  ;;  %v824_v55 = vpop.f32.mrb[14].mxu1 }
 0x265   : > { %v827_v56 = vadd.f32 %v780_v54, %v727_v44  ;;  %v782_v57 = vpop.f32.mrb[13].mxu0  ;;  %v3179_v58 = vpop.f32.mrb[15].mxu1 }
 0x266   : > { %v828_v59 = vadd.f32 %v782_v57, %v728_v48  ;;  %v784_v60 = vpop.f32.mrb[14].mxu0  ;;  %v1356_v57 = vpop.permute.xlu1 %1355 }
 0x267   : > { %v785_v61 = vpop.f32.mrb[15].mxu0 }
 0x26a   : > { %v921_v62 = vpop.f32.mrb[16].mxu1 }
 0x26b   : > { %v929_v63 = vadd.f32 %v921_v62, %v829_v52  ;;  %v3184_v9 = vpop.f32.mrb[17].mxu1 }
 0x26c   : > { %v880_v12 = vpop.f32.mrb[16].mxu0  ;;  %v924_v13 = vpop.f32.mrb[18].mxu1 }
 0x26d   : > { %v927_v14 = vadd.f32 %v880_v12, %v827_v56  ;;  %v882_v15 = vpop.f32.mrb[17].mxu0  ;;  %v3185_v16 = vpop.f32.mrb[19].mxu1 }
 0x26e   : > { %v928_v17 = vadd.f32 %v882_v15, %v828_v59  ;;  %v884_v18 = vpop.f32.mrb[18].mxu0  ;;  %v1334_v56 = vpop.permute.xlu0 %1333 }
 0x26f   : > { %v885_v19 = vpop.f32.mrb[19].mxu0 }
 0x270   : > { %v1358_v19 = vpop.permute.xlu1 %1357 }
 0x272   : > { %v1021_v20 = vpop.f32.mrb[20].mxu1  ;;  %v4323_v16 = vpop.permute.xlu0 %1359 }
 0x273   : > { %v1029_v21 = vadd.f32 %v1021_v20, %v929_v63  ;;  %v3190_v22 = vpop.f32.mrb[21].mxu1 }
 0x274   : > { %v980_v23 = vpop.f32.mrb[20].mxu0  ;;  %v1024_v24 = vpop.f32.mrb[22].mxu1 }
 0x275   : > { %v1027_v25 = vadd.f32 %v980_v23, %v927_v14  ;;  %v982_v26 = vpop.f32.mrb[21].mxu0  ;;  %v3191_v27 = vpop.f32.mrb[23].mxu1  ;;  %v4328_v24 = vsel %vm837_vm6, %v1358_v19, %v4323_v16 }
 0x276   : > { %v1028_v28 = vadd.f32 %v982_v26, %v928_v17  ;;  %v984_v29 = vpop.f32.mrb[22].mxu0  ;;  %v4331_v26 = vsel %vm837_vm6, %v1356_v57, %v1358_v19 }
 0x277   : > { %v985_v30 = vpop.f32.mrb[23].mxu0 }
 0x27a   : > { %v1121_v31 = vpop.f32.mrb[24].mxu1 }
 0x27b   : > { %v1129_v32 = vadd.f32 %v1121_v31, %v1029_v21  ;;  %v3196_v33 = vpop.f32.mrb[25].mxu1 }
 0x27c   : > { %v1080_v34 = vpop.f32.mrb[24].mxu0  ;;  %v1124_v35 = vpop.f32.mrb[26].mxu1 }
 0x27d   : > { %v1127_v36 = vadd.f32 %v1080_v34, %v1027_v25  ;;  %v1082_v37 = vpop.f32.mrb[25].mxu0  ;;  %v3197_v38 = vpop.f32.mrb[27].mxu1  ;;  %v3453_v34 = vld [vmem:[#allocation14] sm:$0xff]  }
 0x27e   : > { %v1128_v39 = vadd.f32 %v1082_v37, %v1028_v28  ;;  %v1084_v41 = vpop.f32.mrb[26].mxu0 }
 0x27f   : > { %v1085_v43 = vpop.f32.mrb[27].mxu0 }
 0x282   : > { %v1221_v44 = vpop.f32.mrb[28].mxu1 }
 0x283   : > { %v1229_v45 = vadd.f32 %v1221_v44, %v1129_v32  ;;  %v3202_v46 = vpop.f32.mrb[29].mxu1 }
 0x284   : > { %v1180_v48 = vpop.f32.mrb[28].mxu0  ;;  %v1224_v49 = vpop.f32.mrb[30].mxu1  ;;  %v3455_v46 = vld [vmem:[#allocation14] sm:$0xff]  }
 0x285   : > { %v1227_v50 = vadd.f32 %v1180_v48, %v1127_v36  ;;  %v1182_v51 = vpop.f32.mrb[29].mxu0  ;;  %v3203_v52 = vpop.f32.mrb[31].mxu1 }
 0x286   : > { %v1228_v53 = vadd.f32 %v1182_v51, %v1128_v39  ;;  %v1184_v54 = vpop.f32.mrb[30].mxu0  ;;  %v2776_v51 = vld [vmem:[#allocation15 + $0x8] sm:$0xff]  ;;  %v2624_v52 = vld [vmem:[#allocation12] sm:$0xff] }
 0x287   : > { %v1185_v55 = vpop.f32.mrb[31].mxu0 }
 0x28a   : > { %v1321_v58 = vpop.f32.mrb[32].mxu1 }
 0x28b   : > { %v1329_v59 = vadd.f32 %v1321_v58, %v1229_v45  ;;  %v3208_v60 = vpop.f32.mrb[33].mxu1 }
 0x28c   : > { %v1280_v61 = vpop.f32.mrb[32].mxu0  ;;  %v1324_v62 = vpop.f32.mrb[34].mxu1 }
 0x28d   : > { %v1338_v63 = vadd.f32 %v1334_v56, %v1329_v59  ;;  %v1327_v9 = vadd.f32 %v1280_v61, %v1227_v50  ;;  %v1282_v12 = vpop.f32.mrb[33].mxu0  ;;  %v3209_v13 = vpop.f32.mrb[35].mxu1  ;;  %v3454_v50 = vld [vmem:[#allocation14] sm:$0xff]  }
 0x28e   : > { %v1328_v14 = vadd.f32 %v1282_v12, %v1228_v53  ;;  %v1284_v15 = vpop.f32.mrb[34].mxu0  ;;  %v2775_v53 = vld [vmem:[#allocation15] sm:$0xff] }
 0x28f   : > { %v1341_v17 = vmax.f32 %v1338_v63, 0.0  ;;  %v1336_v18 = vadd.f32 %v1334_v56, %v1327_v9  ;;  %v1285_v20 = vpop.f32.mrb[35].mxu0  ;;  %v1599_v15 = vld [vmem:[#allocation11 + $0x4] sm:$0xf] }
 0x290   : > { %v1337_v21 = vadd.f32 %v1334_v56, %v1328_v14  ;;  %v1598_v20 = vld [vmem:[#allocation11] sm:$0xf] }
 0x291   : > { %v1339_v22 = vmax.f32 %v1336_v18, 0.0  ;;  %v1369_v23 = vmul.f32 %v4323_v16, %v1341_v17 }
 0x292   : > { %v1340_v25 = vmax.f32 %v1337_v21, 0.0 }
 0x293   : > { %v1372_v27 = vpack.c.bf16 %v1369_v23, %v1369_v23  ;;  %v1367_v28 = vmul.f32 %v4331_v26, %v1339_v22 }
 0x294   : > { %v1368_v29 = vmul.f32 %v4328_v24, %v1340_v25 }
 0x295   : > { %v1414_v30 = vsel %vm1406_vm13, %v1372_v27, 0  ;;  %v1370_v31 = vpack.c.bf16 %v1367_v28, %v1367_v28 }
 0x296   : > { %3211 = vmatpush3.bf16.msra.mxu1 %v1414_v30  ;;  %v1371_v32 = vpack.c.bf16 %v1368_v29, %v1368_v29 }
 0x297   : > { %1376 = vrot.lane.b32.xlu1 %v1370_v31, %s3791_s1  ;;  %v1408_v33 = vsel %vm1406_vm13, %v1370_v31, 0  ;;  %3216 = vmatprep.subr.bf16.mxu1 %v3780_v0 }
 0x298   : > { %1378 = vrot.lane.b32.xlu0 %v1371_v32, %s3791_s1  ;;  %3065 = vmatprep.subr.msk.bf16.mxu0 %vm1406_vm13, %v1371_v32 }
 0x299   : > { %1417 = vmatpush1.bf16.msra.mxu0 %v1408_v33  ;;  %v1812_v33 = vld [vmem:[#allocation11 + $0x8] sm:$0xf] }
 0x29a   : > { %1508 = vmatprep.subr.bf16.mxu0 %v4265_v42 }
 0x29b   : > { %1380 = vrot.lane.b32.xlu1 %v1372_v27, %s3791_s1 }
 0x29c   : > { %1400 = vrot.lane.b32.xlu0 %v3453_v34, %s3792_s2 }
 0x29f   : > { %1608 = vrot.lane.b32.xlu1 %v4164_v4, %s3782_s12 }
 0x2a0   : > { %1610 = vrot.lane.b32.xlu0 %v4189_v11, %s3782_s12 }
 0x2a3   : > { %1606 = vrot.lane.b32.xlu1 %v4176_v8, %s3782_s12 }
 0x2a4   : > { %1817 = vrot.lane.b32.xlu0 %v4189_v11, %s3784_s17 }
 0x2a7   : > { %1815 = vrot.lane.b32.xlu1 %v4164_v4, %s3784_s17 }
 0x2a8   : > { %1933 = vrot.lane.b32.xlu0 %v4189_v11, %s3785_s15 }
 0x2ab   : > { %1813 = vrot.lane.b32.xlu1 %v4176_v8, %s3784_s17 }
 0x2ac   : > { %2049 = vrot.lane.b32.xlu0 %v4189_v11, %s3786_s20 }
 0x2af   : > { %1931 = vrot.lane.b32.xlu1 %v4164_v4, %s3785_s15 }
 0x2b3   : > { %1929 = vrot.lane.b32.xlu1 %v4176_v8, %s3785_s15 }
 0x2b7   : > { %2047 = vrot.lane.b32.xlu1 %v4164_v4, %s3786_s20 }
 0x309   : > { %v1377_v42 = vpop.permute.xlu1 %1376 }
 0x30a   : > { %1389 = vst.msk [vmem:[#allocation2 + $0x18] sm:$0xf] %vm1388_vm14, %v1377_v42  ;;  %v1379_v35 = vpop.permute.xlu0 %1378 }
 0x30b   : > { %v1383_v36 = vsel %vm435_vm11, %v1377_v42, %v1379_v35 }
 0x30c   : > { %1390 = vst [vmem:[#allocation2 + $0x20] sm:$0xf] %v1383_v36 }
 0x30d   : > { %v1381_v37 = vpop.permute.xlu1 %1380 }
 0x30e   : > { %v1384_v38 = vsel %vm435_vm11, %v1379_v35, %v1381_v37  ;;  %v1401_v39 = vpop.permute.xlu0 %1400 }
 0x30f   : > { %1392 = vst.msk [vmem:[#allocation2 + $0x28] sm:$0xf] %vm1391_vm15, %v1384_v38  ;;  %3066 = vmatmul.mubr.msk.bf16.vlgmr.msra.gmra.mrb[36].mxu0 %vm1402_vm0, %v1401_v39  ;;  %3213 = vmatmul.mubr.msk.bf16.vlgmr.msra.gmra.mrb[36].mxu1 %vm1402_vm0, %v1401_v39 }
 0x310   : > { %1509 = vmatpush1.bf16.msra.mxu0 %v4273_v47  ;;  %3217 = vmatpush3.bf16.msra.mxu1 %v4257_v40 }
 0x311   : > { %v4371_v41 = vld [vmem:[#allocation2 + $0x18] sm:$0xf]  ;;  %3218 = vmatprep.mubr.msk.bf16.mxu1 %vm3781_vm1, %v3780_v0  ;;  %3222 = vmatprep.subr.bf16.mxu1 %v3780_v0  ;;  %v1609_v43 = vpop.permute.xlu1 %1608 }
 0x312   : > { %1612 = vrot.lane.b32.xlu0 %v4371_v41, %s3782_s12  ;;  %v1611_v44 = vpop.permute.xlu0 %1610  ;;  %1540 = vmatprep.mubr.bf16.mxu0 %v3783_v10 }
 0x313   : > { %v4379_v45 = vld [vmem:[#allocation2 + $0x20] sm:$0xf]  ;;  %v1619_v47 = vsel %vm455_vm2, %v1609_v43, %v1611_v44 }
 0x314   : > { %1614 = vrot.lane.b32.xlu1 %v4379_v45, %s3782_s12  ;;  %1638 = vmatprep.subr.bf16.mxu0 %v1619_v47 }
 0x315   : > { %v1607_v40 = vpop.permute.xlu1 %1606 }
 0x316   : > { %1819 = vrot.lane.b32.xlu0 %v4371_v41, %s3784_s17  ;;  %v1618_v48 = vsel %vm455_vm2, %v1607_v40, %v1609_v43  ;;  %v4398_v49 = vld [vmem:[#allocation2 + $0x28] sm:$0xf]  ;;  %v1818_v56 = vpop.permute.xlu0 %1817 }
 0x317   : > { %3219 = vmatmul.mubr.msk.bf16.vlgmr.msra.gmra.mrb[40].mxu1 %vm461_vm3, %v3455_v46 }
 0x318   : > { %2045 = vrot.lane.b32.xlu1 %v4176_v8, %s3786_s20  ;;  %3223 = vmatpush3.bf16.msra.mxu1 %v1611_v44 }
 0x319   : > { %3224 = vmatprep.subr.bf16.mxu1 %v3780_v0  ;;  %3226 = vmatprep.mubr.msk.bf16.mxu1 %vm3781_vm1, %v3780_v0  ;;  %v1816_v54 = vpop.permute.xlu1 %1815 }
 0x31a   : > { %1935 = vrot.lane.b32.xlu0 %v4371_v41, %s3785_s15  ;;  %v1826_v21 = vsel %vm637_vm4, %v1816_v54, %v1818_v56 }
 0x31b   : > { %3069 = vmatmul.mubr.msk.bf16.vlgmr.msra.gmra.mrb[36].mxu0 %vm461_vm3, %v3455_v46  ;;  %vm1625_vm3 = vcmask 195584  }
 0x31c   : > { %2163 = vrot.lane.b32.xlu1 %v4164_v4, %s3787_s10  ;;  %1639 = vmatpush1.bf16.msra.mxu0 %v1618_v48 }
 0x31d   : > { %1670 = vmatprep.mubr.bf16.mxu0 %v3783_v10  ;;  %v1814_v55 = vpop.permute.xlu1 %1813 }
 0x31e   : > { %1616 = vrot.lane.b32.xlu0 %v4398_v49, %s3782_s12  ;;  %v1825_v23 = vsel %vm637_vm4, %v1814_v55, %v1816_v54  ;;  %v2044_v55 = vld [vmem:[#allocation11 + $0x10] sm:$0xf] }
 0x320   : > { %2161 = vrot.lane.b32.xlu1 %v4176_v8, %s3787_s10 }
 0x321   : > { %v4473_v57 = vpop.permute.xlu1 %1931 }
 0x322   : > { %2051 = vrot.lane.b32.xlu0 %v4371_v41, %s3786_s20 }
 0x324   : > { %1821 = vrot.lane.b32.xlu1 %v4379_v45, %s3784_s17 }
 0x325   : > { %v4479_v58 = vpop.permute.xlu1 %1929 }
 0x326   : > { %2165 = vrot.lane.b32.xlu0 %v4189_v11, %s3787_s10  ;;  %v1941_v35 = vsel %vm737_vm5, %v4479_v58, %v4473_v57 }
 0x328   : > { %2279 = vrot.lane.b32.xlu1 %v4164_v4, %s3788_s22 }
 0x32a   : > { %2167 = vrot.lane.b32.xlu0 %v4371_v41, %s3787_s10 }
 0x32c   : > { %1937 = vrot.lane.b32.xlu1 %v4379_v45, %s3785_s15 }
 0x32e   : > { %1823 = vrot.lane.b32.xlu0 %v4398_v49, %s3784_s17 }
 0x330   : > { %2277 = vrot.lane.b32.xlu1 %v4176_v8, %s3788_s22 }
 0x332   : > { %2281 = vrot.lane.b32.xlu0 %v4189_v11, %s3788_s22 }
 0x334   : > { %2053 = vrot.lane.b32.xlu1 %v4379_v45, %s3786_s20 }
 0x336   : > { %1939 = vrot.lane.b32.xlu0 %v4398_v49, %s3785_s15  ;;  %s4725_s15 = scalar_lea.hbm %s4783_s8, %s3311_s9 }
 0x338   : > { %2395 = vrot.lane.b32.xlu1 %v4164_v4, %s3789_s19 }
 0x33a   : > { %2283 = vrot.lane.b32.xlu0 %v4371_v41, %s3788_s22 }
 0x33c   : > { %2169 = vrot.lane.b32.xlu1 %v4379_v45, %s3787_s10 }
 0x33e   : > { %2055 = vrot.lane.b32.xlu0 %v4398_v49, %s3786_s20 }
 0x340   : > { %2393 = vrot.lane.b32.xlu1 %v4176_v8, %s3789_s19 }
 0x342   : > { %2397 = vrot.lane.b32.xlu0 %v4189_v11, %s3789_s19 }
 0x344   : > { %2285 = vrot.lane.b32.xlu1 %v4379_v45, %s3788_s22 }
 0x346   : > { %2171 = vrot.lane.b32.xlu0 %v4398_v49, %s3787_s10  ;;  %s3794_s10 = smov [#allocation17]  }
 0x348   : > { %2511 = vrot.lane.b32.xlu1 %v4164_v4, %s3790_s13 }
 0x34a   : > { %2399 = vrot.lane.b32.xlu0 %v4371_v41, %s3789_s19 }
 0x34c   : > { %2401 = vrot.lane.b32.xlu1 %v4379_v45, %s3789_s19 }
 0x34e   : > { %2287 = vrot.lane.b32.xlu0 %v4398_v49, %s3788_s22  ;;  %s3686_s22 = sshll.u32 %s3794_s10, 4  ;;  %s3687_s22 = int_to_ptr.vmem [resolvable:$false] %s3686_s22 }
 0x34f   : > { %p3689_p2 = scmp.lt.s32.totalorder %s4727_s26, %s3687_s22 }
 0x350   : > { %2509 = vrot.lane.b32.xlu1 %v4176_v8, %s3790_s13 }
 0x352   : > { %2513 = vrot.lane.b32.xlu0 %v4189_v11, %s3790_s13 }
 0x354   : > { %2517 = vrot.lane.b32.xlu1 %v4379_v45, %s3790_s13 }
 0x356   : > { %2403 = vrot.lane.b32.xlu0 %v4398_v49, %s3789_s19  ;;  %s3688_s19 = scalar_lea.vmem %s3687_s22, 1536 }
 0x358   : > { %2627 = vperm.xlu1 %3452, %v2624_v52  }
 0x35a   : > { %2515 = vrot.lane.b32.xlu0 %v4371_v41, %s3790_s13 }
 0x35c   : > { %2779 = vperm.xlu1 %3452, %v2775_v53  }
 0x35e   : > { %2519 = vrot.lane.b32.xlu0 %v4398_v49, %s3790_s13 }
 0x360   : > { %2805 = vrot.lane.b32.xlu1 %v4160_v3, %s3786_s20 }
 0x362   : > { %2671 = vrot.lane.b32.xlu0 %v3454_v50, %s3793_s23 }
 0x364   : > { %2809 = vrot.lane.b32.xlu1 %v4168_v6, %s3786_s20 }
 0x366   : > { %2784 = vperm.xlu0 %3451, %v2776_v51  }
 0x368   : > { %2813 = vrot.lane.b32.xlu1 %v4158_v2, %s3786_s20 }
 0x36a   : > { %2807 = vrot.lane.b32.xlu0 %v4156_v1, %s3786_s20  ;;  %v4477_v1 = vpop.permute.xlu0 %1933 }
 0x36b   : > { %v1942_v34 = vsel %vm737_vm5, %v4473_v57, %v4477_v1 }
 0x36e   : > { %2811 = vrot.lane.b32.xlu0 %v4166_v5, %s3786_s20  ;;  %v4481_v3 = vpop.permute.xlu0 %2049  ;;  %v4483_v5 = vpop.permute.xlu1 %2047 }
 0x36f   : > { %v2058_v46 = vsel %vm837_vm6, %v4483_v5, %v4481_v3 }
 0x372   : > { %2815 = vrot.lane.b32.xlu0 %v4170_v7, %s3786_s20  ;;  %s3682_s20 = scalar_lea.vmem %s4727_s26, 768 }
 0x373   : > { %p3683_p4 = scmp.ne.s32.totalorder %s4727_s26, %s3682_s20  ;;  %p3690_p8 = scmp.lt.s32.totalorder %s3688_s19, %s3682_s20 }
 0x375   : > { %p3684_p13 = pnand %p3683_p4, %p4808_p1  ;;  %p3691_p6 = por %p3690_p8, %p3689_p2 }
 0x377   : > { %p3685_p0 = pneg %p3684_p13 }
 0x379   : > { %p3692_p11 = pnand %p3691_p6, %p3685_p0 }
 0x384   : > { %v1613_v59 = vpop.permute.xlu0 %1612 }
 0x386   : > { %v1615_v60 = vpop.permute.xlu1 %1614 }
 0x387   : > { %v1620_v63 = vsel %vm455_vm2, %v1613_v59, %v1615_v60 }
 0x388   : > { %v1820_v61 = vpop.permute.xlu0 %1819  ;;  %v1630_v13 = vsel %vm1406_vm13, %v1620_v63, 0 }
 0x38a   : > { %v4485_v6 = vpop.permute.xlu1 %2045 }
 0x38b   : > { %v2057_v40 = vsel %vm837_vm6, %v4485_v6, %v4483_v5  ;;  %v2160_v6 = vld [vmem:[#allocation11 + $0x14] sm:$0xf] }
 0x38c   : > { %v4487_v62 = vpop.permute.xlu0 %1935 }
 0x38e   : > { %v4489_v7 = vpop.permute.xlu1 %2163 }
 0x390   : > { %v1617_v2 = vpop.permute.xlu0 %1616 }
 0x391   : > { %v1621_v9 = vsel %vm455_vm2, %v1615_v60, %v1617_v2  ;;  %v1636_v12 = vsel %vm1406_vm13, %v1617_v2, 0  ;;  %vm2868_vm2 = vcmask 400384  }
 0x392   : > { %3225 = vmatpush3.bf16.msra.mxu1 %v1636_v12  ;;  %v4495_v14 = vpop.permute.xlu1 %2161  ;;  %3071 = vmatprep.subr.msk.bf16.mxu0 %vm1406_vm13, %v1621_v9 }
 0x393   : > { %1641 = vmatpush1.bf16.msra.mxu0 %v1630_v13  ;;  %3230 = vmatprep.subr.bf16.mxu1 %v3780_v0 }
 0x394   : > { %v4499_v17 = vpop.permute.xlu0 %2051  ;;  %1731 = vmatprep.subr.bf16.mxu0 %v4164_v4  ;;  %v1729_v4 = vsel %vm1406_vm13, %v4398_v49, 0 }
 0x395   : > { %3227 = vmatmul.mubr.msk.bf16.vlgmr.msra.gmra.mrb[44].mxu1 %vm1625_vm3, %v1599_v15 }
 0x396   : > { %3231 = vmatpush3.bf16.msra.mxu1 %v4189_v11  ;;  %v1822_v18 = vpop.permute.xlu1 %1821  ;;  %3072 = vmatmul.mubr.msk.bf16.vlgmr.msra.gmra.mrb[40].mxu0 %vm1625_vm3, %v1599_v15 }
 0x397   : > { %1732 = vmatpush1.bf16.msra.mxu0 %v4176_v8  ;;  %3232 = vmatprep.subr.bf16.mxu1 %v3780_v0  ;;  %v1723_v8 = vsel %vm1406_vm13, %v4371_v41, 0  ;;  %v1827_v27 = vsel %vm637_vm4, %v1820_v61, %v1822_v18 }
 0x398   : > { %v4507_v19 = vpop.permute.xlu0 %2165  ;;  %3074 = vmatprep.subr.msk.bf16.mxu0 %vm1406_vm13, %v4379_v45  ;;  %3234 = vmatprep.mubr.msk.bf16.mxu1 %vm3781_vm1, %v3780_v0  ;;  %v1836_v31 = vsel %vm1406_vm13, %v1827_v27, 0  ;;  %v1928_v45 = vld [vmem:[#allocation11 + $0xc] sm:$0xf]  ;;  %v2392_v27 = vld [vmem:[#allocation11 + $0x1c] sm:$0xf] }
 0x399   : > { %1763 = vmatprep.mubr.bf16.mxu0 %v3783_v10 }
 0x39a   : > { %3233 = vmatpush3.bf16.msra.mxu1 %v1729_v4  ;;  %v4516_v11 = vpop.permute.xlu1 %2279 }
 0x39b   : > { %1734 = vmatpush1.bf16.msra.mxu0 %v1723_v8  ;;  %3238 = vmatprep.subr.bf16.mxu1 %v3780_v0 }
 0x39c   : > { %v4522_v22 = vpop.permute.xlu0 %2167  ;;  %1844 = vmatprep.subr.bf16.mxu0 %v1826_v21 }
 0x39d   : > { %3235 = vmatmul.mubr.msk.bf16.vlgmr.msra.gmra.mrb[48].mxu1 %vm1625_vm3, %v1598_v20 }
 0x39e   : > { %3239 = vmatpush3.bf16.msra.mxu1 %v1818_v56  ;;  %v1938_v25 = vpop.permute.xlu1 %1937  ;;  %3075 = vmatmul.mubr.msk.bf16.vlgmr.msra.gmra.mrb[44].mxu0 %vm1625_vm3, %v1598_v20  ;;  %v2174_v56 = vsel %vm937_vm7, %v4489_v7, %v4507_v19 }
 0x39f   : > { %1845 = vmatpush1.bf16.msra.mxu0 %v1825_v23  ;;  %3240 = vmatprep.subr.bf16.mxu1 %v3780_v0  ;;  %v1943_v37 = vsel %vm737_vm5, %v4487_v62, %v1938_v25 }
 0x3a0   : > { %v1824_v28 = vpop.permute.xlu0 %1823  ;;  %3242 = vmatprep.mubr.msk.bf16.mxu1 %vm3781_vm1, %v3780_v0  ;;  %1876 = vmatprep.mubr.bf16.mxu0 %v3783_v10  ;;  %v1952_v43 = vsel %vm1406_vm13, %v1943_v37, 0 }
 0x3a1   : > { %v1828_v29 = vsel %vm637_vm4, %v1822_v18, %v1824_v28  ;;  %v1842_v30 = vsel %vm1406_vm13, %v1824_v28, 0  ;;  %v2276_v18 = vld [vmem:[#allocation11 + $0x18] sm:$0xf] }
 0x3a2   : > { %3241 = vmatpush3.bf16.msra.mxu1 %v1842_v30  ;;  %v4535_v32 = vpop.permute.xlu1 %2277  ;;  %3077 = vmatprep.subr.msk.bf16.mxu0 %vm1406_vm13, %v1828_v29 }
 0x3a3   : > { %1847 = vmatpush1.bf16.msra.mxu0 %v1836_v31  ;;  %3246 = vmatprep.subr.bf16.mxu1 %v3780_v0  ;;  %v2289_v2 = vsel %vm1037_vm8, %v4535_v32, %v4516_v11 }
 0x3a4   : > { %v4542_v42 = vpop.permute.xlu0 %2281  ;;  %1960 = vmatprep.subr.bf16.mxu0 %v1942_v34 }
 0x3a5   : > { %3243 = vmatmul.mubr.msk.bf16.vlgmr.msra.gmra.mrb[52].mxu1 %vm1625_vm3, %v1812_v33  ;;  %v2290_v62 = vsel %vm1037_vm8, %v4516_v11, %v4542_v42 }
 0x3a6   : > { %3247 = vmatpush3.bf16.msra.mxu1 %v4477_v1  ;;  %v2054_v36 = vpop.permute.xlu1 %2053  ;;  %3078 = vmatmul.mubr.msk.bf16.vlgmr.msra.gmra.mrb[48].mxu0 %vm1625_vm3, %v1812_v33  ;;  %v2173_v1 = vsel %vm937_vm7, %v4495_v14, %v4489_v7 }
 0x3a7   : > { %1961 = vmatpush1.bf16.msra.mxu0 %v1941_v35  ;;  %3248 = vmatprep.subr.bf16.mxu1 %v3780_v0  ;;  %v2059_v49 = vsel %vm837_vm6, %v4499_v17, %v2054_v36 }
 0x3a8   : > { %v1940_v38 = vpop.permute.xlu0 %1939  ;;  %3250 = vmatprep.mubr.msk.bf16.mxu1 %vm3781_vm1, %v3780_v0  ;;  %1992 = vmatprep.mubr.bf16.mxu0 %v3783_v10  ;;  %v2068_v53 = vsel %vm1406_vm13, %v2059_v49, 0 }
 0x3a9   : > { %v1944_v39 = vsel %vm737_vm5, %v1938_v25, %v1940_v38  ;;  %v1958_v41 = vsel %vm1406_vm13, %v1940_v38, 0 }
 0x3aa   : > { %3249 = vmatpush3.bf16.msra.mxu1 %v1958_v41  ;;  %v4559_v44 = vpop.permute.xlu1 %2395  ;;  %3080 = vmatprep.subr.msk.bf16.mxu0 %vm1406_vm13, %v1944_v39 }
 0x3ab   : > { %1963 = vmatpush1.bf16.msra.mxu0 %v1952_v43  ;;  %3254 = vmatprep.subr.bf16.mxu1 %v3780_v0 }
 0x3ac   : > { %v2284_v47 = vpop.permute.xlu0 %2283  ;;  %2076 = vmatprep.subr.bf16.mxu0 %v2058_v46 }
 0x3ad   : > { %3251 = vmatmul.mubr.msk.bf16.vlgmr.msra.gmra.mrb[56].mxu1 %vm1625_vm3, %v1928_v45 }
 0x3ae   : > { %3255 = vmatpush3.bf16.msra.mxu1 %v4481_v3  ;;  %v2170_v48 = vpop.permute.xlu1 %2169  ;;  %3081 = vmatmul.mubr.msk.bf16.vlgmr.msra.gmra.mrb[52].mxu0 %vm1625_vm3, %v1928_v45 }
 0x3af   : > { %2077 = vmatpush1.bf16.msra.mxu0 %v2057_v40  ;;  %3256 = vmatprep.subr.bf16.mxu1 %v3780_v0  ;;  %v2175_v3 = vsel %vm937_vm7, %v4522_v22, %v2170_v48 }
 0x3b0   : > { %v2056_v50 = vpop.permute.xlu0 %2055  ;;  %3258 = vmatprep.mubr.msk.bf16.mxu1 %vm3781_vm1, %v3780_v0  ;;  %2108 = vmatprep.mubr.bf16.mxu0 %v3783_v10  ;;  %v2184_v61 = vsel %vm1406_vm13, %v2175_v3, 0 }
 0x3b1   : > { %v2060_v51 = vsel %vm837_vm6, %v2054_v36, %v2056_v50  ;;  %v2074_v52 = vsel %vm1406_vm13, %v2056_v50, 0  ;;  %v2508_v36 = vld [vmem:[#allocation11 + $0x20] sm:$0xf] }
 0x3b2   : > { %3257 = vmatpush3.bf16.msra.mxu1 %v2074_v52  ;;  %v2394_v54 = vpop.permute.xlu1 %2393  ;;  %3083 = vmatprep.subr.msk.bf16.mxu0 %vm1406_vm13, %v2060_v51 }
 0x3b3   : > { %2079 = vmatpush1.bf16.msra.mxu0 %v2068_v53  ;;  %3262 = vmatprep.subr.bf16.mxu1 %v3780_v0  ;;  %v2405_v11 = vsel %vm1137_vm9, %v2394_v54, %v4559_v44 }
 0x3b4   : > { %v2398_v57 = vpop.permute.xlu0 %2397  ;;  %2192 = vmatprep.subr.bf16.mxu0 %v2174_v56 }
 0x3b5   : > { %3259 = vmatmul.mubr.msk.bf16.vlgmr.msra.gmra.mrb[60].mxu1 %vm1625_vm3, %v2044_v55 }
 0x3b6   : > { %3263 = vmatpush3.bf16.msra.mxu1 %v4507_v19  ;;  %v2286_v58 = vpop.permute.xlu1 %2285  ;;  %3084 = vmatmul.mubr.msk.bf16.vlgmr.msra.gmra.mrb[56].mxu0 %vm1625_vm3, %v2044_v55  ;;  %v2406_v19 = vsel %vm1137_vm9, %v4559_v44, %v2398_v57 }
 0x3b7   : > { %2193 = vmatpush1.bf16.msra.mxu0 %v2173_v1  ;;  %3264 = vmatprep.subr.bf16.mxu1 %v3780_v0  ;;  %v2291_v9 = vsel %vm1037_vm8, %v2284_v47, %v2286_v58 }
 0x3b8   : > { %v2172_v5 = vpop.permute.xlu0 %2171  ;;  %3266 = vmatprep.mubr.msk.bf16.mxu1 %vm3781_vm1, %v3780_v0  ;;  %2224 = vmatprep.mubr.bf16.mxu0 %v3783_v10  ;;  %v2300_v15 = vsel %vm1406_vm13, %v2291_v9, 0 }
 0x3b9   : > { %v2176_v59 = vsel %vm937_vm7, %v2170_v48, %v2172_v5  ;;  %v2190_v60 = vsel %vm1406_vm13, %v2172_v5, 0 }
 0x3ba   : > { %3265 = vmatpush3.bf16.msra.mxu1 %v2190_v60  ;;  %3086 = vmatprep.subr.msk.bf16.mxu0 %vm1406_vm13, %v2176_v59  ;;  %v2512_v7 = vpop.permute.xlu1 %2511 }
 0x3bb   : > { %2195 = vmatpush1.bf16.msra.mxu0 %v2184_v61  ;;  %3270 = vmatprep.subr.bf16.mxu1 %v3780_v0 }
 0x3bc   : > { %v2400_v63 = vpop.permute.xlu0 %2399  ;;  %2308 = vmatprep.subr.bf16.mxu0 %v2290_v62 }
 0x3bd   : > { %3267 = vmatmul.mubr.msk.bf16.vlgmr.msra.gmra.mrb[64].mxu1 %vm1625_vm3, %v2160_v6 }
 0x3be   : > { %3271 = vmatpush3.bf16.msra.mxu1 %v4542_v42  ;;  %3087 = vmatmul.mubr.msk.bf16.vlgmr.msra.gmra.mrb[60].mxu0 %vm1625_vm3, %v2160_v6  ;;  %v2402_v17 = vpop.permute.xlu1 %2401 }
 0x3bf   : > { %2309 = vmatpush1.bf16.msra.mxu0 %v2289_v2  ;;  %3272 = vmatprep.subr.bf16.mxu1 %v3780_v0  ;;  %v2407_v8 = vsel %vm1137_vm9, %v2400_v63, %v2402_v17 }
 0x3c0   : > { %v2288_v12 = vpop.permute.xlu0 %2287  ;;  %3274 = vmatprep.mubr.msk.bf16.mxu1 %vm3781_vm1, %v3780_v0  ;;  %2340 = vmatprep.mubr.bf16.mxu0 %v3783_v10  ;;  %v2416_v25 = vsel %vm1406_vm13, %v2407_v8, 0 }
 0x3c1   : > { %v2292_v13 = vsel %vm1037_vm8, %v2286_v58, %v2288_v12  ;;  %v2306_v14 = vsel %vm1406_vm13, %v2288_v12, 0 }
 0x3c2   : > { %3273 = vmatpush3.bf16.msra.mxu1 %v2306_v14  ;;  %3089 = vmatprep.subr.msk.bf16.mxu0 %vm1406_vm13, %v2292_v13  ;;  %v2510_v20 = vpop.permute.xlu1 %2509 }
 0x3c3   : > { %2311 = vmatpush1.bf16.msra.mxu0 %v2300_v15  ;;  %3278 = vmatprep.subr.bf16.mxu1 %v3780_v0  ;;  %v2521_v30 = vsel %vm1237_vm10, %v2510_v20, %v2512_v7 }
 0x3c4   : > { %v2514_v4 = vpop.permute.xlu0 %2513  ;;  %2424 = vmatprep.subr.bf16.mxu0 %v2406_v19 }
 0x3c5   : > { %3275 = vmatmul.mubr.msk.bf16.vlgmr.msra.gmra.mrb[68].mxu1 %vm1625_vm3, %v2276_v18  ;;  %v2522_v28 = vsel %vm1237_vm10, %v2512_v7, %v2514_v4 }
 0x3c6   : > { %3279 = vmatpush3.bf16.msra.mxu1 %v2398_v57  ;;  %3090 = vmatmul.mubr.msk.bf16.vlgmr.msra.gmra.mrb[64].mxu0 %vm1625_vm3, %v2276_v18  ;;  %v2518_v31 = vpop.permute.xlu1 %2517 }
 0x3c7   : > { %2425 = vmatpush1.bf16.msra.mxu0 %v2405_v11  ;;  %3280 = vmatprep.subr.bf16.mxu1 %v3780_v0 }
 0x3c8   : > { %v2404_v21 = vpop.permute.xlu0 %2403  ;;  %3282 = vmatprep.mubr.msk.bf16.mxu1 %vm3781_vm1, %v3780_v0  ;;  %2456 = vmatprep.mubr.bf16.mxu0 %v3783_v10 }
 0x3c9   : > { %v2408_v22 = vsel %vm1137_vm9, %v2402_v17, %v2404_v21  ;;  %v2422_v23 = vsel %vm1406_vm13, %v2404_v21, 0 }
 0x3ca   : > { %3092 = vmatprep.subr.msk.bf16.mxu0 %vm1406_vm13, %v2408_v22  ;;  %3281 = vmatpush3.bf16.msra.mxu1 %v2422_v23 }
 0x3cb   : > { %2427 = vmatpush1.bf16.msra.mxu0 %v2416_v25  ;;  %3286 = vmatprep.subr.bf16.mxu1 %v3780_v0 }
 0x3cc   : > { %v2516_v29 = vpop.permute.xlu0 %2515  ;;  %2540 = vmatprep.subr.bf16.mxu0 %v2522_v28 }
 0x3cd   : > { %3283 = vmatmul.mubr.msk.bf16.vlgmr.msra.gmra.mrb[72].mxu1 %vm1625_vm3, %v2392_v27  ;;  %v2523_v32 = vsel %vm1237_vm10, %v2516_v29, %v2518_v31 }
 0x3ce   : > { %3093 = vmatmul.mubr.msk.bf16.vlgmr.msra.gmra.mrb[68].mxu0 %vm1625_vm3, %v2392_v27  ;;  %3287 = vmatpush3.bf16.msra.mxu1 %v2514_v4  ;;  %v2532_v35 = vsel %vm1406_vm13, %v2523_v32, 0 }
 0x3cf   : > { %2541 = vmatpush1.bf16.msra.mxu0 %v2521_v30  ;;  %3288 = vmatprep.subr.bf16.mxu1 %v3780_v0 }
 0x3d0   : > { %v2520_v33 = vpop.permute.xlu0 %2519  ;;  %3290 = vmatprep.mubr.msk.bf16.mxu1 %vm3781_vm1, %v3780_v0  ;;  %2572 = vmatprep.mubr.bf16.mxu0 %v3783_v10 }
 0x3d1   : > { %v2524_v34 = vsel %vm1237_vm10, %v2518_v31, %v2520_v33  ;;  %v2538_v42 = vsel %vm1406_vm13, %v2520_v33, 0 }
 0x3d2   : > { %3095 = vmatprep.subr.msk.bf16.mxu0 %vm1406_vm13, %v2524_v34  ;;  %3289 = vmatpush3.bf16.msra.mxu1 %v2538_v42 }
 0x3d3   : > { %2543 = vmatpush1.bf16.msra.mxu0 %v2532_v35  ;;  %3294 = vmatprep.subr.bf16.mxu1 %v3780_v0 }
 0x3d5   : > { %3291 = vmatmul.mubr.msk.bf16.vlgmr.msra.gmra.mrb[76].mxu1 %vm1625_vm3, %v2508_v36 }
 0x3d6   : > { %3096 = vmatmul.mubr.msk.bf16.vlgmr.msra.gmra.mrb[72].mxu0 %vm1625_vm3, %v2508_v36  ;;  %3296 = vmatprep.mubr.msk.bf16.mxu1 %vm3781_vm1, %v3780_v0  ;;  %vm2865_vm1 = vcmask 1047704  }
 0x3d7   : > { %2717 = vmatprep.mubr.bf16.mxu0 %v3783_v10 }
 0x3e2   : > { %v1493_v37 = vpop.f32.mrb[36].mxu1 }
 0x3e3   : > { %v3214_v38 = vpop.f32.mrb[37].mxu1 }
 0x3e4   : > { %v1496_v39 = vpop.f32.mrb[38].mxu1 }
 0x3e5   : > { %v3215_v41 = vpop.f32.mrb[39].mxu1 }
 0x3ea   : > { %v1585_v43 = vpop.f32.mrb[40].mxu1 }
 0x3eb   : > { %v4657_v44 = vadd.f32 %v1585_v43, %v1493_v37  ;;  %v3220_v45 = vpop.f32.mrb[41].mxu1 }
 0x3ec   : > { %v1588_v46 = vpop.f32.mrb[42].mxu1 }
 0x3ed   : > { %v4659_v47 = vadd.f32 %v1588_v46, %v1496_v39  ;;  %v3221_v40 = vpop.f32.mrb[43].mxu1 }
 0x468   : > { %v1713_v48 = vpop.f32.mrb[44].mxu1 }
 0x469   : > { %v1672_v49 = vpop.f32.mrb[40].mxu0  ;;  %v3228_v50 = vpop.f32.mrb[45].mxu1 }
 0x46a   : > { %v1674_v51 = vpop.f32.mrb[41].mxu0  ;;  %v1716_v52 = vpop.f32.mrb[46].mxu1 }
 0x46b   : > { %v1676_v53 = vpop.f32.mrb[42].mxu0  ;;  %v3229_v54 = vpop.f32.mrb[47].mxu1 }
 0x46c   : > { %v1677_v10 = vpop.f32.mrb[43].mxu0 }
 0x470   : > { %v1806_v55 = vpop.f32.mrb[48].mxu1 }
 0x471   : > { %v1807_v56 = vadd.f32 %v1806_v55, %v1713_v48  ;;  %v1765_v57 = vpop.f32.mrb[44].mxu0  ;;  %v3236_v1 = vpop.f32.mrb[49].mxu1 }
 0x472   : > { %v1766_v58 = vadd.f32 %v1765_v57, %v1672_v49  ;;  %v1767_v3 = vpop.f32.mrb[45].mxu0  ;;  %v1809_v5 = vpop.f32.mrb[50].mxu1 }
 0x473   : > { %v1768_v59 = vadd.f32 %v1767_v3, %v1674_v51  ;;  %v1769_v60 = vpop.f32.mrb[46].mxu0  ;;  %v3237_v61 = vpop.f32.mrb[51].mxu1 }
 0x474   : > { %v1770_v6 = vpop.f32.mrb[47].mxu0 }
 0x478   : > { %v1919_v62 = vpop.f32.mrb[52].mxu1 }
 0x479   : > { %v1927_v7 = vadd.f32 %v1919_v62, %v1807_v56  ;;  %v1878_v63 = vpop.f32.mrb[48].mxu0  ;;  %v3244_v2 = vpop.f32.mrb[53].mxu1 }
 0x47a   : > { %v1925_v9 = vadd.f32 %v1878_v63, %v1766_v58  ;;  %v1880_v12 = vpop.f32.mrb[49].mxu0  ;;  %v1922_v13 = vpop.f32.mrb[54].mxu1 }
 0x47b   : > { %v1926_v14 = vadd.f32 %v1880_v12, %v1768_v59  ;;  %v1882_v15 = vpop.f32.mrb[50].mxu0  ;;  %v3245_v17 = vpop.f32.mrb[55].mxu1 }
 0x47c   : > { %v1883_v18 = vpop.f32.mrb[51].mxu0  ;;  %v2628_v17 = vpop.permute.xlu1 %2627 }
 0x480   : > { %v2035_v19 = vpop.f32.mrb[56].mxu1 }
 0x481   : > { %v2043_v4 = vadd.f32 %v2035_v19, %v1927_v7  ;;  %v1994_v11 = vpop.f32.mrb[52].mxu0  ;;  %v3252_v8 = vpop.f32.mrb[57].mxu1 }
 0x482   : > { %v2041_v20 = vadd.f32 %v1994_v11, %v1925_v9  ;;  %v1996_v21 = vpop.f32.mrb[53].mxu0  ;;  %v2038_v22 = vpop.f32.mrb[58].mxu1 }
 0x483   : > { %v2042_v23 = vadd.f32 %v1996_v21, %v1926_v14  ;;  %v1998_v25 = vpop.f32.mrb[54].mxu0  ;;  %v3253_v27 = vpop.f32.mrb[59].mxu1 }
 0x484   : > { %v1999_v28 = vpop.f32.mrb[55].mxu0 }
 0x488   : > { %v2151_v29 = vpop.f32.mrb[60].mxu1 }
 0x489   : > { %v2159_v30 = vadd.f32 %v2151_v29, %v2043_v4  ;;  %v2110_v31 = vpop.f32.mrb[56].mxu0  ;;  %v3260_v32 = vpop.f32.mrb[61].mxu1 }
 0x48a   : > { %v2157_v33 = vadd.f32 %v2110_v31, %v2041_v20  ;;  %v2112_v34 = vpop.f32.mrb[57].mxu0  ;;  %v2154_v42 = vpop.f32.mrb[62].mxu1 }
 0x48b   : > { %v2158_v35 = vadd.f32 %v2112_v34, %v2042_v23  ;;  %v2114_v36 = vpop.f32.mrb[58].mxu0  ;;  %v3261_v37 = vpop.f32.mrb[63].mxu1 }
 0x48c   : > { %v2115_v38 = vpop.f32.mrb[59].mxu0 }
 0x490   : > { %v2267_v39 = vpop.f32.mrb[64].mxu1 }
 0x491   : > { %v2275_v41 = vadd.f32 %v2267_v39, %v2159_v30  ;;  %v2226_v43 = vpop.f32.mrb[60].mxu0  ;;  %v3268_v45 = vpop.f32.mrb[65].mxu1 }
 0x492   : > { %v2273_v46 = vadd.f32 %v2226_v43, %v2157_v33  ;;  %v2228_v40 = vpop.f32.mrb[61].mxu0  ;;  %v2270_v48 = vpop.f32.mrb[66].mxu1 }
 0x493   : > { %v2274_v49 = vadd.f32 %v2228_v40, %v2158_v35  ;;  %v2230_v50 = vpop.f32.mrb[62].mxu0  ;;  %v3269_v51 = vpop.f32.mrb[67].mxu1 }
 0x494   : > { %v2231_v52 = vpop.f32.mrb[63].mxu0  ;;  %v2672_v43 = vpop.permute.xlu0 %2671 }
 0x495   : > { %v2780_v45 = vpop.permute.xlu1 %2779 }
 0x498   : > { %v2383_v53 = vpop.f32.mrb[68].mxu1  ;;  %v2785_v50 = vpop.permute.xlu0 %2784 }
 0x499   : > { %v2391_v54 = vadd.f32 %v2383_v53, %v2275_v41  ;;  %v2342_v10 = vpop.f32.mrb[64].mxu0  ;;  %v3276_v55 = vpop.f32.mrb[69].mxu1 }
 0x49a   : > { %v2389_v56 = vadd.f32 %v2342_v10, %v2273_v46  ;;  %v2344_v57 = vpop.f32.mrb[65].mxu0  ;;  %v2386_v1 = vpop.f32.mrb[70].mxu1 }
 0x49b   : > { %v2390_v58 = vadd.f32 %v2344_v57, %v2274_v49  ;;  %v2346_v3 = vpop.f32.mrb[66].mxu0  ;;  %v3277_v5 = vpop.f32.mrb[71].mxu1 }
 0x49c   : > { %v2347_v59 = vpop.f32.mrb[67].mxu0  ;;  %v2806_v46 = vpop.permute.xlu1 %2805 }
 0x49d   : > { %v2808_v51 = vpop.permute.xlu0 %2807 }
 0x4a0   : > { %v2499_v60 = vpop.f32.mrb[72].mxu1  ;;  %v2810_v40 = vpop.permute.xlu1 %2809 }
 0x4a1   : > { %v2507_v61 = vadd.f32 %v2499_v60, %v2391_v54  ;;  %v2458_v6 = vpop.f32.mrb[68].mxu0  ;;  %v3284_v62 = vpop.f32.mrb[73].mxu1 }
 0x4a2   : > { %v2505_v7 = vadd.f32 %v2458_v6, %v2389_v56  ;;  %v2460_v63 = vpop.f32.mrb[69].mxu0  ;;  %v2502_v2 = vpop.f32.mrb[74].mxu1 }
 0x4a3   : > { %v2506_v9 = vadd.f32 %v2460_v63, %v2390_v58  ;;  %v2462_v12 = vpop.f32.mrb[70].mxu0  ;;  %v3285_v13 = vpop.f32.mrb[75].mxu1 }
 0x4a4   : > { %v2463_v14 = vpop.f32.mrb[71].mxu0  ;;  %v2814_v48 = vpop.permute.xlu1 %2813 }
 0x4a5   : > { %v2812_v52 = vpop.permute.xlu0 %2811 }
 0x4a6   : > { %v2819_v2 = vsel %vm837_vm6, %v2812_v52, %v2814_v48 }
 0x4a8   : > { %v2615_v15 = vpop.f32.mrb[76].mxu1 }
 0x4a9   : > { %v2623_v18 = vadd.f32 %v2615_v15, %v2507_v61  ;;  %v2574_v19 = vpop.f32.mrb[72].mxu0  ;;  %v3292_v4 = vpop.f32.mrb[77].mxu1  ;;  %v2818_v61 = vsel %vm837_vm6, %v2808_v51, %v2810_v40 }
 0x4aa   : > { %v2621_v11 = vadd.f32 %v2574_v19, %v2505_v7  ;;  %v2576_v8 = vpop.f32.mrb[73].mxu0  ;;  %v2618_v20 = vpop.f32.mrb[78].mxu1 }
 0x4ab   : > { %v2632_v21 = vadd.f32 %v2628_v17, %v2623_v18  ;;  %v2622_v22 = vadd.f32 %v2576_v8, %v2506_v9  ;;  %v2578_v23 = vpop.f32.mrb[74].mxu0  ;;  %v3293_v25 = vpop.f32.mrb[79].mxu1 }
 0x4ac   : > { %v2630_v27 = vadd.f32 %v2628_v17, %v2621_v11  ;;  %v2579_v28 = vpop.f32.mrb[75].mxu0  ;;  %v2816_v0 = vpop.permute.xlu0 %2815 }
 0x4ad   : > { %v2635_v29 = vmax.f32 %v2632_v21, 0.0  ;;  %v2631_v30 = vadd.f32 %v2628_v17, %v2622_v22  ;;  %v2820_v13 = vsel %vm837_vm6, %v2814_v48, %v2816_v0 }
 0x4ae   : > { %v2633_v31 = vmax.f32 %v2630_v27, 0.0 }
 0x4af   : > { %v2634_v32 = vmax.f32 %v2631_v30, 0.0  ;;  %v2638_v33 = vmul.f32 %v2635_v29, %v4323_v16 }
 0x4b0   : > { %v2636_v34 = vmul.f32 %v2633_v31, %v4331_v26 }
 0x4b1   : > { %v2637_v42 = vmul.f32 %v2634_v32, %v4328_v24  ;;  %v4664_v35 = vpack.c.bf16 %v2638_v33, %v2638_v33 }
 0x4b2   : > { %v2639_v36 = vpack.c.bf16 %v2636_v34, %v2636_v34 }
 0x4b3   : > { %v4666_v37 = vpack.c.bf16 %v2637_v42, %v2637_v42  ;;  %v2683_v38 = vsel %vm1406_vm13, %v4664_v35, 0 }
 0x4b4   : > { %3295 = vmatpush3.bf16.msra.mxu1 %v2683_v38  ;;  %v2677_v39 = vsel %vm1406_vm13, %v2639_v36, 0  ;;  %v2645_v41 = vrot.slane %v2639_v36, 4 }
 0x4b5   : > { %3099 = vmatprep.subr.msk.bf16.mxu0 %vm1406_vm13, %v4666_v37  ;;  %v2646_v20 = vrot.slane %v4666_v37, 4 }
 0x4b6   : > { %2686 = vmatpush1.bf16.msra.mxu0 %v2677_v39  ;;  %2648 = vrot.lane.b32.xlu1 %v2645_v41, %s3791_s1 }
 0x4b7   : > { %3297 = vmatmul.mubr.msk.bf16.vlgmr.msra.gmra.mrb[80].mxu1 %vm1402_vm0, %v2672_v43 }
 0x4b9   : > { %3100 = vmatmul.mubr.msk.bf16.vlgmr.msra.gmra.mrb[36].mxu0 %vm1402_vm0, %v2672_v43 }
 0x528   : > { %v2649_v49 = vpop.permute.xlu1 %2648 }
 0x58a   : > { %v2762_v53 = vpop.f32.mrb[80].mxu1 }
 0x58b   : > { %v2771_v54 = vadd.f32 %v2762_v53, %v4657_v44  ;;  %v3298_v10 = vpop.f32.mrb[81].mxu1  ;;  %v2817_v44 = vsel %vm837_vm6, %v2806_v46, %v2808_v51 }
 0x58c   : > { %v2719_v55 = vpop.f32.mrb[36].mxu0  ;;  %v2765_v56 = vpop.f32.mrb[82].mxu1 }
 0x58d   : > { %v2789_v57 = vadd.f32 %v2780_v45, %v2771_v54  ;;  %v2787_v1 = vadd.f32 %v2780_v45, %v2719_v55  ;;  %v2774_v58 = vadd.f32 %v2765_v56, %v4659_v47  ;;  %v2721_v3 = vpop.f32.mrb[37].mxu0  ;;  %v3299_v5 = vpop.f32.mrb[83].mxu1 }
 0x58e   : > { %v2788_v59 = vadd.f32 %v2780_v45, %v2721_v3  ;;  %v2723_v60 = vpop.f32.mrb[38].mxu0 }
 0x58f   : > { %v2793_v6 = vmul.f32 %v2787_v1, %v4331_v26  ;;  %v2790_v62 = vadd.f32 %v2785_v50, %v2723_v60  ;;  %v2725_v7 = vpop.f32.mrb[39].mxu0  ;;  %v2795_v47 = vmul.f32 %v2789_v57, %v4323_v16  ;;  %v2792_v15 = vadd.f32 %v2785_v50, %v2774_v58 }
 0x590   : > { %v2794_v63 = vmul.f32 %v2788_v59, %v4328_v24  ;;  %v2791_v9 = vadd.f32 %v2785_v50, %v2725_v7 }
 0x591   : > { %v2796_v12 = vmul.f32 %v2790_v62, %v4331_v26  ;;  %v2827_v14 = vadd.f32 %v2817_v44, %v2793_v6  ;;  %v2829_v11 = vadd.f32 %v2810_v40, %v2795_v47  ;;  %v2798_v8 = vmul.f32 %v2792_v15, %v4323_v16 }
 0x592   : > { %v2797_v17 = vmul.f32 %v2791_v9, %v4328_v24  ;;  %v2828_v18 = vadd.f32 %v2818_v61, %v2794_v63  ;;  %v2647_v24 = vrot.slane %v4664_v35, 4 }
 0x593   : > { %2843 = vrot.lane.b32.xlu1 %v2827_v14, %s3791_s1  ;;  %v2830_v19 = vadd.f32 %v2819_v2, %v2796_v12  ;;  %v2832_v26 = vadd.f32 %v2816_v0, %v2798_v8 }
 0x594   : > { %v2831_v4 = vadd.f32 %v2820_v13, %v2797_v17  ;;  %2845 = vrot.lane.b32.xlu0 %v2828_v18, %s3791_s1 }
 0x597   : > { %2847 = vrot.lane.b32.xlu1 %v2829_v11, %s3791_s1 }
 0x598   : > { %2849 = vrot.lane.b32.xlu0 %v2830_v19, %s3791_s1 }
 0x59b   : > { %2851 = vrot.lane.b32.xlu1 %v2831_v4, %s3791_s1 }
 0x59c   : > { %2853 = vrot.lane.b32.xlu0 %v2832_v26, %s3791_s1 }
 0x59f   : > { %2652 = vrot.lane.b32.xlu1 %v2647_v24, %s3791_s1 }
 0x5a0   : > { %2650 = vrot.lane.b32.xlu0 %v2646_v20, %s3791_s1 }
 0x605   : > { %v2844_v16 = vpop.permute.xlu1 %2843 }
 0x606   : > { %2866 = vst.msk [vmem:[%s4678_s25] sm:$0xff] %vm2865_vm1, %v2844_v16  ;;  %v2846_v21 = vpop.permute.xlu0 %2845 }
 0x607   : > { %v2855_v22 = vsel %vm435_vm11, %v2844_v16, %v2846_v21 }
 0x608   : > { %2867 = vst [vmem:[%s4678_s25 + $0x8] sm:$0xff] %v2855_v22 }
 0x609   : > { %v2848_v23 = vpop.permute.xlu1 %2847 }
 0x60a   : > { %v2856_v25 = vsel %vm435_vm11, %v2846_v21, %v2848_v23  ;;  %v2850_v27 = vpop.permute.xlu0 %2849 }
 0x60b   : > { %2869 = vst.msk [vmem:[%s4678_s25 + $0x10] sm:$0xff] %vm2868_vm2, %v2856_v25 }
 0x60c   : > { %2870 = vst.msk [vmem:[%s4678_s25 + $0x18] sm:$0xff] %vm2865_vm1, %v2850_v27 }
 0x60d   : > { %v2852_v28 = vpop.permute.xlu1 %2851 }
 0x60e   : > { %v2857_v29 = vsel %vm435_vm11, %v2850_v27, %v2852_v28  ;;  %v2854_v30 = vpop.permute.xlu0 %2853 }
 0x60f   : > { %2871 = vst [vmem:[%s4678_s25 + $0x20] sm:$0xff] %v2857_v29  ;;  %v2858_v31 = vsel %vm435_vm11, %v2852_v28, %v2854_v30 }
 0x610   : > { %2872 = vst.msk [vmem:[%s4678_s25 + $0x28] sm:$0xff] %vm2868_vm2, %v2858_v31 }
 0x611   : > { %v2653_v32 = vpop.permute.xlu1 %2652 }
 0x612   : > { %3695 = shalt.err (!%p3692_p11)
}
 0x613   : > { %s3696_s13 = scalar_lea.hbm %s4725_s15, 768  ;;  %s3700_s23 = scalar_lea.hbm %s4783_s8, 1536 }
 0x614   : > { %p3697_p12 = scmp.ne.s32.totalorder %s4725_s15, %s3696_s13  ;;  %p3701_p9 = scmp.lt.u32.totalorder %s4725_s15, %s4783_s8 }
 0x615   : > { %p3702_p7 = scmp.lt.u32.totalorder %s3700_s23, %s3696_s13  ;;  %p3704_p4 = scmp.lt.u32.totalorder %s3696_s13, %s4725_s15 }
 0x616   : > { %p3698_p3 = pnand %p3697_p12, %p4808_p1 }
 0x617   : > { %p3703_p10 = por %p3702_p7, %p3701_p9 }
 0x618   : > { %p3699_p5 = pneg %p3698_p3 }
 0x619   : > { %p3705_p13 = por %p3704_p4, %p3703_p10 }
 0x61b   : > { %p3706_p0 = pnand %p3705_p13, %p3699_p5 }
 0x61d   : > { %3709 = shalt.err (!%p3706_p0)
}
 0x61e   : > { %s3795_s12 = smov 384   ;;  %s3796_s17 = smov 24   ;;  %v2651_v33 = vpop.permute.xlu0 %2650 }
 0x61f   : > { %3342 = dma.vmem_to_hbm [thread:$0]  (%p4808_p1), %s4727_s26, 768, %s4725_s15, %s2874_s11, %s3795_s12, %s3795_s12, %s3796_s17  }
 0x620 PF: > { %s2902_s20 = sand.u32 1, %s3752_s27   ;;  %p4809_p2 = scmp.ne.s32.totalorder %s4797_s14, 0 }
 0x621   : > { %p4810_p8 = scmp.ge.s32.totalorder %s3764_s30, 2  ;;  %s2903_s10 = scalar_lea.sflag [#allocation5], %s2902_s20 }
 0x623   : > { %p3371_p6 = pnand %p4810_p8, %p4809_p2 }
 0x625   : > { %3747 = dma.done.wait (!%p3371_p6), %s2903_s10, 768  }
 0x626   : > { %3749 = vsyncadd (!%p3371_p6), %s2903_s10, 4294966528  ;;  %p25_p11 = scmp.ge.s32.totalorder %s4056_s18, 4   ;;  %s4811_s27 = smov %s3756_s28 }
 0x627   : > { %s4812_s28 = smov %s3760_s29  ;;  %s4813_s29 = smov %s4068_s24 }
 0x628   : > { %s4814_s30 = smov %s4056_s18  ;;  %27 = sbr.rel (!%p25_p11) target bundleno = 12 (0xc), region = 125 }
 0x62f   :  { %2908 = vsyncpa [#allocation4], 1 }
 0x630   :  { %2910 = vsyncpa [#allocation4 + $0x1], 1 }
 0x631   :  { %2911 = vsyncpa [#allocation7], 1 }
 0x632   :  { %2912 = vsyncpa [#allocation10], 1 }
 0x633   :  { %2913 = vsyncpa [#allocation13], 1 }
 0x634   :  { %2914 = vsyncpa [#allocation16], 1 }
 0x635   :  { %2915 = vsyncpa [#allocation5], 1 }
 0x636   :  { %2917 = vsyncpa [#allocation5 + $0x1], 1 }

// kernel: dpid_forward.9
= control target key start
LH: loop header
LB: loop body
LE: loop exit
PB: predicated region body
PF: predicated region fallthrough
CT: control target
= control target key end

     0   :  { %8 = vsyncpa [#allocation3], 0  ;;  %s909_s0 = inlined_call_operand.hbm [shape: f32[2,64,64], index: 0, kind: input, shape index: {}]   ;;  %s910_s1 = inlined_call_operand.hbm [shape: bf16[3,64], index: 1, kind: input, shape index: {}]   ;;  %s911_s2 = inlined_call_operand.hbm [shape: f32[3,1], index: 2, kind: input, shape index: {}]   ;;  %s912_s3 = inlined_call_operand.hbm [shape: f32[2,3,64], index: 3, kind: output, shape index: {}]  }
   0x1   :  { %10 = vsyncpa [#allocation3 + $0x1], 0 }
   0x2   :  { %11 = vsyncpa [#allocation6], 0 }
   0x3   :  { %12 = vsyncpa [#allocation4], 0 }
   0x4   :  { %14 = vsyncpa [#allocation4 + $0x1], 0  ;;  %s679_s12 = smov 0   ;;  %s681_s13 = smov 0  }
   0x5   :  { %s683_s14 = smov 0   ;;  %s685_s15 = smov 0  }
   0x6 LB: > { %s700_s16 = sadd.s32 4294967295, %s648_s15   ;;  %s383_s17 = sadd.s32 4294967294, %s648_s15   ;;  %s648_s15 = sphi %s685_s15, %s937_s15   ;;  %s644_s14 = sphi %s683_s14, %s936_s14   ;;  %s640_s13 = sphi %s681_s13, %s935_s13   ;;  %s636_s12 = sphi %s679_s12, %s934_s12  }
   0x7   : > { %s704_s18 = sadd.s32 1, %s648_s15   ;;  %s27_s19 = sadd.s32 1, %s644_s14 }
   0x8   : > { %s24_s20 = ssub.s32 %s648_s15, %s704_s18  ;;  %p34_p0 = scmp.ne.s32.totalorder %s644_s14, %s640_s13 }
   0x9   : > { %p25_p1 = scmp.eq.s32.totalorder %s24_s20, 0  ;;  %p35_p2 = scmp.eq.s32.totalorder %s648_s15, 0 }
   0xa   : > { %p40_p3 = scmp.ne.s32.totalorder %s640_s13, %s636_s12  ;;  %p913_p4 = scmp.eq.s32.totalorder %s700_s16, 0 }
   0xb   : > { %s716_s21 = scalar_select %p25_p1, %s644_s14, %s27_s19  }
   0xc   : > { %p718_p5 = por %p35_p2, %p34_p0  ;;  %p724_p6 = por %p913_p4, %p40_p3 }
   0xd   : > { %p106_p7 = scmp.eq.s32.totalorder %s700_s16, 1  ;;  %p112_p8 = scmp.eq.s32.totalorder %s383_s17, 1 }
   0xe   : > { %s919_s23 = scalar_select %p724_p6, 1, 0 }
   0xf   : > { %p384_p9 = scmp.ge.s32.totalorder %s648_s15, 1  ;;  %p119_p10 = scmp.lt.s32.totalorder %s648_s15, 3 }
  0x10   : > { %p731_p11 = por %p106_p7, %p34_p0  ;;  %p735_p12 = por %p112_p8, %p40_p3 }
  0x11   : > { %p739_p13 = pnand %p384_p9, %p119_p10  ;;  %s650_s27 = smov [#allocation5]  }
  0x12   : > { %s920_s24 = scalar_select %p731_p11, 1, 0 }
  0x13   : > { %s921_s25 = scalar_select %p735_p12, 1, 0 }
  0x14   : > { %s922_s26 = scalar_select %p739_p13, 1, 0 }
  0x15   : > { %p431_p2 = pneg %p739_p13  ;;  %s132_s28 = sshll.u32 %s650_s27, 4  ;;  %s133_s28 = int_to_ptr.vmem [resolvable:$true] %s132_s28 }
  0x16   : > { %p448_p4 = scmp.lt.s32.totalorder %s648_s15, 2  ;;  %p923_p0 = scmp.eq.s32.totalorder %s700_s16, 0 }
  0x17   : > { %s651_s4 = smov [#allocation7]   ;;  %s492_s8 = scalar_lea.hbm %s910_s1, 32 }
  0x18   : > { %p749_p7 = pnand %p431_p2, %p923_p0  ;;  %p755_p3 = pnand %p448_p4, %p718_p5 }
  0x19   : > { %s143_s5 = sshll.u32 %s651_s4, 4  ;;  %p493_p8 = scmp.ne.s32.totalorder %s910_s1, %s492_s8  ;;  %s759_s5 = int_to_ptr.vmem [resolvable:$true] %s143_s5 }
  0x1a   : > { %s925_s30 = scalar_select %p755_p3, 1, 0 }
  0x1b   : > { %p494_p9 = pneg %p749_p7  ;;  %p499_p10 = scmp.lt.u32.totalorder %s492_s8, %s910_s1 }
  0x1d   : > { %p495_p4 = pnand %p494_p9, %p493_p8 }
  0x1f   : > { %p496_p5 = pneg %p495_p4 }
  0x21   : > { %p501_p2 = pnand %p499_p10, %p496_p5 }
  0x23   : > { %504 = shalt.err (!%p501_p2)
}
  0x24   : > { %s505_s19 = scalar_lea.vmem %s133_s28, 32  ;;  %p513_p11 = scmp.lt.s32.totalorder %s133_s28, %s133_s28 }
  0x25   : > { %p506_p0 = scmp.ne.s32.totalorder %s133_s28, %s505_s19  ;;  %p514_p6 = scmp.lt.s32.totalorder %s505_s19, %s505_s19 }
  0x27   : > { %p508_p1 = pnand %p506_p0, %p494_p9  ;;  %p515_p13 = por %p514_p6, %p513_p11 }
  0x29   : > { %p509_p12 = pneg %p508_p1 }
  0x2b   : > { %p516_p3 = pnand %p515_p13, %p509_p12 }
  0x2d   : > { %519 = shalt.err (!%p516_p3)
}
  0x2e   : > { %434 = dma.hbm_to_vmem [thread:$0]  (!%p749_p7), %s910_s1, 32, %s133_s28, [#allocation6]  }
  0x2f   : > { %s154_s27 = sand.u32 1, %s644_s14   ;;  %s520_s7 = scalar_lea.hbm %s911_s2, 64 }
  0x30   : > { %p521_p1 = scmp.ne.s32.totalorder %s911_s2, %s520_s7  ;;  %p527_p12 = scmp.lt.u32.totalorder %s520_s7, %s911_s2 }
  0x32   : > { %p523_p6 = pnand %p521_p1, %p494_p9 }
  0x34   : > { %p524_p11 = pneg %p523_p6 }
  0x36   : > { %p529_p13 = pnand %p527_p12, %p524_p11 }
  0x38   : > { %532 = shalt.err (!%p529_p13)
}
  0x39   : > { %s533_s28 = scalar_lea.vmem %s759_s5, 64  ;;  %p541_p5 = scmp.lt.s32.totalorder %s759_s5, %s759_s5 }
  0x3a   : > { %p534_p3 = scmp.ne.s32.totalorder %s759_s5, %s533_s28  ;;  %p542_p10 = scmp.lt.s32.totalorder %s533_s28, %s533_s28 }
  0x3c   : > { %p536_p8 = pnand %p534_p3, %p494_p9  ;;  %p543_p2 = por %p542_p10, %p541_p5 }
  0x3e   : > { %p537_p4 = pneg %p536_p8 }
  0x40   : > { %p544_p0 = pnand %p543_p2, %p537_p4 }
  0x42   : > { %547 = shalt.err (!%p544_p0)
}
  0x43   : > { %437 = dma.hbm_to_vmem [thread:$0]  (!%p749_p7), %s911_s2, 64, %s759_s5, [#allocation6]  }
  0x44   : > { %s388_s20 = sshll.u32 %s154_s27, 6  ;;  %s401_s22 = sshll.u32 %s648_s15, 10 }
  0x45   : > { %s813_s7 = scalar_lea.hbm %s909_s0, %s401_s22  ;;  %s158_s29 = scalar_lea.vmem [#allocation2], %s388_s20 }
  0x46   : > { %s165_s8 = sshll.u32 %s158_s29, 4  ;;  %s817_s9 = scalar_lea.sflag [#allocation3], %s154_s27  ;;  %s815_s8 = int_to_ptr.vmem [resolvable:$true] %s165_s8 }
  0x47   : > { %s548_s10 = scalar_lea.hbm %s813_s7, 1024  ;;  %p926_p7 = scmp.ne.s32.totalorder %s925_s30, 0 }
  0x48   : > { %p549_p9 = scmp.ne.s32.totalorder %s813_s7, %s548_s10  ;;  %s553_s28 = scalar_lea.hbm %s909_s0, 2048 }
  0x49   : > { %p550_p1 = pneg %p926_p7  ;;  %p554_p12 = scmp.lt.u32.totalorder %s813_s7, %s909_s0 }
  0x4a   : > { %p555_p13 = scmp.lt.u32.totalorder %s553_s28, %s548_s10  ;;  %p557_p8 = scmp.lt.u32.totalorder %s548_s10, %s813_s7 }
  0x4b   : > { %p551_p6 = pnand %p550_p1, %p549_p9 }
  0x4c   : > { %p556_p3 = por %p555_p13, %p554_p12 }
  0x4d   : > { %p552_p11 = pneg %p551_p6 }
  0x4e   : > { %p558_p4 = por %p557_p8, %p556_p3 }
  0x50   : > { %p559_p5 = pnand %p558_p4, %p552_p11 }
  0x52   : > { %562 = shalt.err (!%p559_p5)
}
  0x53   : > { %s563_s27 = scalar_lea.vmem %s815_s8, 1024  ;;  %s652_s20 = smov [#allocation2]  }
  0x54   : > { %p564_p10 = scmp.ne.s32.totalorder %s815_s8, %s563_s27  ;;  %s568_s22 = sshll.u32 %s652_s20, 4  ;;  %s569_s22 = int_to_ptr.vmem [resolvable:$false] %s568_s22 }
  0x55   : > { %s570_s4 = scalar_lea.vmem %s569_s22, 2048  ;;  %p571_p9 = scmp.lt.s32.totalorder %s815_s8, %s569_s22 }
  0x56   : > { %p566_p2 = pnand %p564_p10, %p550_p1  ;;  %p572_p6 = scmp.lt.s32.totalorder %s570_s4, %s563_s27 }
  0x58   : > { %p567_p0 = pneg %p566_p2  ;;  %p573_p12 = por %p572_p6, %p571_p9 }
  0x5a   : > { %p574_p13 = pnand %p573_p12, %p567_p0 }
  0x5c   : > { %577 = shalt.err (!%p574_p13)
}
  0x5d   : > { %s653_s6 = smov 128   ;;  %s654_s29 = smov 8  }
  0x5e   : > { %441 = dma.hbm_to_vmem [thread:$0]  (!%p926_p7), %s813_s7, 1024, %s815_s8, %s817_s9, %s653_s6, %s653_s6, %s654_s29  }
  0x5f   : > { %p927_p1 = scmp.ne.s32.totalorder %s922_s26, 0 }
  0x60   : > { %s848_s10 = sand.u32 (!%p927_p1), 1, %s640_s13   ;;  %p928_p11 = scmp.ne.s32.totalorder (!%p927_p1), %s919_s23, 0 }
  0x61   : > { %177 = sbr.rel (%p927_p1) target bundleno = 354 (0x162), region = 32  ;;  %s392_s5 = sshll.u32 (!%p927_p1), %s848_s10, 6 }
  0x62   : > { %s180_s11 = scalar_lea.sflag (!%p927_p1), [#allocation3], %s848_s10  ;;  %s183_s28 = scalar_lea.vmem (!%p927_p1), [#allocation2], %s392_s5 }
  0x68   : > { %623 = dma.done.wait (%p928_p11), %s180_s11, 1024  }
  0x69   : > { %625 = vsyncadd (%p928_p11), %s180_s11, 4294966272  ;;  %p929_p3 = scmp.eq.s32.totalorder %s700_s16, 0 }
  0x6b   : > { %627 = dma.done.wait (%p929_p3), [#allocation6], 96   ;;  %p930_p7 = pmov %p929_p3 }
  0x6c   : > { %v655_v0 = vmov 0.0   ;;  %vm656_vm0 = vmmov 0   ;;  %v657_v1 = vmov 0   ;;  %v215_v2 = vld [vmem:[%s183_s28] sm:$0xff]  ;;  %v216_v3 = vld [vmem:[%s183_s28 + $0x8] sm:$0xff]  ;;  %v217_v4 = vld [vmem:[%s183_s28 + $0x10] sm:$0xff] }
  0x6d   : > { %629 = vsyncadd (%p930_p7), [#allocation6], 4294967200  ;;  %407 = vmatprep.subr.bf16.mxu0 %v655_v0  ;;  %415 = vmatprep.mubr.msk.bf16.mxu0 %vm656_vm0, %v655_v0  ;;  %v223_v5 = vpack.c.bf16 %v216_v3, %v215_v2  ;;  %v218_v6 = vld [vmem:[%s183_s28 + $0x18] sm:$0xff]  ;;  %v228_v8 = vld [vmem:[#allocation7] sm:$0x7]  ;;  %vm234_vm1 = vcmask 523264  }
  0x6e   : > { %491 = vset.pattern.permute.xlu0 %v657_v1  ;;  %v224_v7 = vpack.c.bf16 %v218_v6, %v217_v4  ;;  %v219_v9 = vld [vmem:[%s183_s28 + $0x20] sm:$0xff]  ;;  %v220_v10 = vld [vmem:[%s183_s28 + $0x28] sm:$0xff]  ;;  %v221_v12 = vld [vmem:[%s183_s28 + $0x30] sm:$0xff]  ;;  %s395_s23 = sshll.u32 %s848_s10, 2  ;;  %s398_s26 = sshll.u32 %s700_s16, 6  ;;  %vm278_vm2 = vcmask 518144  }
  0x6f   : > { %408 = vmatpush3.bf16.msra.mxu0 %v223_v5  ;;  %231 = vperm.xlu0 %491, %v228_v8   ;;  %v225_v11 = vpack.c.bf16 %v220_v10, %v219_v9  ;;  %v222_v13 = vld [vmem:[%s183_s28 + $0x38] sm:$0xff]  ;;  %v227_v15 = vld [vmem:[#allocation5] sm:$0x3]  ;;  %s213_s30 = scalar_lea.vmem [#allocation8], %s395_s23  ;;  %s865_s17 = scalar_lea.hbm %s912_s3, %s398_s26 }
  0x70   : > { %409 = vmatprep.subr.bf16.mxu0 %v655_v0  ;;  %v226_v14 = vpack.c.bf16 %v222_v13, %v221_v12  ;;  %s294_s7 = sshll.u32 %s213_s30, 4  ;;  %s281_s16 = scalar_lea.sflag [#allocation4], %s848_s10  ;;  %s867_s7 = int_to_ptr.vmem [resolvable:$true] %s294_s7 }
  0x71   : > { %s578_s19 = scalar_lea.vmem %s867_s7, 64  ;;  %p931_p4 = scmp.ne.s32.totalorder %s920_s24, 0 }
  0x72   : > { %p579_p8 = scmp.ne.s32.totalorder %s867_s7, %s578_s19  ;;  %s658_s27 = smov [#allocation8]  }
  0x73   : > { %410 = vmatpush3.bf16.msra.mxu0 %v224_v7  ;;  %s582_s20 = sshll.u32 %s658_s27, 4  ;;  %s583_s20 = int_to_ptr.vmem [resolvable:$false] %s582_s20 }
  0x74   : > { %411 = vmatprep.subr.bf16.mxu0 %v655_v0  ;;  %p580_p5 = pnand %p579_p8, %p931_p4  ;;  %s584_s22 = scalar_lea.vmem %s583_s20, 128 }
  0x75   : > { %p585_p2 = scmp.lt.s32.totalorder %s867_s7, %s583_s20  ;;  %p586_p0 = scmp.lt.s32.totalorder %s584_s22, %s578_s19 }
  0x76   : > { %p581_p10 = pneg %p580_p5 }
  0x77   : > { %412 = vmatpush3.bf16.msra.mxu0 %v225_v11  ;;  %p587_p9 = por %p586_p0, %p585_p2 }
  0x78   : > { %413 = vmatprep.subr.bf16.mxu0 %v655_v0 }
  0x79   : > { %p588_p6 = pnand %p587_p9, %p581_p10 }
  0x7b   : > { %414 = vmatpush3.bf16.msra.mxu0 %v226_v14 }
  0x7e   : > { %416 = vmatmul.mubr.msk.bf16.vlgmr.msra.gmra.mrb[0].mxu0 %vm234_vm1, %v227_v15 }
  0xee   : > { %v232_v16 = vpop.permute.xlu0 %231 }
 0x151   : > { %v272_v17 = vpop.f32.mrb[0].mxu0 }
 0x152   : > { %v273_v18 = vadd.f32 %v272_v17, %v232_v16  ;;  %v417_v19 = vpop.f32.mrb[1].mxu0 }
 0x153   : > { %v275_v20 = vpop.f32.mrb[2].mxu0 }
 0x154   : > { %v418_v21 = vpop.f32.mrb[3].mxu0  ;;  %279 = vst.msk [vmem:[%s213_s30] sm:$0x7] %vm278_vm2, %v273_v18 }
 0x155   : > { %591 = shalt.err (!%p588_p6)
}
 0x156   : > { %s592_s4 = scalar_lea.hbm %s865_s17, 64  ;;  %s596_s10 = scalar_lea.hbm %s912_s3, 128 }
 0x157   : > { %p593_p12 = scmp.ne.s32.totalorder %s865_s17, %s592_s4  ;;  %p597_p11 = scmp.lt.u32.totalorder %s865_s17, %s912_s3 }
 0x158   : > { %p598_p3 = scmp.lt.u32.totalorder %s596_s10, %s592_s4  ;;  %p600_p8 = scmp.lt.u32.totalorder %s592_s4, %s865_s17 }
 0x159   : > { %p594_p13 = pnand %p593_p12, %p931_p4 }
 0x15a   : > { %p599_p7 = por %p598_p3, %p597_p11 }
 0x15b   : > { %p595_p1 = pneg %p594_p13 }
 0x15c   : > { %p601_p5 = por %p600_p8, %p599_p7 }
 0x15e   : > { %p602_p10 = pnand %p601_p5, %p595_p1 }
 0x160   : > { %605 = shalt.err (!%p602_p10)
}
 0x161   : > { %429 = dma.vmem_to_hbm [thread:$0]  (%p931_p4), %s867_s7, 64, %s865_s17, %s281_s16  }
 0x162 PF: > { %s306_s28 = sand.u32 1, %s636_s12   ;;  %p932_p2 = scmp.ne.s32.totalorder %s921_s25, 0 }
 0x163   : > { %p933_p0 = scmp.ge.s32.totalorder %s648_s15, 2  ;;  %s307_s23 = scalar_lea.sflag [#allocation4], %s306_s28 }
 0x165   : > { %p443_p9 = pnand %p933_p0, %p932_p2 }
 0x167   : > { %631 = dma.done.wait (!%p443_p9), %s307_s23, 64  }
 0x168   : > { %633 = vsyncadd (!%p443_p9), %s307_s23, 4294967232  ;;  %p17_p6 = scmp.ge.s32.totalorder %s704_s18, 4   ;;  %s934_s12 = smov %s640_s13 }
 0x169   : > { %s935_s13 = smov %s644_s14  ;;  %s936_s14 = smov %s716_s21 }
 0x16a   : > { %s937_s15 = smov %s704_s18  ;;  %19 = sbr.rel (!%p17_p6) target bundleno = 6 (0x6), region = 85 }
 0x171   :  { %312 = vsyncpa [#allocation3], 1 }
 0x172   :  { %314 = vsyncpa [#allocation3 + $0x1], 1 }
 0x173   :  { %315 = vsyncpa [#allocation6], 1 }
 0x174   :  { %316 = vsyncpa [#allocation4], 1 }
 0x175   :  { %318 = vsyncpa [#allocation4 + $0x1], 1 }

</bundles_post_ra>
